<compile_context>
chip_gen: v7x
topology: tpu7x:2x2x1
jax: 0.10.0
libtpu: 0.0.40
codegen_flags: <defaults>
</compile_context>

<pallas_src>
import math

import jax
import jax.numpy as jnp
from jax.experimental import pallas as pl
from jax.experimental.pallas import tpu as pltpu

LEAK = 0.2
BN_EPS = 0.8               # nn.BatchNorm1d(out_feat, 0.8) -> eps = 0.8
LATENT_DIM = 100
INPUT_SHAPE = 64           # small "image" feature size for the synthetic test
BATCH = 8

LATENT_PAD = 128           # pad K of first generator layer to a full lane tile
FEAT_PAD = 128             # pad gen output / disc input features to 128 lanes

# Packed small-parameter slab layout (all offsets multiples of 128, f32):
#   [   0: 128) gb1      [ 128: 256) gb5 (padded)
#   [ 256: 512) gamma2   [ 512: 768) beta2
#   [ 768:1280) gamma3   [1280:1792) beta3
#   [1792:2816) gamma4   [2816:3840) beta4
#   [3840:4352) db1      [4352:4608) db2      [4608:4736) db3 (lane-broadcast)
SLAB_W = 4736


# ----------------------------- fused Pallas kernel --------------------------

def gan_kernel(z_ref, x_ref,
               gw1, gw2, gw3, gw4_hbm, gw5_hbm,
               dw1_hbm, dw2_hbm, dw3, slab,
               out_ref,
               gw4_buf, gw5_buf, dw1_buf, dw2_buf, sems):
    B = z_ref.shape[0]

    # Kick off prefetch of the late-layer weights; overlaps generator layers 1-3.
    cp_gw4 = pltpu.make_async_copy(gw4_hbm, gw4_buf, sems.at[0])
    cp_gw5 = pltpu.make_async_copy(gw5_hbm, gw5_buf, sems.at[1])
    cp_dw1 = pltpu.make_async_copy(dw1_hbm, dw1_buf, sems.at[2])
    cp_dw2 = pltpu.make_async_copy(dw2_hbm, dw2_buf, sems.at[3])
    cp_gw4.start(); cp_gw5.start(); cp_dw1.start(); cp_dw2.start()

    # Static 128-aligned slices of the packed f32 parameter slab.
    gb1 = slab[:, 0:128]
    gb5 = slab[:, 128:256]
    g2, be2 = slab[:, 256:512], slab[:, 512:768]
    g3, be3 = slab[:, 768:1280], slab[:, 1280:1792]
    g4, be4 = slab[:, 1792:2816], slab[:, 2816:3840]
    db1 = slab[:, 3840:4352]
    db2 = slab[:, 4352:4608]
    db3 = slab[:, 4608:4736]            # scalar broadcast across 128 lanes

    def lrelu(h):                       # valid for 0 < LEAK < 1
        return jnp.maximum(h, LEAK * h)

    def mm(h, w):                       # bf16 MXU feed, f32 accumulation
        return jnp.dot(h.astype(jnp.bfloat16), w,
                       preferred_element_type=jnp.float32)

    def bn(h, gamma, beta):             # training-mode BN, folded scale/offset
        mean = jnp.mean(h, axis=0, keepdims=True)
        var = jnp.mean(h * h, axis=0, keepdims=True) - mean * mean
        scale = gamma * jax.lax.rsqrt(var + BN_EPS)
        offset = beta - mean * scale
        return h * scale + offset

    # ---------------- Generator ----------------
    # Biases on BN-fed layers are omitted: batch-stat BN cancels them exactly.
    h = lrelu(mm(z_ref[...], gw1[...]) + gb1)          # 128p -> 128
    h = lrelu(bn(mm(h, gw2[...]), g2, be2))            # 128  -> 256
    h = lrelu(bn(mm(h, gw3[...]), g3, be3))            # 256  -> 512
    cp_gw4.wait()
    h = lrelu(bn(mm(h, gw4_buf[...]), g4, be4))        # 512  -> 1024
    cp_gw5.wait()
    gen = jnp.tanh(mm(h, gw5_buf[...]) + gb5)          # 1024 -> 128p

    # -------- Discriminator on [fake ; real] fused into one (2B, .) batch ----
    # (.detach() only affects autograd; forward values identical, so the
    #  generator output is consumed directly from registers.)
    d_in = jnp.concatenate([gen, x_ref[...]], axis=0)  # (2B, 128)
    cp_dw1.wait()
    h = lrelu(mm(d_in, dw1_buf[...]) + db1)            # 128p -> 512
    cp_dw2.wait()
    h = lrelu(mm(h, dw2_buf[...]) + db2)               # 512  -> 256
    # Final 256 -> 1 layer as VPU multiply + lane reduce (no N=1 MXU pass).
    logits = jnp.sum(h * dw3[...].astype(jnp.float32), axis=-1, keepdims=True)
    d_rows = jax.nn.sigmoid(jnp.broadcast_to(logits, (2 * B, FEAT_PAD)) + db3)

    # Single lane-dense output: rows [0,B) = gen, rows [B,3B) = D(.) broadcast.
    out_ref[0:B, :] = gen
    out_ref[B:3 * B, :] = d_rows


# ----------------------------- wrapper --------------------------------------

def _nbytes(shape, dtype):
    n = 1
    for d in shape:
        n *= int(d)
    return n * jnp.dtype(dtype).itemsize


@jax.jit
def gan_forward(x, params, z_key):
    """Reproduces GAN.forward: (gen_data, fake_cls, real_cls) in ONE pallas_call."""
    B = x.shape[0]
    gp, dp = params["gen"], params["disc"]

    z = jax.random.normal(z_key, (B, LATENT_DIM), dtype=jnp.float32)
    z_pad = jnp.pad(z, ((0, 0), (0, LATENT_PAD - LATENT_DIM)))
    x_pad = jnp.pad(x, ((0, 0), (0, FEAT_PAD - INPUT_SHAPE)))

    args = (z_pad, x_pad,
            gp["w1"], gp["w2"], gp["w3"], gp["w4"], gp["w5"],
            dp["w1"], dp["w2"], dp["w3"], params["slab"])

    vmem = pl.BlockSpec(memory_space=pltpu.MemorySpace.VMEM)
    hbm = pl.BlockSpec(memory_space=pl.ANY)        # prefetched manually in-kernel
    in_specs = [vmem, vmem,                         # z, x
                vmem, vmem, vmem, hbm, hbm,         # gw1..gw5
                hbm, hbm, vmem,                     # dw1, dw2, dw3
                vmem]                               # slab

    out_shape = jax.ShapeDtypeStruct((3 * B, FEAT_PAD), jnp.float32)

    flops = (2 * B * (LATENT_PAD * 128 + 128 * 256 + 256 * 512 + 512 * 1024
                      + 1024 * FEAT_PAD)
             + 2 * (2 * B) * (FEAT_PAD * 512 + 512 * 256 + 256))
    bytes_accessed = (sum(_nbytes(a.shape, a.dtype) for a in args)
                      + _nbytes(out_shape.shape, out_shape.dtype))
    transcendentals = B * FEAT_PAD + 2 * B * FEAT_PAD + (256 + 512 + 1024)

    out = pl.pallas_call(
        gan_kernel,
        out_shape=out_shape,
        in_specs=in_specs,
        out_specs=vmem,
        scratch_shapes=[
            pltpu.VMEM((512, 1024), jnp.bfloat16),      # gw4 prefetch buffer
            pltpu.VMEM((1024, FEAT_PAD), jnp.bfloat16),  # gw5
            pltpu.VMEM((FEAT_PAD, 512), jnp.bfloat16),   # dw1
            pltpu.VMEM((512, 256), jnp.bfloat16),        # dw2
            pltpu.SemaphoreType.DMA((4,)),
        ],
        cost_estimate=pl.CostEstimate(flops=int(flops),
                                      transcendentals=int(transcendentals),
                                      bytes_accessed=int(bytes_accessed)),
    )(*args)

    gen_data = out[:B, :INPUT_SHAPE]
    fake_cls = out[B:2 * B, :1]
    real_cls = out[2 * B:, :1]
    return gen_data, fake_cls, real_cls


# ----------------------------- parameter init ------------------------------

def _linear_params(key, fan_in, fan_out):
    # PyTorch nn.Linear default: U(-1/sqrt(fan_in), 1/sqrt(fan_in)).
    kw, kb = jax.random.split(key)
    bound = 1.0 / math.sqrt(fan_in)
    w = jax.random.uniform(kw, (fan_in, fan_out), jnp.float32, -bound, bound)
    b = jax.random.uniform(kb, (1, fan_out), jnp.float32, -bound, bound)
    return w, b


def init_params(key, input_shape=INPUT_SHAPE, latent_dim=LATENT_DIM):
    keys = jax.random.split(key, 8)
    bf16 = jnp.bfloat16

    w1, b1 = _linear_params(keys[0], latent_dim, 128)
    w2, _ = _linear_params(keys[1], 128, 256)     # bias dropped: BN cancels it
    w3, _ = _linear_params(keys[2], 256, 512)     # bias dropped: BN cancels it
    w4, _ = _linear_params(keys[3], 512, 1024)    # bias dropped: BN cancels it
    w5, b5 = _linear_params(keys[4], 1024, input_shape)

    dw1, db1 = _linear_params(keys[5], input_shape, 512)
    dw2, db2 = _linear_params(keys[6], 512, 256)
    dw3, db3 = _linear_params(keys[7], 256, 1)

    gen = {
        "w1": jnp.pad(w1, ((0, LATENT_PAD - latent_dim), (0, 0))).astype(bf16),
        "w2": w2.astype(bf16),
        "w3": w3.astype(bf16),
        "w4": w4.astype(bf16),
        "w5": jnp.pad(w5, ((0, 0), (0, FEAT_PAD - input_shape))).astype(bf16),
    }
    disc = {
        "w1": jnp.pad(dw1, ((0, FEAT_PAD - input_shape), (0, 0))).astype(bf16),
        "w2": dw2.astype(bf16),
        "w3": dw3.reshape(1, 256).astype(bf16),   # row layout for VPU reduce
    }

    # Packed f32 small-parameter slab (biases + BN gamma/beta), 128-aligned.
    ones = lambda n: jnp.ones((1, n), jnp.float32)
    zeros = lambda n: jnp.zeros((1, n), jnp.float32)
    b5_pad = jnp.pad(b5, ((0, 0), (0, FEAT_PAD - input_shape)))
    db3_row = jnp.broadcast_to(db3.reshape(1, 1), (1, 128))
    slab = jnp.concatenate([
        b1, b5_pad,
        ones(256), zeros(256),      # gamma2, beta2 (PyTorch default init)
        ones(512), zeros(512),      # gamma3, beta3
        ones(1024), zeros(1024),    # gamma4, beta4
        db1, db2, db3_row,
    ], axis=1)
    assert slab.shape == (1, SLAB_W)

    return {"gen": gen, "disc": disc, "slab": slab}


# ----------------------------- reference (pure JAX) -------------------------

def _ref_forward(z_pad, x_pad, params):
    gp, dp = params["gen"], params["disc"]
    slab = params["slab"]
    gb1, gb5 = slab[:, 0:128], slab[:, 128:256]
    g2, be2 = slab[:, 256:512], slab[:, 512:768]
    g3, be3 = slab[:, 768:1280], slab[:, 1280:1792]
    g4, be4 = slab[:, 1792:2816], slab[:, 2816:3840]
    db1, db2, db3 = slab[:, 3840:4352], slab[:, 4352:4608], slab[:, 4608:4609]

    def mm(h, w):
        return jnp.dot(h.astype(jnp.bfloat16), w, preferred_element_type=jnp.float32)

    def lrelu(h):
        return jnp.where(h >= 0, h, LEAK * h)

    def bn(h, g, b):                                # classic two-pass variant
        m = h.mean(0, keepdims=True)
        v = ((h - m) ** 2).mean(0, keepdims=True)
        return (h - m) / jnp.sqrt(v + BN_EPS) * g + b

    B = z_pad.shape[0]
    h = lrelu(mm(z_pad, gp["w1"]) + gb1)
    h = lrelu(bn(mm(h, gp["w2"]), g2, be2))
    h = lrelu(bn(mm(h, gp["w3"]), g3, be3))
    h = lrelu(bn(mm(h, gp["w4"]), g4, be4))
    gen = jnp.tanh(mm(h, gp["w5"]) + gb5)

    d_in = jnp.concatenate([gen, x_pad], axis=0)
    h = lrelu(mm(d_in, dp["w1"]) + db1)
    h = lrelu(mm(h, dp["w2"]) + db2)
    logits = jnp.sum(h * dp["w3"].astype(jnp.float32), axis=-1, keepdims=True) + db3
    d = jax.nn.sigmoid(logits)
    return gen[:, :INPUT_SHAPE], d[:B], d[B:]


# ----------------------------- main -----------------------------------------

if __name__ == "__main__":
    key = jax.random.PRNGKey(0)
    k_params, k_input, k_noise = jax.random.split(key, 3)

    params = init_params(k_params)
    x = jax.random.normal(k_input, (BATCH, INPUT_SHAPE), dtype=jnp.float32)

    gen_data, fake_cls, real_cls = gan_forward(x, params, k_noise)
    jax.block_until_ready((gen_data, fake_cls, real_cls))

    # Pure-JAX reference of the same math (same bf16 MXU operands, f32 accum).
    z = jax.random.normal(k_noise, (BATCH, LATENT_DIM), dtype=jnp.float32)
    z_pad = jnp.pad(z, ((0, 0), (0, LATENT_PAD - LATENT_DIM)))
    x_pad = jnp.pad(x, ((0, 0), (0, FEAT_PAD - INPUT_SHAPE)))
    gen_ref, fake_ref, real_ref = _ref_forward(z_pad, x_pad, params)

    assert gen_data.shape == (BATCH, INPUT_SHAPE)
    assert fake_cls.shape == (BATCH, 1) and real_cls.shape == (BATCH, 1)
    assert jnp.allclose(gen_data, gen_ref, atol=1e-3, rtol=1e-3), \
        float(jnp.max(jnp.abs(gen_data - gen_ref)))
    assert jnp.allclose(fake_cls, fake_ref, atol=1e-3, rtol=1e-3), \
        float(jnp.max(jnp.abs(fake_cls - fake_ref)))
    assert jnp.allclose(real_cls, real_ref, atol=1e-3, rtol=1e-3), \
        float(jnp.max(jnp.abs(real_cls - real_ref)))

    print("KERNEL_OK")
</pallas_src>

<mosaic_0001>
module attributes {stable_mosaic.version = 11 : i64} {
  func.func @gan_kernel(%arg0: memref<8x128xf32, #tpu.memory_space<vmem>>, %arg1: memref<8x128xf32, #tpu.memory_space<vmem>>, %arg2: memref<128x128xbf16, #tpu.memory_space<vmem>>, %arg3: memref<128x256xbf16, #tpu.memory_space<vmem>>, %arg4: memref<256x512xbf16, #tpu.memory_space<vmem>>, %arg5: memref<512x1024xbf16, #tpu.memory_space<any>>, %arg6: memref<1024x128xbf16, #tpu.memory_space<any>>, %arg7: memref<128x512xbf16, #tpu.memory_space<any>>, %arg8: memref<512x256xbf16, #tpu.memory_space<any>>, %arg9: memref<1x256xbf16, #tpu.memory_space<vmem>>, %arg10: memref<1x4736xf32, #tpu.memory_space<vmem>>, %arg11: memref<24x128xf32, #tpu.memory_space<vmem>>, %arg12: memref<512x1024xbf16, #tpu.memory_space<vmem>>, %arg13: memref<1024x128xbf16, #tpu.memory_space<vmem>>, %arg14: memref<128x512xbf16, #tpu.memory_space<vmem>>, %arg15: memref<512x256xbf16, #tpu.memory_space<vmem>>, %arg16: memref<4x!tpu.dma_semaphore, #tpu.memory_space<semaphore_mem>>) attributes {dimension_semantics = [], scalar_prefetch = 0 : i64, scratch_operands = 5 : i64, tpu.core_type = #tpu.core_type<tc>} {
    %c0_i32 = arith.constant 0 : i32
    %0 = tpu.memref_slice %arg16[%c0_i32] : memref<4x!tpu.dma_semaphore, #tpu.memory_space<semaphore_mem>> -> memref<1x!tpu.dma_semaphore, #tpu.memory_space<semaphore_mem>>
    %1 = tpu.memref_squeeze %0 : memref<1x!tpu.dma_semaphore, #tpu.memory_space<semaphore_mem>> -> memref<!tpu.dma_semaphore, #tpu.memory_space<semaphore_mem>>
    tpu.enqueue_dma source(%arg5 : memref<512x1024xbf16, #tpu.memory_space<any>>) target(%arg12 : memref<512x1024xbf16, #tpu.memory_space<vmem>>) target_semaphore(%1 : memref<!tpu.dma_semaphore, #tpu.memory_space<semaphore_mem>>)
    %c1_i32 = arith.constant 1 : i32
    %2 = tpu.memref_slice %arg16[%c1_i32] : memref<4x!tpu.dma_semaphore, #tpu.memory_space<semaphore_mem>> -> memref<1x!tpu.dma_semaphore, #tpu.memory_space<semaphore_mem>>
    %3 = tpu.memref_squeeze %2 : memref<1x!tpu.dma_semaphore, #tpu.memory_space<semaphore_mem>> -> memref<!tpu.dma_semaphore, #tpu.memory_space<semaphore_mem>>
    tpu.enqueue_dma source(%arg6 : memref<1024x128xbf16, #tpu.memory_space<any>>) target(%arg13 : memref<1024x128xbf16, #tpu.memory_space<vmem>>) target_semaphore(%3 : memref<!tpu.dma_semaphore, #tpu.memory_space<semaphore_mem>>)
    %c2_i32 = arith.constant 2 : i32
    %4 = tpu.memref_slice %arg16[%c2_i32] : memref<4x!tpu.dma_semaphore, #tpu.memory_space<semaphore_mem>> -> memref<1x!tpu.dma_semaphore, #tpu.memory_space<semaphore_mem>>
    %5 = tpu.memref_squeeze %4 : memref<1x!tpu.dma_semaphore, #tpu.memory_space<semaphore_mem>> -> memref<!tpu.dma_semaphore, #tpu.memory_space<semaphore_mem>>
    tpu.enqueue_dma source(%arg7 : memref<128x512xbf16, #tpu.memory_space<any>>) target(%arg14 : memref<128x512xbf16, #tpu.memory_space<vmem>>) target_semaphore(%5 : memref<!tpu.dma_semaphore, #tpu.memory_space<semaphore_mem>>)
    %c3_i32 = arith.constant 3 : i32
    %6 = tpu.memref_slice %arg16[%c3_i32] : memref<4x!tpu.dma_semaphore, #tpu.memory_space<semaphore_mem>> -> memref<1x!tpu.dma_semaphore, #tpu.memory_space<semaphore_mem>>
    %7 = tpu.memref_squeeze %6 : memref<1x!tpu.dma_semaphore, #tpu.memory_space<semaphore_mem>> -> memref<!tpu.dma_semaphore, #tpu.memory_space<semaphore_mem>>
    tpu.enqueue_dma source(%arg8 : memref<512x256xbf16, #tpu.memory_space<any>>) target(%arg15 : memref<512x256xbf16, #tpu.memory_space<vmem>>) target_semaphore(%7 : memref<!tpu.dma_semaphore, #tpu.memory_space<semaphore_mem>>)
    %c0 = arith.constant 0 : index
    %c0_0 = arith.constant 0 : index
    %8 = vector.load %arg10[%c0, %c0_0] : memref<1x4736xf32, #tpu.memory_space<vmem>>, vector<1x128xf32>
    %c0_1 = arith.constant 0 : index
    %c128 = arith.constant 128 : index
    %9 = vector.load %arg10[%c0_1, %c128] : memref<1x4736xf32, #tpu.memory_space<vmem>>, vector<1x128xf32>
    %c0_2 = arith.constant 0 : index
    %c256 = arith.constant 256 : index
    %10 = vector.load %arg10[%c0_2, %c256] : memref<1x4736xf32, #tpu.memory_space<vmem>>, vector<1x256xf32>
    %c0_3 = arith.constant 0 : index
    %c512 = arith.constant 512 : index
    %11 = vector.load %arg10[%c0_3, %c512] : memref<1x4736xf32, #tpu.memory_space<vmem>>, vector<1x256xf32>
    %c0_4 = arith.constant 0 : index
    %c768 = arith.constant 768 : index
    %12 = vector.load %arg10[%c0_4, %c768] : memref<1x4736xf32, #tpu.memory_space<vmem>>, vector<1x512xf32>
    %c0_5 = arith.constant 0 : index
    %c1280 = arith.constant 1280 : index
    %13 = vector.load %arg10[%c0_5, %c1280] : memref<1x4736xf32, #tpu.memory_space<vmem>>, vector<1x512xf32>
    %c0_6 = arith.constant 0 : index
    %c1792 = arith.constant 1792 : index
    %14 = vector.load %arg10[%c0_6, %c1792] : memref<1x4736xf32, #tpu.memory_space<vmem>>, vector<1x1024xf32>
    %c0_7 = arith.constant 0 : index
    %c2816 = arith.constant 2816 : index
    %15 = vector.load %arg10[%c0_7, %c2816] : memref<1x4736xf32, #tpu.memory_space<vmem>>, vector<1x1024xf32>
    %c0_8 = arith.constant 0 : index
    %c3840 = arith.constant 3840 : index
    %16 = vector.load %arg10[%c0_8, %c3840] : memref<1x4736xf32, #tpu.memory_space<vmem>>, vector<1x512xf32>
    %c0_9 = arith.constant 0 : index
    %c4352 = arith.constant 4352 : index
    %17 = vector.load %arg10[%c0_9, %c4352] : memref<1x4736xf32, #tpu.memory_space<vmem>>, vector<1x256xf32>
    %c0_10 = arith.constant 0 : index
    %c4608 = arith.constant 4608 : index
    %18 = vector.load %arg10[%c0_10, %c4608] : memref<1x4736xf32, #tpu.memory_space<vmem>>, vector<1x128xf32>
    %c0_11 = arith.constant 0 : index
    %c0_12 = arith.constant 0 : index
    %19 = vector.load %arg0[%c0_11, %c0_12] : memref<8x128xf32, #tpu.memory_space<vmem>>, vector<8x128xf32>
    %c0_13 = arith.constant 0 : index
    %c0_14 = arith.constant 0 : index
    %20 = vector.load %arg2[%c0_13, %c0_14] : memref<128x128xbf16, #tpu.memory_space<vmem>>, vector<128x128xbf16>
    %21 = arith.truncf %19 : vector<8x128xf32> to vector<8x128xbf16>
    %cst = arith.constant dense<0.000000e+00> : vector<8x128xf32>
    %22 = tpu.matmul %21, %20, %cst {dimension_numbers = #tpu.dot_dimension_numbers<[1], [0], [0], [1], [0, 0, 1, 1], [], []>} : vector<8x128xbf16>, vector<128x128xbf16>, vector<8x128xf32> -> vector<8x128xf32>
    %23 = vector.broadcast %8 : vector<1x128xf32> to vector<8x128xf32>
    %24 = arith.addf %22, %23 : vector<8x128xf32>
    %cst_15 = arith.constant 2.000000e-01 : f32
    %25 = vector.broadcast %cst_15 : f32 to vector<8x128xf32>
    %26 = arith.mulf %25, %24 : vector<8x128xf32>
    %27 = arith.maximumf %24, %26 : vector<8x128xf32>
    %c0_16 = arith.constant 0 : index
    %c0_17 = arith.constant 0 : index
    %28 = vector.load %arg3[%c0_16, %c0_17] : memref<128x256xbf16, #tpu.memory_space<vmem>>, vector<128x256xbf16>
    %29 = arith.truncf %27 : vector<8x128xf32> to vector<8x128xbf16>
    %cst_18 = arith.constant dense<0.000000e+00> : vector<8x256xf32>
    %30 = tpu.matmul %29, %28, %cst_18 {dimension_numbers = #tpu.dot_dimension_numbers<[1], [0], [0], [1], [0, 0, 1, 1], [], []>} : vector<8x128xbf16>, vector<128x256xbf16>, vector<8x256xf32> -> vector<8x256xf32>
    %cst_19 = arith.constant dense<0.000000e+00> : vector<256xf32>
    %31 = vector.multi_reduction <add>, %30, %cst_19 [0] : vector<8x256xf32> to vector<256xf32>
    %32 = vector.shape_cast %31 : vector<256xf32> to vector<1x256xf32>
    %cst_20 = arith.constant 8.000000e+00 : f32
    %33 = vector.broadcast %cst_20 : f32 to vector<1x256xf32>
    %34 = arith.divf %32, %33 : vector<1x256xf32>
    %35 = arith.mulf %30, %30 : vector<8x256xf32>
    %cst_21 = arith.constant dense<0.000000e+00> : vector<256xf32>
    %36 = vector.multi_reduction <add>, %35, %cst_21 [0] : vector<8x256xf32> to vector<256xf32>
    %37 = vector.shape_cast %36 : vector<256xf32> to vector<1x256xf32>
    %cst_22 = arith.constant 8.000000e+00 : f32
    %38 = vector.broadcast %cst_22 : f32 to vector<1x256xf32>
    %39 = arith.divf %37, %38 : vector<1x256xf32>
    %40 = arith.mulf %34, %34 : vector<1x256xf32>
    %41 = arith.subf %39, %40 : vector<1x256xf32>
    %cst_23 = arith.constant 8.000000e-01 : f32
    %42 = vector.broadcast %cst_23 : f32 to vector<1x256xf32>
    %43 = arith.addf %41, %42 : vector<1x256xf32>
    %44 = math.rsqrt %43 : vector<1x256xf32>
    %45 = arith.mulf %10, %44 : vector<1x256xf32>
    %46 = arith.mulf %34, %45 : vector<1x256xf32>
    %47 = arith.subf %11, %46 : vector<1x256xf32>
    %48 = vector.broadcast %45 : vector<1x256xf32> to vector<8x256xf32>
    %49 = arith.mulf %30, %48 : vector<8x256xf32>
    %50 = vector.broadcast %47 : vector<1x256xf32> to vector<8x256xf32>
    %51 = arith.addf %49, %50 : vector<8x256xf32>
    %cst_24 = arith.constant 2.000000e-01 : f32
    %52 = vector.broadcast %cst_24 : f32 to vector<8x256xf32>
    %53 = arith.mulf %52, %51 : vector<8x256xf32>
    %54 = arith.maximumf %51, %53 : vector<8x256xf32>
    %c0_25 = arith.constant 0 : index
    %c0_26 = arith.constant 0 : index
    %55 = vector.load %arg4[%c0_25, %c0_26] : memref<256x512xbf16, #tpu.memory_space<vmem>>, vector<256x512xbf16>
    %56 = arith.truncf %54 : vector<8x256xf32> to vector<8x256xbf16>
    %cst_27 = arith.constant dense<0.000000e+00> : vector<8x512xf32>
    %57 = tpu.matmul %56, %55, %cst_27 {dimension_numbers = #tpu.dot_dimension_numbers<[1], [0], [0], [1], [0, 0, 1, 1], [], []>} : vector<8x256xbf16>, vector<256x512xbf16>, vector<8x512xf32> -> vector<8x512xf32>
    %cst_28 = arith.constant dense<0.000000e+00> : vector<512xf32>
    %58 = vector.multi_reduction <add>, %57, %cst_28 [0] : vector<8x512xf32> to vector<512xf32>
    %59 = vector.shape_cast %58 : vector<512xf32> to vector<1x512xf32>
    %cst_29 = arith.constant 8.000000e+00 : f32
    %60 = vector.broadcast %cst_29 : f32 to vector<1x512xf32>
    %61 = arith.divf %59, %60 : vector<1x512xf32>
    %62 = arith.mulf %57, %57 : vector<8x512xf32>
    %cst_30 = arith.constant dense<0.000000e+00> : vector<512xf32>
    %63 = vector.multi_reduction <add>, %62, %cst_30 [0] : vector<8x512xf32> to vector<512xf32>
    %64 = vector.shape_cast %63 : vector<512xf32> to vector<1x512xf32>
    %cst_31 = arith.constant 8.000000e+00 : f32
    %65 = vector.broadcast %cst_31 : f32 to vector<1x512xf32>
    %66 = arith.divf %64, %65 : vector<1x512xf32>
    %67 = arith.mulf %61, %61 : vector<1x512xf32>
    %68 = arith.subf %66, %67 : vector<1x512xf32>
    %cst_32 = arith.constant 8.000000e-01 : f32
    %69 = vector.broadcast %cst_32 : f32 to vector<1x512xf32>
    %70 = arith.addf %68, %69 : vector<1x512xf32>
    %71 = math.rsqrt %70 : vector<1x512xf32>
    %72 = arith.mulf %12, %71 : vector<1x512xf32>
    %73 = arith.mulf %61, %72 : vector<1x512xf32>
    %74 = arith.subf %13, %73 : vector<1x512xf32>
    %75 = vector.broadcast %72 : vector<1x512xf32> to vector<8x512xf32>
    %76 = arith.mulf %57, %75 : vector<8x512xf32>
    %77 = vector.broadcast %74 : vector<1x512xf32> to vector<8x512xf32>
    %78 = arith.addf %76, %77 : vector<8x512xf32>
    %cst_33 = arith.constant 2.000000e-01 : f32
    %79 = vector.broadcast %cst_33 : f32 to vector<8x512xf32>
    %80 = arith.mulf %79, %78 : vector<8x512xf32>
    %81 = arith.maximumf %78, %80 : vector<8x512xf32>
    %c0_i32_34 = arith.constant 0 : i32
    %82 = tpu.memref_slice %arg16[%c0_i32_34] : memref<4x!tpu.dma_semaphore, #tpu.memory_space<semaphore_mem>> -> memref<1x!tpu.dma_semaphore, #tpu.memory_space<semaphore_mem>>
    %83 = tpu.memref_squeeze %82 : memref<1x!tpu.dma_semaphore, #tpu.memory_space<semaphore_mem>> -> memref<!tpu.dma_semaphore, #tpu.memory_space<semaphore_mem>>
    tpu.wait_dma2 semaphore(%83 : memref<!tpu.dma_semaphore, #tpu.memory_space<semaphore_mem>>) src(%arg5 : memref<512x1024xbf16, #tpu.memory_space<any>>) dst(%arg12 : memref<512x1024xbf16, #tpu.memory_space<vmem>>)
    %c0_35 = arith.constant 0 : index
    %c0_36 = arith.constant 0 : index
    %84 = vector.load %arg12[%c0_35, %c0_36] : memref<512x1024xbf16, #tpu.memory_space<vmem>>, vector<512x1024xbf16>
    %85 = arith.truncf %81 : vector<8x512xf32> to vector<8x512xbf16>
    %cst_37 = arith.constant dense<0.000000e+00> : vector<8x1024xf32>
    %86 = tpu.matmul %85, %84, %cst_37 {dimension_numbers = #tpu.dot_dimension_numbers<[1], [0], [0], [1], [0, 0, 1, 1], [], []>} : vector<8x512xbf16>, vector<512x1024xbf16>, vector<8x1024xf32> -> vector<8x1024xf32>
    %cst_38 = arith.constant dense<0.000000e+00> : vector<1024xf32>
    %87 = vector.multi_reduction <add>, %86, %cst_38 [0] : vector<8x1024xf32> to vector<1024xf32>
    %88 = vector.shape_cast %87 : vector<1024xf32> to vector<1x1024xf32>
    %cst_39 = arith.constant 8.000000e+00 : f32
    %89 = vector.broadcast %cst_39 : f32 to vector<1x1024xf32>
    %90 = arith.divf %88, %89 : vector<1x1024xf32>
    %91 = arith.mulf %86, %86 : vector<8x1024xf32>
    %cst_40 = arith.constant dense<0.000000e+00> : vector<1024xf32>
    %92 = vector.multi_reduction <add>, %91, %cst_40 [0] : vector<8x1024xf32> to vector<1024xf32>
    %93 = vector.shape_cast %92 : vector<1024xf32> to vector<1x1024xf32>
    %cst_41 = arith.constant 8.000000e+00 : f32
    %94 = vector.broadcast %cst_41 : f32 to vector<1x1024xf32>
    %95 = arith.divf %93, %94 : vector<1x1024xf32>
    %96 = arith.mulf %90, %90 : vector<1x1024xf32>
    %97 = arith.subf %95, %96 : vector<1x1024xf32>
    %cst_42 = arith.constant 8.000000e-01 : f32
    %98 = vector.broadcast %cst_42 : f32 to vector<1x1024xf32>
    %99 = arith.addf %97, %98 : vector<1x1024xf32>
    %100 = math.rsqrt %99 : vector<1x1024xf32>
    %101 = arith.mulf %14, %100 : vector<1x1024xf32>
    %102 = arith.mulf %90, %101 : vector<1x1024xf32>
    %103 = arith.subf %15, %102 : vector<1x1024xf32>
    %104 = vector.broadcast %101 : vector<1x1024xf32> to vector<8x1024xf32>
    %105 = arith.mulf %86, %104 : vector<8x1024xf32>
    %106 = vector.broadcast %103 : vector<1x1024xf32> to vector<8x1024xf32>
    %107 = arith.addf %105, %106 : vector<8x1024xf32>
    %cst_43 = arith.constant 2.000000e-01 : f32
    %108 = vector.broadcast %cst_43 : f32 to vector<8x1024xf32>
    %109 = arith.mulf %108, %107 : vector<8x1024xf32>
    %110 = arith.maximumf %107, %109 : vector<8x1024xf32>
    %c1_i32_44 = arith.constant 1 : i32
    %111 = tpu.memref_slice %arg16[%c1_i32_44] : memref<4x!tpu.dma_semaphore, #tpu.memory_space<semaphore_mem>> -> memref<1x!tpu.dma_semaphore, #tpu.memory_space<semaphore_mem>>
    %112 = tpu.memref_squeeze %111 : memref<1x!tpu.dma_semaphore, #tpu.memory_space<semaphore_mem>> -> memref<!tpu.dma_semaphore, #tpu.memory_space<semaphore_mem>>
    tpu.wait_dma2 semaphore(%112 : memref<!tpu.dma_semaphore, #tpu.memory_space<semaphore_mem>>) src(%arg6 : memref<1024x128xbf16, #tpu.memory_space<any>>) dst(%arg13 : memref<1024x128xbf16, #tpu.memory_space<vmem>>)
    %c0_45 = arith.constant 0 : index
    %c0_46 = arith.constant 0 : index
    %113 = vector.load %arg13[%c0_45, %c0_46] : memref<1024x128xbf16, #tpu.memory_space<vmem>>, vector<1024x128xbf16>
    %114 = arith.truncf %110 : vector<8x1024xf32> to vector<8x1024xbf16>
    %cst_47 = arith.constant dense<0.000000e+00> : vector<8x128xf32>
    %115 = tpu.matmul %114, %113, %cst_47 {dimension_numbers = #tpu.dot_dimension_numbers<[1], [0], [0], [1], [0, 0, 1, 1], [], []>} : vector<8x1024xbf16>, vector<1024x128xbf16>, vector<8x128xf32> -> vector<8x128xf32>
    %116 = vector.broadcast %9 : vector<1x128xf32> to vector<8x128xf32>
    %117 = arith.addf %115, %116 : vector<8x128xf32>
    %118 = math.tanh %117 : vector<8x128xf32>
    %c0_48 = arith.constant 0 : index
    %c0_49 = arith.constant 0 : index
    %119 = vector.load %arg1[%c0_48, %c0_49] : memref<8x128xf32, #tpu.memory_space<vmem>>, vector<8x128xf32>
    %120 = tpu.concatenate %118, %119 in 0 : vector<8x128xf32>, vector<8x128xf32> -> vector<16x128xf32>
    %c2_i32_50 = arith.constant 2 : i32
    %121 = tpu.memref_slice %arg16[%c2_i32_50] : memref<4x!tpu.dma_semaphore, #tpu.memory_space<semaphore_mem>> -> memref<1x!tpu.dma_semaphore, #tpu.memory_space<semaphore_mem>>
    %122 = tpu.memref_squeeze %121 : memref<1x!tpu.dma_semaphore, #tpu.memory_space<semaphore_mem>> -> memref<!tpu.dma_semaphore, #tpu.memory_space<semaphore_mem>>
    tpu.wait_dma2 semaphore(%122 : memref<!tpu.dma_semaphore, #tpu.memory_space<semaphore_mem>>) src(%arg7 : memref<128x512xbf16, #tpu.memory_space<any>>) dst(%arg14 : memref<128x512xbf16, #tpu.memory_space<vmem>>)
    %c0_51 = arith.constant 0 : index
    %c0_52 = arith.constant 0 : index
    %123 = vector.load %arg14[%c0_51, %c0_52] : memref<128x512xbf16, #tpu.memory_space<vmem>>, vector<128x512xbf16>
    %124 = arith.truncf %120 : vector<16x128xf32> to vector<16x128xbf16>
    %cst_53 = arith.constant dense<0.000000e+00> : vector<16x512xf32>
    %125 = tpu.matmul %124, %123, %cst_53 {dimension_numbers = #tpu.dot_dimension_numbers<[1], [0], [0], [1], [0, 0, 1, 1], [], []>} : vector<16x128xbf16>, vector<128x512xbf16>, vector<16x512xf32> -> vector<16x512xf32>
    %126 = vector.broadcast %16 : vector<1x512xf32> to vector<16x512xf32>
    %127 = arith.addf %125, %126 : vector<16x512xf32>
    %cst_54 = arith.constant 2.000000e-01 : f32
    %128 = vector.broadcast %cst_54 : f32 to vector<16x512xf32>
    %129 = arith.mulf %128, %127 : vector<16x512xf32>
    %130 = arith.maximumf %127, %129 : vector<16x512xf32>
    %c3_i32_55 = arith.constant 3 : i32
    %131 = tpu.memref_slice %arg16[%c3_i32_55] : memref<4x!tpu.dma_semaphore, #tpu.memory_space<semaphore_mem>> -> memref<1x!tpu.dma_semaphore, #tpu.memory_space<semaphore_mem>>
    %132 = tpu.memref_squeeze %131 : memref<1x!tpu.dma_semaphore, #tpu.memory_space<semaphore_mem>> -> memref<!tpu.dma_semaphore, #tpu.memory_space<semaphore_mem>>
    tpu.wait_dma2 semaphore(%132 : memref<!tpu.dma_semaphore, #tpu.memory_space<semaphore_mem>>) src(%arg8 : memref<512x256xbf16, #tpu.memory_space<any>>) dst(%arg15 : memref<512x256xbf16, #tpu.memory_space<vmem>>)
    %c0_56 = arith.constant 0 : index
    %c0_57 = arith.constant 0 : index
    %133 = vector.load %arg15[%c0_56, %c0_57] : memref<512x256xbf16, #tpu.memory_space<vmem>>, vector<512x256xbf16>
    %134 = arith.truncf %130 : vector<16x512xf32> to vector<16x512xbf16>
    %cst_58 = arith.constant dense<0.000000e+00> : vector<16x256xf32>
    %135 = tpu.matmul %134, %133, %cst_58 {dimension_numbers = #tpu.dot_dimension_numbers<[1], [0], [0], [1], [0, 0, 1, 1], [], []>} : vector<16x512xbf16>, vector<512x256xbf16>, vector<16x256xf32> -> vector<16x256xf32>
    %136 = vector.broadcast %17 : vector<1x256xf32> to vector<16x256xf32>
    %137 = arith.addf %135, %136 : vector<16x256xf32>
    %cst_59 = arith.constant 2.000000e-01 : f32
    %138 = vector.broadcast %cst_59 : f32 to vector<16x256xf32>
    %139 = arith.mulf %138, %137 : vector<16x256xf32>
    %140 = arith.maximumf %137, %139 : vector<16x256xf32>
    %c0_60 = arith.constant 0 : index
    %c0_61 = arith.constant 0 : index
    %141 = vector.load %arg9[%c0_60, %c0_61] : memref<1x256xbf16, #tpu.memory_space<vmem>>, vector<1x256xbf16>
    %142 = arith.extf %141 : vector<1x256xbf16> to vector<1x256xf32>
    %143 = vector.broadcast %142 : vector<1x256xf32> to vector<16x256xf32>
    %144 = arith.mulf %140, %143 : vector<16x256xf32>
    %cst_62 = arith.constant dense<0.000000e+00> : vector<16xf32>
    %145 = vector.multi_reduction <add>, %144, %cst_62 [1] : vector<16x256xf32> to vector<16xf32>
    %146 = vector.shape_cast %145 : vector<16xf32> to vector<16x1xf32>
    %147 = vector.shape_cast %146 : vector<16x1xf32> to vector<16x1xf32>
    %148 = vector.broadcast %147 : vector<16x1xf32> to vector<16x128xf32>
    %149 = vector.broadcast %18 : vector<1x128xf32> to vector<16x128xf32>
    %150 = arith.addf %148, %149 : vector<16x128xf32>
    %151 = arith.negf %150 : vector<16x128xf32>
    %152 = math.exp %151 : vector<16x128xf32>
    %cst_63 = arith.constant 1.000000e+00 : f32
    %153 = vector.broadcast %cst_63 : f32 to vector<16x128xf32>
    %154 = arith.addf %153, %152 : vector<16x128xf32>
    %155 = arith.divf %153, %154 : vector<16x128xf32>
    %c0_64 = arith.constant 0 : index
    %c0_65 = arith.constant 0 : index
    %156 = vector.load %arg11[%c0_64, %c0_65] : memref<24x128xf32, #tpu.memory_space<vmem>>, vector<8x128xf32>
    tpu.vector_store %arg11[%c0_64, %c0_65], %118 {strides = array<i32>} : memref<24x128xf32, #tpu.memory_space<vmem>>, vector<8x128xf32>,
    %c8 = arith.constant 8 : index
    %c0_66 = arith.constant 0 : index
    %157 = vector.load %arg11[%c8, %c0_66] : memref<24x128xf32, #tpu.memory_space<vmem>>, vector<16x128xf32>
    tpu.vector_store %arg11[%c8, %c0_66], %155 {strides = array<i32>} : memref<24x128xf32, #tpu.memory_space<vmem>>, vector<16x128xf32>,
    return
  }
}

</mosaic_0001>

<bundles_post_ra>
// kernel: gan_forward.1
= control target key start
LH: loop header
LB: loop body
LE: loop exit
PB: predicated region body
PF: predicated region fallthrough
CT: control target
= control target key end

     0   :  { %16 = vsyncpa [#allocation8], 0  ;;  %s3970_s0 = inlined_call_operand.vmem [shape: f32[8,128], index: 0, kind: input, shape index: {}]   ;;  %s3971_s1 = inlined_call_operand.vmem [shape: f32[8,128], index: 1, kind: input, shape index: {}]   ;;  %s3972_s2 = inlined_call_operand.vmem [shape: bf16[128,128], index: 2, kind: input, shape index: {}]   ;;  %s3973_s3 = inlined_call_operand.hbm [shape: bf16[128,256], index: 3, kind: input, shape index: {}]   ;;  %s3974_s4 = inlined_call_operand.hbm [shape: bf16[256,512], index: 4, kind: input, shape index: {}]   ;;  %s3975_s5 = inlined_call_operand.hbm [shape: bf16[512,1024], index: 5, kind: input, shape index: {}]   ;;  %s3976_s6 = inlined_call_operand.hbm [shape: bf16[1024,128], index: 6, kind: input, shape index: {}]   ;;  %s3977_s7 = inlined_call_operand.hbm [shape: bf16[128,512], index: 7, kind: input, shape index: {}]   ;;  %s3978_s8 = inlined_call_operand.hbm [shape: bf16[512,256], index: 8, kind: input, shape index: {}]   ;;  %s3979_s9 = inlined_call_operand.vmem [shape: bf16[1,256], index: 9, kind: input, shape index: {}]   ;;  %s3980_s10 = inlined_call_operand.vmem [shape: f32[1,4736], index: 10, kind: input, shape index: {}]   ;;  %s3981_s11 = inlined_call_operand.vmem [shape: f32[24,128], index: 11, kind: output, shape index: {}]  }
   0x1   :  { %17 = vsyncpa [#allocation10], 0  ;;  %s3378_s17 = smov [#allocation7]   ;;  %s3300_s21 = scalar_lea.hbm %s3973_s3, 2048 }
   0x2   :  { %s29_s18 = sshll.u32 %s3378_s17, 4  ;;  %p3301_p0 = scmp.ne.s32.totalorder %s3973_s3, %s3300_s21  ;;  %s30_s18 = int_to_ptr.vmem [resolvable:$true] %s29_s18 }
   0x3   :  { %p3304_p1 = scmp.lt.u32.totalorder %s3300_s21, %s3973_s3 }
   0x5   :  { %p3306_p2 = pnand %p3304_p1, %p3301_p0 }
   0x7   :  { %3309 = shalt.err (!%p3306_p2)
}
   0x8   :  { %s3310_s26 = scalar_lea.vmem %s30_s18, 2048  ;;  %p3315_p4 = scmp.lt.s32.totalorder %s30_s18, %s30_s18 }
   0x9   :  { %p3311_p3 = scmp.ne.s32.totalorder %s30_s18, %s3310_s26  ;;  %p3316_p5 = scmp.lt.s32.totalorder %s3310_s26, %s3310_s26 }
   0xb   :  { %p3317_p6 = por %p3316_p5, %p3315_p4 }
   0xd   :  { %p3318_p7 = pnand %p3317_p6, %p3311_p3 }
   0xf   :  { %3321 = shalt.err (!%p3318_p7)
}
  0x10   :  { %s3379_s27 = smov 128   ;;  %s3380_s28 = smov 8  }
  0x11   :  { %35 = dma.hbm_to_vmem [thread:$0]  %s3973_s3, 2048, %s30_s18, [#allocation8], %s3379_s27, %s3379_s27, %s3380_s28  }
  0x12   :  { %s3381_s12 = smov [#allocation9]   ;;  %s3322_s16 = scalar_lea.hbm %s3974_s4, 8192 }
  0x13   :  { %s41_s13 = sshll.u32 %s3381_s12, 4  ;;  %p3323_p8 = scmp.ne.s32.totalorder %s3974_s4, %s3322_s16  ;;  %s42_s13 = int_to_ptr.vmem [resolvable:$true] %s41_s13 }
  0x14   :  { %p3326_p9 = scmp.lt.u32.totalorder %s3322_s16, %s3974_s4 }
  0x16   :  { %p3328_p10 = pnand %p3326_p9, %p3323_p8 }
  0x18   :  { %3331 = shalt.err (!%p3328_p10)
}
  0x19   :  { %s3332_s22 = scalar_lea.vmem %s42_s13, 8192  ;;  %p3337_p12 = scmp.lt.s32.totalorder %s42_s13, %s42_s13 }
  0x1a   :  { %p3333_p11 = scmp.ne.s32.totalorder %s42_s13, %s3332_s22  ;;  %p3338_p13 = scmp.lt.s32.totalorder %s3332_s22, %s3332_s22 }
  0x1c   :  { %p3339_p0 = por %p3338_p13, %p3337_p12 }
  0x1e   :  { %p3340_p1 = pnand %p3339_p0, %p3333_p11 }
  0x20   :  { %3343 = shalt.err (!%p3340_p1)
}
  0x21   :  { %s3382_s3 = smov 256   ;;  %s3383_s18 = smov 16  }
  0x22   :  { %47 = dma.hbm_to_vmem [thread:$0]  %s3974_s4, 8192, %s42_s13, [#allocation10], %s3382_s3, %s3382_s3, %s3383_s18  }
  0x23   :  { %3366 = dma.done.wait [#allocation8], 2048  }
  0x24   :  { %3367 = vsyncadd [#allocation8], 4294965248 }
  0x25   :  { %3368 = dma.done.wait [#allocation10], 8192  }
  0x26   :  { %3369 = vsyncadd [#allocation10], 4294959104  ;;  %s63_s25 = sld [smem:[#allocation0]]   ;;  %s3384_s26 = smov 1024   ;;  %v3385_v0 = vmov 0.0   ;;  %vm3386_vm0 = vmmov 0  }
  0x27   :  { %75 = sst [smem:[#allocation12]] %s3384_s26  ;;  %3065 = vmatprep.subr.bf16.mxu0 %v3385_v0  ;;  %3081 = vmatprep.mubr.msk.bf16.mxu0 %vm3386_vm0, %v3385_v0  ;;  %s3387_s29 = smov 64  }
  0x28   :  { %77 = sst [smem:[#allocation12 + $0x1]] %s3384_s26  ;;  %s3388_s4 = smov 2  }
  0x29   :  { %79 = sst [smem:[#allocation12 + $0x2]] %s3380_s28  ;;  %s3389_s30 = smov [#allocation2]  }
  0x2a   :  { %81 = sst [smem:[#allocation12 + $0x3]] %s3387_s29  ;;  %s71_s12 = sshll.u32 %s3389_s30, 4  ;;  %s72_s12 = int_to_ptr.vmem [resolvable:$true] %s71_s12 }
  0x2b   :  { %83 = sst [smem:[#allocation12 + $0x4]] %s3379_s27  ;;  %s3390_s14 = smov 512  }
  0x2c   :  { %85 = sst [smem:[#allocation12 + $0x5]] %s3388_s4  ;;  %s2865_s13 = sshll.u32 %s63_s25, 26 }
  0x2d   :  { %87 = sst [smem:[#allocation12 + $0x6]] %s3390_s14  ;;  %s3498_s15 = sadd.s32 134217728, %s2865_s13 }
  0x2e   :  { %89 = sst [smem:[#allocation12 + $0x7]] %s3387_s29  ;;  %s3391_s16 = smov 4  }
  0x2f   :  { %91 = sst [smem:[#allocation12 + $0x8]] %s3391_s16  ;;  %s3392_s28 = smov [#allocation6]  }
  0x30   :  { %s3393_s17 = smov [#allocation11]   ;;  %s3394_s21 = smov [#allocation3]  }
  0x31   :  { %93 = dma.general %s3975_s5, 32768, %s72_s12, %s3392_s28, %s3393_s17, [#allocation12], %s3498_s15, 0  }
  0x32   :  { %122 = sst [smem:[#allocation18]] %s3390_s14  ;;  %s102_s22 = sshll.u32 %s3394_s21, 4  ;;  %s103_s22 = int_to_ptr.vmem [resolvable:$true] %s102_s22 }
  0x33   :  { %124 = sst [smem:[#allocation18 + $0x1]] %s3390_s14  ;;  %s3395_s18 = smov [#allocation4]  }
  0x34   :  { %126 = sst [smem:[#allocation18 + $0x2]] %s3391_s16  ;;  %s118_s23 = sshll.u32 %s3395_s18, 4  ;;  %s119_s23 = int_to_ptr.vmem [resolvable:$true] %s118_s23 }
  0x35   :  { %128 = sst [smem:[#allocation18 + $0x3]] %s3387_s29  ;;  %s3344_s25 = scalar_lea.hbm %s3976_s6, 8192 }
  0x36   :  { %130 = sst [smem:[#allocation18 + $0x4]] %s3379_s27  ;;  %p3345_p2 = scmp.ne.s32.totalorder %s3976_s6, %s3344_s25 }
  0x37   :  { %132 = sst [smem:[#allocation18 + $0x5]] %s3388_s4  ;;  %p3348_p3 = scmp.lt.u32.totalorder %s3344_s25, %s3976_s6 }
  0x38   :  { %134 = sst [smem:[#allocation18 + $0x6]] %s3382_s3 }
  0x39   :  { %136 = sst [smem:[#allocation18 + $0x7]] %s3387_s29  ;;  %p3350_p4 = pnand %p3348_p3, %p3345_p2 }
  0x3a   :  { %138 = sst [smem:[#allocation18 + $0x8]] %s3391_s16 }
  0x3b   :  { %3353 = shalt.err (!%p3350_p4)  }
  0x3c   :  { %s3354_s14 = scalar_lea.vmem %s103_s22, 8192  ;;  %p3359_p6 = scmp.lt.s32.totalorder %s103_s22, %s103_s22 }
  0x3d   :  { %p3355_p5 = scmp.ne.s32.totalorder %s103_s22, %s3354_s14  ;;  %p3360_p7 = scmp.lt.s32.totalorder %s3354_s14, %s3354_s14 }
  0x3f   :  { %p3361_p8 = por %p3360_p7, %p3359_p6 }
  0x41   :  { %p3362_p9 = pnand %p3361_p8, %p3355_p5 }
  0x43   :  { %3365 = shalt.err (!%p3362_p9)  }
  0x44   :  { %105 = dma.hbm_to_vmem [thread:$0]  %s3976_s6, 8192, %s103_s22, [#allocation6 + $0x1]  ;;  %v3401_v33 = vmov 0  }
  0x45   :  { %s3396_s19 = smov [#allocation6 + $0x2]   ;;  %s3397_s20 = smov [#allocation17]   ;;  %430 = vmatprep.mubr.bf16.mxu1 %v3401_v33 }
  0x46   :  { %140 = dma.general %s3977_s7, 4096, %s119_s23, %s3396_s19, %s3397_s20, [#allocation18], %s3498_s15, 0  }
  0x47   :  { %157 = sst [smem:[#allocation20]] %s3382_s3  ;;  %s3398_s5 = smov [#allocation5]  }
  0x48   :  { %159 = sst [smem:[#allocation20 + $0x1]] %s3382_s3  ;;  %s153_s24 = sshll.u32 %s3398_s5, 4  ;;  %s154_s24 = int_to_ptr.vmem [resolvable:$true] %s153_s24 }
  0x49   :  { %161 = sst [smem:[#allocation20 + $0x2]] %s3388_s4  ;;  %s3399_s6 = smov [#allocation6 + $0x3]  }
  0x4a   :  { %163 = sst [smem:[#allocation20 + $0x3]] %s3387_s29  ;;  %s3400_s7 = smov [#allocation19]  }
  0x4b   :  { %165 = sst [smem:[#allocation20 + $0x4]] %s3379_s27 }
  0x4c   :  { %167 = sst [smem:[#allocation20 + $0x5]] %s3388_s4 }
  0x4d   :  { %169 = sst [smem:[#allocation20 + $0x6]] %s3379_s27 }
  0x4e   :  { %171 = sst [smem:[#allocation20 + $0x7]] %s3387_s29 }
  0x4f   :  { %173 = sst [smem:[#allocation20 + $0x8]] %s3391_s16 }
  0x50   :  { %175 = dma.general %s3978_s8, 8192, %s154_s24, %s3399_s6, %s3400_s7, [#allocation20], %s3498_s15, 0  }
  0x51   :  { %v3545_v1 = vld [vmem:[%s3980_s10 + $0x1] ss:$0 sm:$0xff]  ;;  %v3550_v2 = vld [vmem:[%s3980_s10 + $0xe] sm:$0xff]  ;;  %v3555_v3 = vld [vmem:[%s3980_s10 + $0x16] sm:$0xff] }
  0x52   :  { %v3560_v4 = vld [vmem:[%s3980_s10 + $0x1e] sm:$0xf]  ;;  %v3565_v5 = vld [vmem:[%s3980_s10 + $0x22] sm:$0x3]  ;;  %v3570_v6 = vld [vmem:[%s3980_s10 + $0x24] ss:$0 sm:$0xff] }
  0x53   :  { %v3134_v7 = vld [vmem:[%s3972_s2] sm:$0xff]   ;;  %v3135_v8 = vld [vmem:[%s3972_s2 + $0x8] sm:$0xff]   ;;  %v3136_v9 = vld [vmem:[%s3972_s2 + $0x10] sm:$0xff]  }
  0x54   :  { %3066 = vmatpush3.bf16.msra.mxu0 %v3134_v7  ;;  %v3142_v10 = vld [vmem:[#allocation7 + $0x4] ss:$8 sps:$4 sm:$0xff]   ;;  %v3144_v11 = vld [vmem:[#allocation7] ss:$8 sps:$4 sm:$0xff]   ;;  %v3137_v12 = vld [vmem:[%s3972_s2 + $0x18] sm:$0xff]  }
  0x55   :  { %3067 = vmatprep.subr.bf16.mxu0 %v3385_v0  ;;  %v3145_v13 = vld [vmem:[#allocation7 + $0x14] ss:$8 sps:$4 sm:$0xff]   ;;  %398 = vmatprep.subr.bf16.mxu1 %v3142_v10  ;;  %v3147_v14 = vld [vmem:[#allocation7 + $0x10] ss:$8 sps:$4 sm:$0xff]   ;;  %v3148_v15 = vld [vmem:[#allocation7 + $0x24] ss:$8 sps:$4 sm:$0xff]  }
  0x56   :  { %399 = vmatpush1.bf16.msra.mxu1 %v3144_v11  ;;  %v3138_v16 = vld [vmem:[%s3972_s2 + $0x20] sm:$0xff]   ;;  %v3139_v17 = vld [vmem:[%s3972_s2 + $0x28] sm:$0xff]   ;;  %v3151_v19 = vld [vmem:[#allocation7 + $0x34] ss:$8 sps:$4 sm:$0xff]  }
  0x57   :  { %400 = vmatprep.subr.bf16.mxu1 %v3145_v13  ;;  %v3150_v18 = vld [vmem:[#allocation7 + $0x20] ss:$8 sps:$4 sm:$0xff]   ;;  %v3153_v20 = vld [vmem:[#allocation7 + $0x30] ss:$8 sps:$4 sm:$0xff]   ;;  %v3154_v21 = vld [vmem:[#allocation7 + $0x44] ss:$8 sps:$4 sm:$0xff]  }
  0x58   :  { %3068 = vmatpush3.bf16.msra.mxu0 %v3135_v8  ;;  %v3140_v22 = vld [vmem:[%s3972_s2 + $0x30] sm:$0xff]   ;;  %v3156_v23 = vld [vmem:[#allocation7 + $0x40] ss:$8 sps:$4 sm:$0xff]   ;;  %v3141_v25 = vld [vmem:[%s3972_s2 + $0x38] sm:$0xff]  }
  0x59   :  { %3069 = vmatprep.subr.bf16.mxu0 %v3385_v0  ;;  %v3157_v24 = vld [vmem:[#allocation7 + $0x54] ss:$8 sps:$4 sm:$0xff]   ;;  %v187_v26 = vld [vmem:[%s3970_s0] sm:$0xff]  ;;  %v3159_v27 = vld [vmem:[#allocation7 + $0x50] ss:$8 sps:$4 sm:$0xff]  }
  0x5a   :  { %401 = vmatpush1.bf16.msra.mxu1 %v3147_v14  ;;  %v204_v28 = vpack.c.bf16 %v187_v26, %v187_v26  ;;  %v3160_v29 = vld [vmem:[#allocation7 + $0x64] ss:$8 sps:$4 sm:$0xff]   ;;  %v3162_v30 = vld [vmem:[#allocation7 + $0x60] ss:$8 sps:$4 sm:$0xff]   ;;  %v3163_v31 = vld [vmem:[#allocation7 + $0x74] ss:$8 sps:$4 sm:$0xff]  }
  0x5b   :  { %402 = vmatprep.subr.bf16.mxu1 %v3148_v15  ;;  %v3165_v32 = vld [vmem:[#allocation7 + $0x70] ss:$8 sps:$4 sm:$0xff]   ;;  %v3168_v34 = vld [vmem:[#allocation9 + $0x4] ss:$16 sps:$4 sm:$0xff]   ;;  %v2871_v35 = vld [vmem:[%s3980_s10] ss:$0 sm:$0xff] }
  0x5c   :  { %3070 = vmatpush3.bf16.msra.mxu0 %v3136_v9  ;;  %v3166_v43 = vld [vmem:[#allocation9] ss:$16 sps:$4 sm:$0xff]   ;;  %v3171_v45 = vld [vmem:[#allocation9 + $0x24] ss:$16 sps:$4 sm:$0xff]  }
  0x5d   :  { %3071 = vmatprep.subr.bf16.mxu0 %v3385_v0  ;;  %v3169_v46 = vld [vmem:[#allocation9 + $0x20] ss:$16 sps:$4 sm:$0xff]   ;;  %v3174_v47 = vld [vmem:[#allocation9 + $0x44] ss:$16 sps:$4 sm:$0xff]  }
  0x5e   :  { %403 = vmatpush1.bf16.msra.mxu1 %v3150_v18  ;;  %v3172_v48 = vld [vmem:[#allocation9 + $0x40] ss:$16 sps:$4 sm:$0xff]   ;;  %v3177_v49 = vld [vmem:[#allocation9 + $0x64] ss:$16 sps:$4 sm:$0xff]  }
  0x5f   :  { %404 = vmatprep.subr.bf16.mxu1 %v3151_v19  ;;  %v3175_v50 = vld [vmem:[#allocation9 + $0x60] ss:$16 sps:$4 sm:$0xff]   ;;  %v3180_v51 = vld [vmem:[#allocation9 + $0x84] ss:$16 sps:$4 sm:$0xff]  }
  0x60   :  { %3072 = vmatpush3.bf16.msra.mxu0 %v3137_v12  ;;  %v3178_v52 = vld [vmem:[#allocation9 + $0x80] ss:$16 sps:$4 sm:$0xff]   ;;  %v3183_v53 = vld [vmem:[#allocation9 + $0xa4] ss:$16 sps:$4 sm:$0xff]  }
  0x61   :  { %3073 = vmatprep.subr.bf16.mxu0 %v3385_v0  ;;  %v3181_v54 = vld [vmem:[#allocation9 + $0xa0] ss:$16 sps:$4 sm:$0xff]   ;;  %v3186_v55 = vld [vmem:[#allocation9 + $0xc4] ss:$16 sps:$4 sm:$0xff]  }
  0x62   :  { %405 = vmatpush1.bf16.msra.mxu1 %v3153_v20  ;;  %v3184_v56 = vld [vmem:[#allocation9 + $0xc0] ss:$16 sps:$4 sm:$0xff]   ;;  %v3189_v57 = vld [vmem:[#allocation9 + $0xe4] ss:$16 sps:$4 sm:$0xff]  }
  0x63   :  { %406 = vmatprep.subr.bf16.mxu1 %v3154_v21  ;;  %v3187_v58 = vld [vmem:[#allocation9 + $0xe0] ss:$16 sps:$4 sm:$0xff]   ;;  %v3192_v59 = vld [vmem:[#allocation9 + $0x104] ss:$16 sps:$4 sm:$0xff]  }
  0x64   :  { %3074 = vmatpush3.bf16.msra.mxu0 %v3138_v16  ;;  %v3190_v60 = vld [vmem:[#allocation9 + $0x100] ss:$16 sps:$4 sm:$0xff]   ;;  %v3195_v61 = vld [vmem:[#allocation9 + $0x124] ss:$16 sps:$4 sm:$0xff]  }
  0x65   :  { %3075 = vmatprep.subr.bf16.mxu0 %v3385_v0  ;;  %v3193_v62 = vld [vmem:[#allocation9 + $0x120] ss:$16 sps:$4 sm:$0xff]   ;;  %v3198_v63 = vld [vmem:[#allocation9 + $0x144] ss:$16 sps:$4 sm:$0xff]  }
  0x66   :  { %407 = vmatpush1.bf16.msra.mxu1 %v3156_v23  ;;  %v3201_v7 = vld [vmem:[#allocation9 + $0x164] ss:$16 sps:$4 sm:$0xff]   ;;  %v3199_v8 = vld [vmem:[#allocation9 + $0x160] ss:$16 sps:$4 sm:$0xff]  }
  0x67   :  { %408 = vmatprep.subr.bf16.mxu1 %v3157_v24  ;;  %v3204_v9 = vld [vmem:[#allocation9 + $0x184] ss:$16 sps:$4 sm:$0xff]   ;;  %v3202_v10 = vld [vmem:[#allocation9 + $0x180] ss:$16 sps:$4 sm:$0xff]  }
  0x68   :  { %3076 = vmatpush3.bf16.msra.mxu0 %v3139_v17  ;;  %v3207_v11 = vld [vmem:[#allocation9 + $0x1a4] ss:$16 sps:$4 sm:$0xff]   ;;  %v3205_v12 = vld [vmem:[#allocation9 + $0x1a0] ss:$16 sps:$4 sm:$0xff]   ;;  %v3216_v17 = vld [vmem:[#allocation9 + $0xc] ss:$16 sps:$4 sm:$0xff]  }
  0x69   :  { %3077 = vmatprep.subr.bf16.mxu0 %v3385_v0  ;;  %v3210_v13 = vld [vmem:[#allocation9 + $0x1c4] ss:$16 sps:$4 sm:$0xff]   ;;  %v3208_v14 = vld [vmem:[#allocation9 + $0x1c0] ss:$16 sps:$4 sm:$0xff]  }
  0x6a   :  { %409 = vmatpush1.bf16.msra.mxu1 %v3159_v27  ;;  %v3213_v15 = vld [vmem:[#allocation9 + $0x1e4] ss:$16 sps:$4 sm:$0xff]   ;;  %v3211_v16 = vld [vmem:[#allocation9 + $0x1e0] ss:$16 sps:$4 sm:$0xff]  }
  0x6b   :  { %410 = vmatprep.subr.bf16.mxu1 %v3160_v29 }
  0x6c   :  { %3078 = vmatpush3.bf16.msra.mxu0 %v3140_v22 }
  0x6d   :  { %3079 = vmatprep.subr.bf16.mxu0 %v3385_v0  ;;  %v3196_v0 = vld [vmem:[#allocation9 + $0x140] ss:$16 sps:$4 sm:$0xff]  }
  0x6e   :  { %411 = vmatpush1.bf16.msra.mxu1 %v3162_v30 }
  0x6f   :  { %412 = vmatprep.subr.bf16.mxu1 %v3163_v31 }
  0x70   :  { %3080 = vmatpush3.bf16.msra.mxu0 %v3141_v25 }
  0x72   :  { %413 = vmatpush1.bf16.msra.mxu1 %v3165_v32 }
  0x73   :  { %3082 = vmatmul.mubr.bf16.vlgmr.msra.gmra.mrb[0].mxu0 %v204_v28  ;;  %934 = vmatprep.subr.bf16.mxu1 %v3168_v34 }
 0x146   :  { %v293_v36 = vpop.f32.mrb[0].mxu0 }
 0x147   :  { %v294_v37 = vadd.f32 %v2871_v35, %v293_v36  ;;  %v3083_v38 = vpop.f32.mrb[1].mxu0 }
 0x148   :  { %v296_v39 = vpop.f32.mrb[2].mxu0 }
 0x149   :  { %v299_v40 = vmul.f32 0.2, %v294_v37  ;;  %v3084_v41 = vpop.f32.mrb[3].mxu0 }
 0x14b   :  { %v300_v42 = vmax.f32 %v294_v37, %v299_v40 }
 0x14d   :  { %v317_v44 = vpack.c.bf16 %v300_v42, %v300_v42 }
 0x14f   :  { %431 = vmatmul.mubr.bf16.vlgmr.msra.gmra.mrb[0].mxu1 %v317_v44 }
 0x150   :  { %935 = vmatpush1.bf16.msra.mxu1 %v3166_v43 }
 0x151   :  { %936 = vmatprep.subr.bf16.mxu1 %v3171_v45 }
 0x154   :  { %937 = vmatpush1.bf16.msra.mxu1 %v3169_v46 }
 0x155   :  { %938 = vmatprep.subr.bf16.mxu1 %v3174_v47 }
 0x158   :  { %939 = vmatpush1.bf16.msra.mxu1 %v3172_v48 }
 0x159   :  { %940 = vmatprep.subr.bf16.mxu1 %v3177_v49 }
 0x15c   :  { %941 = vmatpush1.bf16.msra.mxu1 %v3175_v50 }
 0x15d   :  { %942 = vmatprep.subr.bf16.mxu1 %v3180_v51 }
 0x160   :  { %943 = vmatpush1.bf16.msra.mxu1 %v3178_v52 }
 0x161   :  { %944 = vmatprep.subr.bf16.mxu1 %v3183_v53 }
 0x164   :  { %945 = vmatpush1.bf16.msra.mxu1 %v3181_v54 }
 0x165   :  { %946 = vmatprep.subr.bf16.mxu1 %v3186_v55 }
 0x168   :  { %947 = vmatpush1.bf16.msra.mxu1 %v3184_v56 }
 0x169   :  { %948 = vmatprep.subr.bf16.mxu1 %v3189_v57 }
 0x16c   :  { %949 = vmatpush1.bf16.msra.mxu1 %v3187_v58 }
 0x16d   :  { %950 = vmatprep.subr.bf16.mxu1 %v3192_v59  ;;  %v3402_v59 = vmov 1966171168  }
 0x170   :  { %951 = vmatpush1.bf16.msra.mxu1 %v3190_v60  ;;  %v482_v60 = vunpack.c.l.s4 %v3402_v59  ;;  %v3249_v59 = vld [vmem:[#allocation9 + $0x16c] ss:$16 sps:$4 sm:$0xff]  }
 0x171   :  { %952 = vmatprep.subr.bf16.mxu1 %v3195_v61  ;;  %v484_v61 = vlaneseq }
 0x174   :  { %953 = vmatpush1.bf16.msra.mxu1 %v3193_v62  ;;  %v483_v62 = vunpack.c.0.s8 %v482_v60  ;;  %v3247_v60 = vld [vmem:[#allocation9 + $0x168] ss:$16 sps:$4 sm:$0xff]  }
 0x175   :  { %954 = vmatprep.subr.bf16.mxu1 %v3198_v63  ;;  %v3610_v63 = vshrl.u32 %v484_v61, 7  ;;  %v3252_v61 = vld [vmem:[#allocation9 + $0x18c] ss:$16 sps:$4 sm:$0xff]  }
 0x178   :  { %955 = vmatpush1.bf16.msra.mxu1 %v3196_v0 }
 0x179   :  { %956 = vmatprep.subr.bf16.mxu1 %v3201_v7  ;;  %v3613_v7 = vsub.s32 %v483_v62, %v3610_v63  ;;  %v3250_v62 = vld [vmem:[#allocation9 + $0x188] ss:$16 sps:$4 sm:$0xff]  }
 0x17c   :  { %957 = vmatpush1.bf16.msra.mxu1 %v3199_v8 }
 0x17d   :  { %958 = vmatprep.subr.bf16.mxu1 %v3204_v9 }
 0x180   :  { %959 = vmatpush1.bf16.msra.mxu1 %v3202_v10 }
 0x181   :  { %960 = vmatprep.subr.bf16.mxu1 %v3207_v11  ;;  %v178_v11 = vld [vmem:[%s3980_s10 + $0x2] sm:$0x3] }
 0x184   :  { %961 = vmatpush1.bf16.msra.mxu1 %v3205_v12 }
 0x185   :  { %962 = vmatprep.subr.bf16.mxu1 %v3210_v13  ;;  %v3621_v13 = vsub.s32 0, %v3610_v63 }
 0x188   :  { %963 = vmatpush1.bf16.msra.mxu1 %v3208_v14  ;;  %v3624_v14 = vsub.s32 1, %v3610_v63 }
 0x189   :  { %964 = vmatprep.subr.bf16.mxu1 %v3213_v15 }
 0x18c   :  { %965 = vmatpush1.bf16.msra.mxu1 %v3211_v16 }
 0x18d   :  { %975 = vmatprep.subr.bf16.mxu1 %v3216_v17 }
 0x222   :  { %v432_v18 = vpop.f32.mrb[0].mxu1 }
 0x223   :  { %v439_v19 = vrot.slane %v432_v18, 4  ;;  %v454_v20 = vmul.f32 %v432_v18, %v432_v18  ;;  %v434_v21 = vpop.f32.mrb[1].mxu1 }
 0x224   :  { %v445_v22 = vrot.slane %v434_v21, 4  ;;  %v455_v23 = vmul.f32 %v434_v21, %v434_v21  ;;  %v436_v24 = vpop.f32.mrb[2].mxu1 }
 0x225   :  { %v440_v25 = vadd.f32 %v439_v19, %v432_v18  ;;  %v456_v26 = vrot.slane %v454_v20, 4  ;;  %v437_v27 = vpop.f32.mrb[3].mxu1 }
 0x226   :  { %v446_v28 = vadd.f32 %v445_v22, %v434_v21  ;;  %v462_v29 = vrot.slane %v455_v23, 4 }
 0x227   :  { %v441_v30 = vrot.slane %v440_v25, 2  ;;  %v457_v31 = vadd.f32 %v456_v26, %v454_v20  ;;  %v179_v26 = vld [vmem:[%s3980_s10 + $0x4] sm:$0x3] }
 0x228   :  { %v447_v32 = vrot.slane %v446_v28, 2  ;;  %v463_v34 = vadd.f32 %v462_v29, %v455_v23 }
 0x229   :  { %v442_v35 = vadd.f32 %v441_v30, %v440_v25  ;;  %v458_v36 = vrot.slane %v457_v31, 2 }
 0x22a   :  { %v448_v37 = vadd.f32 %v447_v32, %v446_v28  ;;  %v464_v38 = vrot.slane %v463_v34, 2 }
 0x22b   :  { %v443_v39 = vrot.slane %v442_v35, 1  ;;  %v459_v40 = vadd.f32 %v458_v36, %v457_v31 }
 0x22c   :  { %v449_v41 = vrot.slane %v448_v37, 1  ;;  %v465_v42 = vadd.f32 %v464_v38, %v463_v34 }
 0x22d   :  { %v444_v43 = vadd.f32 %v443_v39, %v442_v35  ;;  %v460_v44 = vrot.slane %v459_v40, 1  ;;  %v3219_v39 = vld [vmem:[#allocation9 + $0x2c] ss:$16 sps:$4 sm:$0xff]  }
 0x22e   :  { %v450_v45 = vadd.f32 %v449_v41, %v448_v37  ;;  %v466_v46 = vrot.slane %v465_v42, 1  ;;  %v3214_v37 = vld [vmem:[#allocation9 + $0x8] ss:$16 sps:$4 sm:$0xff]   ;;  %v3222_v41 = vld [vmem:[#allocation9 + $0x4c] ss:$16 sps:$4 sm:$0xff]  }
 0x22f   :  { %v452_v47 = vmul.f32 0.125, %v444_v43  ;;  %v461_v48 = vadd.f32 %v460_v44, %v459_v40  ;;  %v3217_v40 = vld [vmem:[#allocation9 + $0x28] ss:$16 sps:$4 sm:$0xff]   ;;  %v3225_v43 = vld [vmem:[#allocation9 + $0x6c] ss:$16 sps:$4 sm:$0xff]  }
 0x230   :  { %v453_v49 = vmul.f32 0.125, %v450_v45  ;;  %v467_v50 = vadd.f32 %v466_v46, %v465_v42  ;;  %v3220_v42 = vld [vmem:[#allocation9 + $0x48] ss:$16 sps:$4 sm:$0xff]   ;;  %v3228_v45 = vld [vmem:[#allocation9 + $0x8c] ss:$16 sps:$4 sm:$0xff]  }
 0x231   :  { %v468_v51 = vmul.f32 0.125, %v461_v48  ;;  %v470_v52 = vmul.f32 %v452_v47, %v452_v47  ;;  %v3223_v44 = vld [vmem:[#allocation9 + $0x68] ss:$16 sps:$4 sm:$0xff]  }
 0x232   :  { %v469_v53 = vmul.f32 0.125, %v467_v50  ;;  %v471_v54 = vmul.f32 %v453_v49, %v453_v49  ;;  %v3226_v46 = vld [vmem:[#allocation9 + $0x88] ss:$16 sps:$4 sm:$0xff]  }
 0x233   :  { %v472_v55 = vsub.f32 %v468_v51, %v470_v52  ;;  %v3229_v48 = vld [vmem:[#allocation9 + $0xa8] ss:$16 sps:$4 sm:$0xff]   ;;  %v3237_v51 = vld [vmem:[#allocation9 + $0xec] ss:$16 sps:$4 sm:$0xff]  }
 0x234   :  { %v473_v56 = vsub.f32 %v469_v53, %v471_v54  ;;  %v3232_v50 = vld [vmem:[#allocation9 + $0xc8] ss:$16 sps:$4 sm:$0xff]   ;;  %v3240_v53 = vld [vmem:[#allocation9 + $0x10c] ss:$16 sps:$4 sm:$0xff]  }
 0x235   :  { %v474_v57 = vadd.f32 0.8, %v472_v55  ;;  %v3235_v52 = vld [vmem:[#allocation9 + $0xe8] ss:$16 sps:$4 sm:$0xff]   ;;  %v3243_v55 = vld [vmem:[#allocation9 + $0x12c] ss:$16 sps:$4 sm:$0xff]  }
 0x236   :  { %v475_v58 = vadd.f32 0.8, %v473_v56  ;;  %v3238_v54 = vld [vmem:[#allocation9 + $0x108] ss:$16 sps:$4 sm:$0xff]  }
 0x237   :  { %3262 = vrsqrt.f32 %v474_v57  ;;  %v3241_v56 = vld [vmem:[#allocation9 + $0x128] ss:$16 sps:$4 sm:$0xff]   ;;  %v3246_v57 = vld [vmem:[#allocation9 + $0x14c] ss:$16 sps:$4 sm:$0xff]  }
 0x238   :  { %3264 = vrsqrt.f32 %v475_v58  ;;  %v3244_v58 = vld [vmem:[#allocation9 + $0x148] ss:$16 sps:$4 sm:$0xff]  }
 0x241   :  { %v3263_v0 = vpop.eup %3262 }
 0x242   :  { %v3265_v8 = vpop.eup %3264 }
 0x243   :  { %v480_v9 = vcombine.low %v3263_v0, %v3265_v8  ;;  %v3255_v0 = vld [vmem:[#allocation9 + $0x1ac] ss:$16 sps:$4 sm:$0xff]   ;;  %v3253_v8 = vld [vmem:[#allocation9 + $0x1a8] ss:$16 sps:$4 sm:$0xff]  }
 0x245   :  { %v487_v10 = vrot.slane %v480_v9, %v3613_v7  ;;  %v3258_v9 = vld [vmem:[#allocation9 + $0x1cc] ss:$16 sps:$4 sm:$0xff]  }
 0x247   :  { %v494_v12 = vrot.slane %v487_v10, %v3613_v7  ;;  %v3256_v10 = vld [vmem:[#allocation9 + $0x1c8] ss:$16 sps:$4 sm:$0xff]  }
 0x249   :  { %v496_v15 = vmul.f32 %v494_v12, %v178_v11  ;;  %v3261_v11 = vld [vmem:[#allocation9 + $0x1ec] ss:$16 sps:$4 sm:$0xff]   ;;  %v3259_v12 = vld [vmem:[#allocation9 + $0x1e8] ss:$16 sps:$4 sm:$0xff]  }
 0x24b   :  { %v501_v16 = vrot.slane %v496_v15, %v3621_v13  ;;  %v505_v17 = vrot.slane %v496_v15, %v3624_v14 }
 0x24d   :  { %v508_v19 = vmul.f32 %v501_v16, %v452_v47  ;;  %v509_v20 = vmul.f32 %v505_v17, %v453_v49  ;;  %v530_v22 = vmul.f32 %v505_v17, %v434_v21  ;;  %v529_v23 = vmul.f32 %v501_v16, %v432_v18  ;;  %v3231_v47 = vld [vmem:[#allocation9 + $0xac] ss:$16 sps:$4 sm:$0xff]  }
 0x24e   :  { %v3234_v49 = vld [vmem:[#allocation9 + $0xcc] ss:$16 sps:$4 sm:$0xff]  }
 0x24f   :  { %v512_v24 = vcombine.low %v508_v19, %v509_v20 }
 0x251   :  { %v519_v25 = vrot.slane %v512_v24, %v3613_v7 }
 0x253   :  { %v526_v27 = vrot.slane %v519_v25, %v3613_v7 }
 0x255   :  { %v528_v28 = vsub.f32 %v179_v26, %v526_v27 }
 0x257   :  { %v539_v29 = vrot.slane %v528_v28, %v3624_v14  ;;  %v535_v30 = vrot.slane %v528_v28, %v3621_v13 }
 0x259   :  { %v543_v31 = vadd.f32 %v539_v29, %v530_v22  ;;  %v542_v32 = vadd.f32 %v535_v30, %v529_v23 }
 0x25b   :  { %v545_v34 = vmul.f32 0.2, %v543_v31  ;;  %v544_v35 = vmul.f32 0.2, %v542_v32 }
 0x25d   :  { %v547_v21 = vmax.f32 %v543_v31, %v545_v34  ;;  %v546_v18 = vmax.f32 %v542_v32, %v544_v35 }
 0x25f   :  { %v613_v36 = vpack.c.bf16 %v547_v21, %v547_v21  ;;  %v3635_v38 = vpack.c.bf16 %v546_v18, %v546_v18 }
 0x261   :  { %966 = vmatprep.mubr.bf16.mxu1 %v613_v36 }
 0x262   :  { %967 = vmatmul.mubr.bf16.vlgmr.msra.gmra.mrb[4].mxu1 %v3635_v38 }
 0x263   :  { %976 = vmatpush1.bf16.msra.mxu1 %v3214_v37  ;;  %1007 = vmatprep.mubr.bf16.mxu1 %v613_v36 }
 0x264   :  { %977 = vmatprep.subr.bf16.mxu1 %v3219_v39 }
 0x267   :  { %978 = vmatpush1.bf16.msra.mxu1 %v3217_v40 }
 0x268   :  { %979 = vmatprep.subr.bf16.mxu1 %v3222_v41 }
 0x26b   :  { %980 = vmatpush1.bf16.msra.mxu1 %v3220_v42 }
 0x26c   :  { %981 = vmatprep.subr.bf16.mxu1 %v3225_v43 }
 0x26f   :  { %982 = vmatpush1.bf16.msra.mxu1 %v3223_v44 }
 0x270   :  { %983 = vmatprep.subr.bf16.mxu1 %v3228_v45 }
 0x273   :  { %984 = vmatpush1.bf16.msra.mxu1 %v3226_v46 }
 0x274   :  { %985 = vmatprep.subr.bf16.mxu1 %v3231_v47 }
 0x277   :  { %986 = vmatpush1.bf16.msra.mxu1 %v3229_v48 }
 0x278   :  { %987 = vmatprep.subr.bf16.mxu1 %v3234_v49 }
 0x27b   :  { %988 = vmatpush1.bf16.msra.mxu1 %v3232_v50 }
 0x27c   :  { %989 = vmatprep.subr.bf16.mxu1 %v3237_v51 }
 0x27f   :  { %990 = vmatpush1.bf16.msra.mxu1 %v3235_v52 }
 0x280   :  { %991 = vmatprep.subr.bf16.mxu1 %v3240_v53 }
 0x283   :  { %992 = vmatpush1.bf16.msra.mxu1 %v3238_v54 }
 0x284   :  { %993 = vmatprep.subr.bf16.mxu1 %v3243_v55 }
 0x287   :  { %994 = vmatpush1.bf16.msra.mxu1 %v3241_v56 }
 0x288   :  { %995 = vmatprep.subr.bf16.mxu1 %v3246_v57 }
 0x28b   :  { %996 = vmatpush1.bf16.msra.mxu1 %v3244_v58 }
 0x28c   :  { %997 = vmatprep.subr.bf16.mxu1 %v3249_v59 }
 0x28f   :  { %998 = vmatpush1.bf16.msra.mxu1 %v3247_v60 }
 0x290   :  { %999 = vmatprep.subr.bf16.mxu1 %v3252_v61 }
 0x293   :  { %1000 = vmatpush1.bf16.msra.mxu1 %v3250_v62 }
 0x294   :  { %1001 = vmatprep.subr.bf16.mxu1 %v3255_v0 }
 0x297   :  { %1002 = vmatpush1.bf16.msra.mxu1 %v3253_v8 }
 0x298   :  { %1003 = vmatprep.subr.bf16.mxu1 %v3258_v9 }
 0x29b   :  { %1004 = vmatpush1.bf16.msra.mxu1 %v3256_v10 }
 0x29c   :  { %1005 = vmatprep.subr.bf16.mxu1 %v3261_v11 }
 0x29f   :  { %1006 = vmatpush1.bf16.msra.mxu1 %v3259_v12 }
 0x2a2   :  { %1008 = vmatmul.mubr.bf16.vlgmr.msra.gmra.mrb[8].mxu1 %v3635_v38 }
 0x335   :  { %v3639_v15 = vpop.f32.mrb[4].mxu1 }
 0x336   :  { %v1016_v16 = vrot.slane %v3639_v15, 4  ;;  %v1044_v17 = vmul.f32 %v3639_v15, %v3639_v15  ;;  %v3644_v19 = vpop.f32.mrb[5].mxu1 }
 0x337   :  { %v1022_v20 = vrot.slane %v3644_v19, 4  ;;  %v1045_v22 = vmul.f32 %v3644_v19, %v3644_v19  ;;  %v972_v23 = vpop.f32.mrb[6].mxu1 }
 0x338   :  { %v1017_v24 = vadd.f32 %v1016_v16, %v3639_v15  ;;  %v1048_v25 = vrot.slane %v1044_v17, 4  ;;  %v973_v26 = vpop.f32.mrb[7].mxu1 }
 0x339   :  { %v1023_v27 = vadd.f32 %v1022_v20, %v3644_v19  ;;  %v1054_v28 = vrot.slane %v1045_v22, 4 }
 0x33a   :  { %v1018_v29 = vrot.slane %v1017_v24, 2  ;;  %v1049_v30 = vadd.f32 %v1048_v25, %v1044_v17 }
 0x33b   :  { %v1024_v31 = vrot.slane %v1023_v27, 2  ;;  %v1055_v32 = vadd.f32 %v1054_v28, %v1045_v22 }
 0x33c   :  { %v1019_v34 = vadd.f32 %v1018_v29, %v1017_v24  ;;  %v1050_v35 = vrot.slane %v1049_v30, 2 }
 0x33d   :  { %v1025_v21 = vadd.f32 %v1024_v31, %v1023_v27  ;;  %v1056_v18 = vrot.slane %v1055_v32, 2 }
 0x33e   :  { %v1020_v36 = vrot.slane %v1019_v34, 1  ;;  %v1051_v37 = vadd.f32 %v1050_v35, %v1049_v30 }
 0x33f   :  { %v1026_v38 = vrot.slane %v1025_v21, 1  ;;  %v1057_v39 = vadd.f32 %v1056_v18, %v1055_v32 }
 0x340   :  { %v1021_v40 = vadd.f32 %v1020_v36, %v1019_v34  ;;  %v1052_v41 = vrot.slane %v1051_v37, 1 }
 0x341   :  { %v1027_v42 = vadd.f32 %v1026_v38, %v1025_v21  ;;  %v1058_v43 = vrot.slane %v1057_v39, 1 }
 0x342   :  { %v3651_v44 = vmul.f32 0.125, %v1021_v40  ;;  %v1053_v45 = vadd.f32 %v1052_v41, %v1051_v37 }
 0x343   :  { %v3653_v46 = vmul.f32 0.125, %v1027_v42  ;;  %v1059_v47 = vadd.f32 %v1058_v43, %v1057_v39 }
 0x344   :  { %v1072_v48 = vmul.f32 0.125, %v1053_v45  ;;  %v1076_v49 = vmul.f32 %v3651_v44, %v3651_v44 }
 0x345   :  { %v1073_v50 = vmul.f32 0.125, %v1059_v47  ;;  %v1077_v51 = vmul.f32 %v3653_v46, %v3653_v46 }
 0x346   :  { %v1080_v52 = vsub.f32 %v1072_v48, %v1076_v49 }
 0x347   :  { %v1081_v53 = vsub.f32 %v1073_v50, %v1077_v51 }
 0x348   :  { %v1084_v54 = vadd.f32 0.8, %v1080_v52 }
 0x349   :  { %v1085_v55 = vadd.f32 0.8, %v1081_v53 }
 0x34a   :  { %3266 = vrsqrt.f32 %v1084_v54 }
 0x34b   :  { %3268 = vrsqrt.f32 %v1085_v55 }
 0x354   :  { %v3267_v56 = vpop.eup %3266 }
 0x355   :  { %v3269_v57 = vpop.eup %3268 }
 0x356   :  { %v1096_v58 = vcombine.low %v3267_v56, %v3269_v57  ;;  %v180_v56 = vld [vmem:[%s3980_s10 + $0x6] sm:$0xf] }
 0x358   :  { %v1104_v53 = vrot.slane %v1096_v58, %v3613_v7 }
 0x375   :  { %v3659_v59 = vpop.f32.mrb[8].mxu1 }
 0x376   :  { %v1028_v60 = vrot.slane %v3659_v59, 4  ;;  %v1046_v61 = vmul.f32 %v3659_v59, %v3659_v59  ;;  %v1011_v62 = vpop.f32.mrb[9].mxu1 }
 0x377   :  { %v1034_v0 = vrot.slane %v1011_v62, 4  ;;  %v1047_v8 = vmul.f32 %v1011_v62, %v1011_v62  ;;  %v1013_v9 = vpop.f32.mrb[10].mxu1 }
 0x378   :  { %v1029_v10 = vadd.f32 %v1028_v60, %v3659_v59  ;;  %v1060_v11 = vrot.slane %v1046_v61, 4  ;;  %v1014_v12 = vpop.f32.mrb[11].mxu1  ;;  %v3672_v60 = vsub.s32 2, %v3610_v63 }
 0x379   :  { %v1035_v16 = vadd.f32 %v1034_v0, %v1011_v62  ;;  %v1066_v17 = vrot.slane %v1047_v8, 4 }
 0x37a   :  { %v1030_v20 = vrot.slane %v1029_v10, 2  ;;  %v1061_v22 = vadd.f32 %v1060_v11, %v1046_v61  ;;  %v3675_v61 = vsub.s32 3, %v3610_v63 }
 0x37b   :  { %v1036_v23 = vrot.slane %v1035_v16, 2  ;;  %v1067_v24 = vadd.f32 %v1066_v17, %v1047_v8 }
 0x37c   :  { %v1031_v25 = vadd.f32 %v1030_v20, %v1029_v10  ;;  %v1062_v26 = vrot.slane %v1061_v22, 2 }
 0x37d   :  { %v1037_v27 = vadd.f32 %v1036_v23, %v1035_v16  ;;  %v1068_v28 = vrot.slane %v1067_v24, 2 }
 0x37e   :  { %v1032_v29 = vrot.slane %v1031_v25, 1  ;;  %v1063_v30 = vadd.f32 %v1062_v26, %v1061_v22 }
 0x37f   :  { %v1038_v31 = vrot.slane %v1037_v27, 1  ;;  %v1069_v32 = vadd.f32 %v1068_v28, %v1067_v24 }
 0x380   :  { %v1033_v34 = vadd.f32 %v1032_v29, %v1031_v25  ;;  %v1064_v35 = vrot.slane %v1063_v30, 1 }
 0x381   :  { %v1039_v21 = vadd.f32 %v1038_v31, %v1037_v27  ;;  %v1070_v18 = vrot.slane %v1069_v32, 1 }
 0x382   :  { %v1042_v36 = vmul.f32 0.125, %v1033_v34  ;;  %v1065_v37 = vadd.f32 %v1064_v35, %v1063_v30 }
 0x383   :  { %v1043_v38 = vmul.f32 0.125, %v1039_v21  ;;  %v1071_v39 = vadd.f32 %v1070_v18, %v1069_v32 }
 0x384   :  { %v1074_v40 = vmul.f32 0.125, %v1065_v37  ;;  %v1078_v41 = vmul.f32 %v1042_v36, %v1042_v36 }
 0x385   :  { %v1075_v42 = vmul.f32 0.125, %v1071_v39  ;;  %v1079_v43 = vmul.f32 %v1043_v38, %v1043_v38 }
 0x386   :  { %v1082_v45 = vsub.f32 %v1074_v40, %v1078_v41 }
 0x387   :  { %v1083_v47 = vsub.f32 %v1075_v42, %v1079_v43 }
 0x388   :  { %v1086_v48 = vadd.f32 0.8, %v1082_v45 }
 0x389   :  { %v1087_v49 = vadd.f32 0.8, %v1083_v47 }
 0x38a   :  { %3270 = vrsqrt.f32 %v1086_v48 }
 0x38b   :  { %3272 = vrsqrt.f32 %v1087_v49 }
 0x394   :  { %v3271_v50 = vpop.eup %3270 }
 0x395   :  { %v3273_v51 = vpop.eup %3272 }
 0x396   :  { %v1097_v52 = vcombine.low %v3271_v50, %v3273_v51 }
 0x398   :  { %v1111_v54 = vrot.slane %v1097_v52, %v3613_v7 }
 0x39a   :  { %v1112_v55 = vcombine.low %v1104_v53, %v1111_v54 }
 0x39c   :  { %v1119_v57 = vrot.slane %v1112_v55, %v3613_v7 }
 0x39e   :  { %v1121_v0 = vmul.f32 %v1119_v57, %v180_v56 }
 0x3a0   :  { %v1126_v8 = vrot.slane %v1121_v0, %v3621_v13  ;;  %v1130_v58 = vrot.slane %v1121_v0, %v3624_v14  ;;  %v1134_v9 = vrot.slane %v1121_v0, %v3672_v60  ;;  %v1138_v10 = vrot.slane %v1121_v0, %v3675_v61 }
 0x3a2   :  { %v1143_v11 = vmul.f32 %v1126_v8, %v3651_v44  ;;  %v1144_v12 = vmul.f32 %v1130_v58, %v3653_v46  ;;  %v1145_v16 = vmul.f32 %v1134_v9, %v1042_v36  ;;  %v1146_v17 = vmul.f32 %v1138_v10, %v1043_v38  ;;  %v181_v44 = vld [vmem:[%s3980_s10 + $0xa] sm:$0xf] }
 0x3a3   :  { %v1177_v20 = vmul.f32 %v1126_v8, %v3639_v15  ;;  %v1178_v22 = vmul.f32 %v1130_v58, %v3644_v19  ;;  %v1179_v23 = vmul.f32 %v1134_v9, %v3659_v59  ;;  %v1180_v24 = vmul.f32 %v1138_v10, %v1011_v62 }
 0x3a4   :  { %v1151_v25 = vcombine.low %v1143_v11, %v1144_v12  ;;  %v1152_v26 = vcombine.low %v1145_v16, %v1146_v17 }
 0x3a6   :  { %v1159_v27 = vrot.slane %v1151_v25, %v3613_v7  ;;  %v1166_v28 = vrot.slane %v1152_v26, %v3613_v7 }
 0x3a8   :  { %v1167_v29 = vcombine.low %v1159_v27, %v1166_v28 }
 0x3aa   :  { %v1174_v46 = vrot.slane %v1167_v29, %v3613_v7 }
 0x3ac   :  { %v1176_v30 = vsub.f32 %v181_v44, %v1174_v46 }
 0x3ae   :  { %v1185_v15 = vrot.slane %v1176_v30, %v3621_v13  ;;  %v1189_v19 = vrot.slane %v1176_v30, %v3624_v14  ;;  %v1193_v59 = vrot.slane %v1176_v30, %v3672_v60  ;;  %v1197_v62 = vrot.slane %v1176_v30, %v3675_v61 }
 0x3b0   :  { %v1202_v31 = vadd.f32 %v1185_v15, %v1177_v20  ;;  %v1203_v32 = vadd.f32 %v1189_v19, %v1178_v22  ;;  %v1204_v34 = vadd.f32 %v1193_v59, %v1179_v23  ;;  %v1205_v35 = vadd.f32 %v1197_v62, %v1180_v24 }
 0x3b2   :  { %v1206_v21 = vmul.f32 0.2, %v1202_v31  ;;  %v1207_v18 = vmul.f32 0.2, %v1203_v32  ;;  %v1208_v36 = vmul.f32 0.2, %v1204_v34 }
 0x3b3   :  { %v1209_v37 = vmul.f32 0.2, %v1205_v35 }
 0x3b4   :  { %v3696_v38 = vmax.f32 %v1202_v31, %v1206_v21  ;;  %v1211_v39 = vmax.f32 %v1203_v32, %v1207_v18  ;;  %v3698_v40 = vmax.f32 %v1204_v34, %v1208_v36 }
 0x3b5   :  { %v3700_v41 = vmax.f32 %v1205_v35, %v1209_v37 }
 0x3b6   :  { %3370 = dma.done.wait [#allocation6], 32768 }
 0x3b7   :  { %3371 = vsyncadd [#allocation6], 4294934528  ;;  %v3702_v42 = vpack.c.bf16 %v1211_v39, %v1211_v39  ;;  %v1219_v43 = vld [vmem:[#allocation2 + $0x8] sm:$0xff]  ;;  %v1221_v45 = vld [vmem:[#allocation2 + $0x18] sm:$0xff] }
 0x3b8   :  { %v1218_v47 = vld [vmem:[#allocation2] sm:$0xff]  ;;  %1478 = vmatprep.subr.bf16.mxu0 %v1219_v43  ;;  %1560 = vmatprep.subr.bf16.mxu1 %v1221_v45  ;;  %v1220_v48 = vld [vmem:[#allocation2 + $0x10] sm:$0xff]  ;;  %v1227_v49 = vld [vmem:[#allocation2 + $0x48] sm:$0xff] }
 0x3b9   :  { %1510 = vmatprep.mubr.bf16.mxu0 %v3702_v42  ;;  %1592 = vmatprep.mubr.bf16.mxu1 %v3702_v42  ;;  %v1229_v50 = vld [vmem:[#allocation2 + $0x58] sm:$0xff]  ;;  %v1226_v51 = vld [vmem:[#allocation2 + $0x40] sm:$0xff]  ;;  %v1228_v52 = vld [vmem:[#allocation2 + $0x50] sm:$0xff] }
 0x3ba   :  { %1479 = vmatpush1.bf16.msra.mxu0 %v1218_v47  ;;  %1561 = vmatpush1.bf16.msra.mxu1 %v1220_v48  ;;  %v1235_v53 = vld [vmem:[#allocation2 + $0x88] sm:$0xff]  ;;  %v1237_v54 = vld [vmem:[#allocation2 + $0x98] sm:$0xff]  ;;  %v1234_v55 = vld [vmem:[#allocation2 + $0x80] sm:$0xff] }
 0x3bb   :  { %1480 = vmatprep.subr.bf16.mxu0 %v1227_v49  ;;  %1562 = vmatprep.subr.bf16.mxu1 %v1229_v50  ;;  %v1236_v56 = vld [vmem:[#allocation2 + $0x90] sm:$0xff]  ;;  %v1243_v57 = vld [vmem:[#allocation2 + $0xc8] sm:$0xff]  ;;  %v1245_v0 = vld [vmem:[#allocation2 + $0xd8] sm:$0xff] }
 0x3bc   :  { %v1242_v8 = vld [vmem:[#allocation2 + $0xc0] sm:$0xff]  ;;  %v1244_v58 = vld [vmem:[#allocation2 + $0xd0] sm:$0xff]  ;;  %v1251_v9 = vld [vmem:[#allocation2 + $0x108] sm:$0xff] }
 0x3bd   :  { %v1253_v10 = vld [vmem:[#allocation2 + $0x118] sm:$0xff]  ;;  %v1250_v11 = vld [vmem:[#allocation2 + $0x100] sm:$0xff]  ;;  %v1252_v12 = vld [vmem:[#allocation2 + $0x110] sm:$0xff] }
 0x3be   :  { %1481 = vmatpush1.bf16.msra.mxu0 %v1226_v51  ;;  %1563 = vmatpush1.bf16.msra.mxu1 %v1228_v52  ;;  %v1259_v16 = vld [vmem:[#allocation2 + $0x148] sm:$0xff]  ;;  %v1261_v17 = vld [vmem:[#allocation2 + $0x158] sm:$0xff]  ;;  %v1258_v20 = vld [vmem:[#allocation2 + $0x140] sm:$0xff] }
 0x3bf   :  { %1482 = vmatprep.subr.bf16.mxu0 %v1235_v53  ;;  %1564 = vmatprep.subr.bf16.mxu1 %v1237_v54  ;;  %v1260_v22 = vld [vmem:[#allocation2 + $0x150] sm:$0xff]  ;;  %v1267_v23 = vld [vmem:[#allocation2 + $0x188] sm:$0xff]  ;;  %v1269_v24 = vld [vmem:[#allocation2 + $0x198] sm:$0xff] }
 0x3c0   :  { %v1266_v25 = vld [vmem:[#allocation2 + $0x180] sm:$0xff]  ;;  %v1268_v26 = vld [vmem:[#allocation2 + $0x190] sm:$0xff]  ;;  %v1275_v27 = vld [vmem:[#allocation2 + $0x1c8] sm:$0xff] }
 0x3c1   :  { %v1277_v28 = vld [vmem:[#allocation2 + $0x1d8] sm:$0xff]  ;;  %v1274_v29 = vld [vmem:[#allocation2 + $0x1c0] sm:$0xff]  ;;  %v1276_v44 = vld [vmem:[#allocation2 + $0x1d0] sm:$0xff] }
 0x3c2   :  { %1483 = vmatpush1.bf16.msra.mxu0 %v1234_v55  ;;  %1565 = vmatpush1.bf16.msra.mxu1 %v1236_v56  ;;  %v1283_v46 = vld [vmem:[#allocation2 + $0x208] sm:$0xff]  ;;  %v1285_v30 = vld [vmem:[#allocation2 + $0x218] sm:$0xff]  ;;  %v1282_v15 = vld [vmem:[#allocation2 + $0x200] sm:$0xff] }
 0x3c3   :  { %1484 = vmatprep.subr.bf16.mxu0 %v1243_v57  ;;  %1566 = vmatprep.subr.bf16.mxu1 %v1245_v0  ;;  %v1284_v19 = vld [vmem:[#allocation2 + $0x210] sm:$0xff]  ;;  %v1291_v59 = vld [vmem:[#allocation2 + $0x248] sm:$0xff]  ;;  %v1293_v62 = vld [vmem:[#allocation2 + $0x258] sm:$0xff] }
 0x3c4   :  { %v1290_v31 = vld [vmem:[#allocation2 + $0x240] sm:$0xff]  ;;  %v1292_v32 = vld [vmem:[#allocation2 + $0x250] sm:$0xff]  ;;  %v1299_v34 = vld [vmem:[#allocation2 + $0x288] sm:$0xff] }
 0x3c5   :  { %v1301_v35 = vld [vmem:[#allocation2 + $0x298] sm:$0xff]  ;;  %v1298_v21 = vld [vmem:[#allocation2 + $0x280] sm:$0xff]  ;;  %v1300_v18 = vld [vmem:[#allocation2 + $0x290] sm:$0xff] }
 0x3c6   :  { %1485 = vmatpush1.bf16.msra.mxu0 %v1242_v8  ;;  %1567 = vmatpush1.bf16.msra.mxu1 %v1244_v58  ;;  %v1307_v36 = vld [vmem:[#allocation2 + $0x2c8] sm:$0xff]  ;;  %v1309_v37 = vld [vmem:[#allocation2 + $0x2d8] sm:$0xff]  ;;  %v1306_v39 = vld [vmem:[#allocation2 + $0x2c0] sm:$0xff] }
 0x3c7   :  { %1486 = vmatprep.subr.bf16.mxu0 %v1251_v9  ;;  %1568 = vmatprep.subr.bf16.mxu1 %v1253_v10  ;;  %v1308_v43 = vld [vmem:[#allocation2 + $0x2d0] sm:$0xff]  ;;  %v1315_v45 = vld [vmem:[#allocation2 + $0x308] sm:$0xff]  ;;  %v1317_v47 = vld [vmem:[#allocation2 + $0x318] sm:$0xff] }
 0x3c8   :  { %v1314_v48 = vld [vmem:[#allocation2 + $0x300] sm:$0xff]  ;;  %v1316_v49 = vld [vmem:[#allocation2 + $0x310] sm:$0xff]  ;;  %v1323_v50 = vld [vmem:[#allocation2 + $0x348] sm:$0xff] }
 0x3c9   :  { %v1325_v51 = vld [vmem:[#allocation2 + $0x358] sm:$0xff]  ;;  %v1322_v52 = vld [vmem:[#allocation2 + $0x340] sm:$0xff]  ;;  %v1324_v53 = vld [vmem:[#allocation2 + $0x350] sm:$0xff] }
 0x3ca   :  { %1487 = vmatpush1.bf16.msra.mxu0 %v1250_v11  ;;  %1569 = vmatpush1.bf16.msra.mxu1 %v1252_v12  ;;  %v1331_v54 = vld [vmem:[#allocation2 + $0x388] sm:$0xff]  ;;  %v1333_v55 = vld [vmem:[#allocation2 + $0x398] sm:$0xff]  ;;  %v1330_v56 = vld [vmem:[#allocation2 + $0x380] sm:$0xff]  ;;  %v3708_v12 = vpack.c.bf16 %v3696_v38, %v3696_v38 }
 0x3cb   :  { %1488 = vmatprep.subr.bf16.mxu0 %v1259_v16  ;;  %1570 = vmatprep.subr.bf16.mxu1 %v1261_v17  ;;  %v1332_v57 = vld [vmem:[#allocation2 + $0x390] sm:$0xff]  ;;  %v1339_v0 = vld [vmem:[#allocation2 + $0x3c8] sm:$0xff]  ;;  %v1341_v8 = vld [vmem:[#allocation2 + $0x3d8] sm:$0xff] }
 0x3cc   :  { %v1338_v58 = vld [vmem:[#allocation2 + $0x3c0] sm:$0xff]  ;;  %v1340_v9 = vld [vmem:[#allocation2 + $0x3d0] sm:$0xff]  ;;  %v1347_v10 = vld [vmem:[#allocation2 + $0x408] sm:$0xff] }
 0x3cd   :  { %v1349_v11 = vld [vmem:[#allocation2 + $0x418] sm:$0xff]  ;;  %v1346_v16 = vld [vmem:[#allocation2 + $0x400] sm:$0xff]  ;;  %v1348_v17 = vld [vmem:[#allocation2 + $0x410] sm:$0xff] }
 0x3ce   :  { %1489 = vmatpush1.bf16.msra.mxu0 %v1258_v20  ;;  %1571 = vmatpush1.bf16.msra.mxu1 %v1260_v22  ;;  %v1355_v20 = vld [vmem:[#allocation2 + $0x448] sm:$0xff]  ;;  %v1357_v22 = vld [vmem:[#allocation2 + $0x458] sm:$0xff]  ;;  %v1354_v38 = vld [vmem:[#allocation2 + $0x440] sm:$0xff] }
 0x3cf   :  { %1490 = vmatprep.subr.bf16.mxu0 %v1267_v23  ;;  %1572 = vmatprep.subr.bf16.mxu1 %v1269_v24  ;;  %v3712_v23 = vpack.c.bf16 %v3700_v41, %v3700_v41  ;;  %v1356_v24 = vld [vmem:[#allocation2 + $0x450] sm:$0xff]  ;;  %v1362_v41 = vld [vmem:[#allocation2 + $0x480] sm:$0xff] }
 0x3d2   :  { %1491 = vmatpush1.bf16.msra.mxu0 %v1266_v25  ;;  %1573 = vmatpush1.bf16.msra.mxu1 %v1268_v26  ;;  %v1363_v25 = vld [vmem:[#allocation2 + $0x488] sm:$0xff]  ;;  %v1365_v26 = vld [vmem:[#allocation2 + $0x498] sm:$0xff] }
 0x3d3   :  { %1492 = vmatprep.subr.bf16.mxu0 %v1275_v27  ;;  %1574 = vmatprep.subr.bf16.mxu1 %v1277_v28  ;;  %v1364_v27 = vld [vmem:[#allocation2 + $0x490] sm:$0xff]  ;;  %v1371_v28 = vld [vmem:[#allocation2 + $0x4c8] sm:$0xff] }
 0x3d6   :  { %1493 = vmatpush1.bf16.msra.mxu0 %v1274_v29  ;;  %1575 = vmatpush1.bf16.msra.mxu1 %v1276_v44  ;;  %v1373_v29 = vld [vmem:[#allocation2 + $0x4d8] sm:$0xff]  ;;  %v1370_v44 = vld [vmem:[#allocation2 + $0x4c0] sm:$0xff] }
 0x3d7   :  { %1494 = vmatprep.subr.bf16.mxu0 %v1283_v46  ;;  %1576 = vmatprep.subr.bf16.mxu1 %v1285_v30  ;;  %v1372_v46 = vld [vmem:[#allocation2 + $0x4d0] sm:$0xff]  ;;  %v1379_v30 = vld [vmem:[#allocation2 + $0x508] sm:$0xff] }
 0x3da   :  { %1495 = vmatpush1.bf16.msra.mxu0 %v1282_v15  ;;  %1577 = vmatpush1.bf16.msra.mxu1 %v1284_v19  ;;  %v1381_v15 = vld [vmem:[#allocation2 + $0x518] sm:$0xff]  ;;  %v1378_v19 = vld [vmem:[#allocation2 + $0x500] sm:$0xff] }
 0x3db   :  { %1496 = vmatprep.subr.bf16.mxu0 %v1291_v59  ;;  %1578 = vmatprep.subr.bf16.mxu1 %v1293_v62  ;;  %v1380_v59 = vld [vmem:[#allocation2 + $0x510] sm:$0xff]  ;;  %v1387_v62 = vld [vmem:[#allocation2 + $0x548] sm:$0xff] }
 0x3de   :  { %1497 = vmatpush1.bf16.msra.mxu0 %v1290_v31  ;;  %1579 = vmatpush1.bf16.msra.mxu1 %v1292_v32  ;;  %v1389_v31 = vld [vmem:[#allocation2 + $0x558] sm:$0xff]  ;;  %v1386_v32 = vld [vmem:[#allocation2 + $0x540] sm:$0xff] }
 0x3df   :  { %1498 = vmatprep.subr.bf16.mxu0 %v1299_v34  ;;  %1580 = vmatprep.subr.bf16.mxu1 %v1301_v35  ;;  %v1388_v34 = vld [vmem:[#allocation2 + $0x550] sm:$0xff]  ;;  %v1395_v35 = vld [vmem:[#allocation2 + $0x588] sm:$0xff] }
 0x3e2   :  { %1499 = vmatpush1.bf16.msra.mxu0 %v1298_v21  ;;  %1581 = vmatpush1.bf16.msra.mxu1 %v1300_v18  ;;  %v1397_v21 = vld [vmem:[#allocation2 + $0x598] sm:$0xff]  ;;  %v1394_v18 = vld [vmem:[#allocation2 + $0x580] sm:$0xff] }
 0x3e3   :  { %1500 = vmatprep.subr.bf16.mxu0 %v1307_v36  ;;  %1582 = vmatprep.subr.bf16.mxu1 %v1309_v37  ;;  %v1396_v36 = vld [vmem:[#allocation2 + $0x590] sm:$0xff]  ;;  %v1403_v37 = vld [vmem:[#allocation2 + $0x5c8] sm:$0xff] }
 0x3e6   :  { %1501 = vmatpush1.bf16.msra.mxu0 %v1306_v39  ;;  %1583 = vmatpush1.bf16.msra.mxu1 %v1308_v43  ;;  %v1405_v39 = vld [vmem:[#allocation2 + $0x5d8] sm:$0xff]  ;;  %v1402_v43 = vld [vmem:[#allocation2 + $0x5c0] sm:$0xff] }
 0x3e7   :  { %1502 = vmatprep.subr.bf16.mxu0 %v1315_v45  ;;  %1584 = vmatprep.subr.bf16.mxu1 %v1317_v47  ;;  %v1404_v45 = vld [vmem:[#allocation2 + $0x5d0] sm:$0xff]  ;;  %v1411_v47 = vld [vmem:[#allocation2 + $0x608] sm:$0xff] }
 0x3ea   :  { %1503 = vmatpush1.bf16.msra.mxu0 %v1314_v48  ;;  %1585 = vmatpush1.bf16.msra.mxu1 %v1316_v49  ;;  %v1413_v48 = vld [vmem:[#allocation2 + $0x618] sm:$0xff]  ;;  %v1410_v49 = vld [vmem:[#allocation2 + $0x600] sm:$0xff] }
 0x3eb   :  { %1504 = vmatprep.subr.bf16.mxu0 %v1323_v50  ;;  %1586 = vmatprep.subr.bf16.mxu1 %v1325_v51  ;;  %v1412_v50 = vld [vmem:[#allocation2 + $0x610] sm:$0xff]  ;;  %v1419_v51 = vld [vmem:[#allocation2 + $0x648] sm:$0xff] }
 0x3ee   :  { %1505 = vmatpush1.bf16.msra.mxu0 %v1322_v52  ;;  %1587 = vmatpush1.bf16.msra.mxu1 %v1324_v53  ;;  %v1421_v52 = vld [vmem:[#allocation2 + $0x658] sm:$0xff]  ;;  %v1418_v53 = vld [vmem:[#allocation2 + $0x640] sm:$0xff] }
 0x3ef   :  { %1506 = vmatprep.subr.bf16.mxu0 %v1331_v54  ;;  %1588 = vmatprep.subr.bf16.mxu1 %v1333_v55  ;;  %v1420_v54 = vld [vmem:[#allocation2 + $0x650] sm:$0xff]  ;;  %v1427_v55 = vld [vmem:[#allocation2 + $0x688] sm:$0xff] }
 0x3f2   :  { %1507 = vmatpush1.bf16.msra.mxu0 %v1330_v56  ;;  %1589 = vmatpush1.bf16.msra.mxu1 %v1332_v57  ;;  %v1429_v56 = vld [vmem:[#allocation2 + $0x698] sm:$0xff]  ;;  %v1426_v57 = vld [vmem:[#allocation2 + $0x680] sm:$0xff] }
 0x3f3   :  { %1508 = vmatprep.subr.bf16.mxu0 %v1339_v0  ;;  %1590 = vmatprep.subr.bf16.mxu1 %v1341_v8  ;;  %v1428_v0 = vld [vmem:[#allocation2 + $0x690] sm:$0xff]  ;;  %v1435_v8 = vld [vmem:[#allocation2 + $0x6c8] sm:$0xff] }
 0x3f6   :  { %1509 = vmatpush1.bf16.msra.mxu0 %v1338_v58  ;;  %1591 = vmatpush1.bf16.msra.mxu1 %v1340_v9  ;;  %v1437_v58 = vld [vmem:[#allocation2 + $0x6d8] sm:$0xff]  ;;  %v1434_v9 = vld [vmem:[#allocation2 + $0x6c0] sm:$0xff] }
 0x3f7   :  { %1519 = vmatprep.subr.bf16.mxu0 %v1347_v10  ;;  %1601 = vmatprep.subr.bf16.mxu1 %v1349_v11  ;;  %v1436_v10 = vld [vmem:[#allocation2 + $0x6d0] sm:$0xff]  ;;  %v1443_v11 = vld [vmem:[#allocation2 + $0x708] sm:$0xff] }
 0x3f9   :  { %1511 = vmatmul.mubr.bf16.vlgmr.msra.gmra.mrb[4].mxu0 %v3708_v12  ;;  %1593 = vmatmul.mubr.bf16.vlgmr.msra.gmra.mrb[12].mxu1 %v3708_v12 }
 0x3fa   :  { %1520 = vmatpush1.bf16.msra.mxu0 %v1346_v16  ;;  %1602 = vmatpush1.bf16.msra.mxu1 %v1348_v17  ;;  %v1445_v16 = vld [vmem:[#allocation2 + $0x718] sm:$0xff]  ;;  %v1442_v17 = vld [vmem:[#allocation2 + $0x700] sm:$0xff] }
 0x3fb   :  { %1521 = vmatprep.subr.bf16.mxu0 %v1355_v20  ;;  %1603 = vmatprep.subr.bf16.mxu1 %v1357_v22  ;;  %v1444_v20 = vld [vmem:[#allocation2 + $0x710] sm:$0xff]  ;;  %v1451_v22 = vld [vmem:[#allocation2 + $0x748] sm:$0xff] }
 0x3fc   :  { %1551 = vmatprep.mubr.bf16.mxu0 %v3712_v23  ;;  %1633 = vmatprep.mubr.bf16.mxu1 %v3712_v23 }
 0x3fe   :  { %1522 = vmatpush1.bf16.msra.mxu0 %v1354_v38  ;;  %1604 = vmatpush1.bf16.msra.mxu1 %v1356_v24  ;;  %v1453_v38 = vld [vmem:[#allocation2 + $0x758] sm:$0xff]  ;;  %v1450_v24 = vld [vmem:[#allocation2 + $0x740] sm:$0xff] }
 0x3ff   :  { %1523 = vmatprep.subr.bf16.mxu0 %v1363_v25  ;;  %1605 = vmatprep.subr.bf16.mxu1 %v1365_v26  ;;  %v1452_v25 = vld [vmem:[#allocation2 + $0x750] sm:$0xff]  ;;  %v1459_v26 = vld [vmem:[#allocation2 + $0x788] sm:$0xff] }
 0x402   :  { %1524 = vmatpush1.bf16.msra.mxu0 %v1362_v41  ;;  %1606 = vmatpush1.bf16.msra.mxu1 %v1364_v27  ;;  %v1461_v41 = vld [vmem:[#allocation2 + $0x798] sm:$0xff]  ;;  %v1458_v27 = vld [vmem:[#allocation2 + $0x780] sm:$0xff] }
 0x403   :  { %1525 = vmatprep.subr.bf16.mxu0 %v1371_v28  ;;  %1607 = vmatprep.subr.bf16.mxu1 %v1373_v29  ;;  %v1460_v28 = vld [vmem:[#allocation2 + $0x790] sm:$0xff]  ;;  %v1467_v29 = vld [vmem:[#allocation2 + $0x7c8] sm:$0xff] }
 0x406   :  { %1526 = vmatpush1.bf16.msra.mxu0 %v1370_v44  ;;  %1608 = vmatpush1.bf16.msra.mxu1 %v1372_v46  ;;  %v1469_v44 = vld [vmem:[#allocation2 + $0x7d8] sm:$0xff]  ;;  %v1466_v46 = vld [vmem:[#allocation2 + $0x7c0] sm:$0xff] }
 0x407   :  { %1527 = vmatprep.subr.bf16.mxu0 %v1379_v30  ;;  %1609 = vmatprep.subr.bf16.mxu1 %v1381_v15  ;;  %v1468_v30 = vld [vmem:[#allocation2 + $0x7d0] sm:$0xff]  ;;  %v1223_v15 = vld [vmem:[#allocation2 + $0x28] sm:$0xff] }
 0x40a   :  { %1528 = vmatpush1.bf16.msra.mxu0 %v1378_v19  ;;  %1610 = vmatpush1.bf16.msra.mxu1 %v1380_v59  ;;  %v1225_v19 = vld [vmem:[#allocation2 + $0x38] sm:$0xff]  ;;  %v3720_v59 = vpack.c.bf16 %v3698_v40, %v3698_v40  ;;  %v1239_v40 = vld [vmem:[#allocation2 + $0xa8] sm:$0xff] }
 0x40b   :  { %1529 = vmatprep.subr.bf16.mxu0 %v1387_v62  ;;  %1611 = vmatprep.subr.bf16.mxu1 %v1389_v31  ;;  %v1222_v62 = vld [vmem:[#allocation2 + $0x20] sm:$0xff]  ;;  %v1224_v31 = vld [vmem:[#allocation2 + $0x30] sm:$0xff] }
 0x40e   :  { %1530 = vmatpush1.bf16.msra.mxu0 %v1386_v32  ;;  %1612 = vmatpush1.bf16.msra.mxu1 %v1388_v34  ;;  %v1231_v32 = vld [vmem:[#allocation2 + $0x68] sm:$0xff]  ;;  %v1233_v34 = vld [vmem:[#allocation2 + $0x78] sm:$0xff] }
 0x40f   :  { %1531 = vmatprep.subr.bf16.mxu0 %v1395_v35  ;;  %1613 = vmatprep.subr.bf16.mxu1 %v1397_v21  ;;  %v1230_v35 = vld [vmem:[#allocation2 + $0x60] sm:$0xff]  ;;  %v1232_v21 = vld [vmem:[#allocation2 + $0x70] sm:$0xff] }
 0x412   :  { %1532 = vmatpush1.bf16.msra.mxu0 %v1394_v18  ;;  %1614 = vmatpush1.bf16.msra.mxu1 %v1396_v36  ;;  %v1241_v18 = vld [vmem:[#allocation2 + $0xb8] sm:$0xff]  ;;  %v1238_v36 = vld [vmem:[#allocation2 + $0xa0] sm:$0xff] }
 0x413   :  { %1533 = vmatprep.subr.bf16.mxu0 %v1403_v37  ;;  %1615 = vmatprep.subr.bf16.mxu1 %v1405_v39  ;;  %v1240_v37 = vld [vmem:[#allocation2 + $0xb0] sm:$0xff]  ;;  %v1247_v39 = vld [vmem:[#allocation2 + $0xe8] sm:$0xff] }
 0x416   :  { %1534 = vmatpush1.bf16.msra.mxu0 %v1402_v43  ;;  %1616 = vmatpush1.bf16.msra.mxu1 %v1404_v45  ;;  %v1249_v43 = vld [vmem:[#allocation2 + $0xf8] sm:$0xff]  ;;  %v1246_v45 = vld [vmem:[#allocation2 + $0xe0] sm:$0xff] }
 0x417   :  { %1535 = vmatprep.subr.bf16.mxu0 %v1411_v47  ;;  %1617 = vmatprep.subr.bf16.mxu1 %v1413_v48  ;;  %v1248_v47 = vld [vmem:[#allocation2 + $0xf0] sm:$0xff]  ;;  %v1255_v48 = vld [vmem:[#allocation2 + $0x128] sm:$0xff] }
 0x41a   :  { %1536 = vmatpush1.bf16.msra.mxu0 %v1410_v49  ;;  %1618 = vmatpush1.bf16.msra.mxu1 %v1412_v50  ;;  %v1257_v49 = vld [vmem:[#allocation2 + $0x138] sm:$0xff]  ;;  %v1256_v50 = vld [vmem:[#allocation2 + $0x130] sm:$0xff] }
 0x41b   :  { %1537 = vmatprep.subr.bf16.mxu0 %v1419_v51  ;;  %1619 = vmatprep.subr.bf16.mxu1 %v1421_v52  ;;  %v1263_v51 = vld [vmem:[#allocation2 + $0x168] sm:$0xff]  ;;  %v1265_v52 = vld [vmem:[#allocation2 + $0x178] sm:$0xff] }
 0x41e   :  { %1538 = vmatpush1.bf16.msra.mxu0 %v1418_v53  ;;  %1620 = vmatpush1.bf16.msra.mxu1 %v1420_v54  ;;  %v1262_v53 = vld [vmem:[#allocation2 + $0x160] sm:$0xff]  ;;  %v1264_v54 = vld [vmem:[#allocation2 + $0x170] sm:$0xff] }
 0x41f   :  { %1539 = vmatprep.subr.bf16.mxu0 %v1427_v55  ;;  %1621 = vmatprep.subr.bf16.mxu1 %v1429_v56  ;;  %v1271_v55 = vld [vmem:[#allocation2 + $0x1a8] sm:$0xff]  ;;  %v1273_v56 = vld [vmem:[#allocation2 + $0x1b8] sm:$0xff] }
 0x422   :  { %1540 = vmatpush1.bf16.msra.mxu0 %v1426_v57  ;;  %1622 = vmatpush1.bf16.msra.mxu1 %v1428_v0  ;;  %v1270_v57 = vld [vmem:[#allocation2 + $0x1a0] sm:$0xff]  ;;  %v1272_v0 = vld [vmem:[#allocation2 + $0x1b0] sm:$0xff] }
 0x423   :  { %1541 = vmatprep.subr.bf16.mxu0 %v1435_v8  ;;  %1623 = vmatprep.subr.bf16.mxu1 %v1437_v58  ;;  %v1279_v8 = vld [vmem:[#allocation2 + $0x1e8] sm:$0xff]  ;;  %v1281_v58 = vld [vmem:[#allocation2 + $0x1f8] sm:$0xff] }
 0x426   :  { %1542 = vmatpush1.bf16.msra.mxu0 %v1434_v9  ;;  %1624 = vmatpush1.bf16.msra.mxu1 %v1436_v10  ;;  %v1278_v9 = vld [vmem:[#allocation2 + $0x1e0] sm:$0xff]  ;;  %v1280_v10 = vld [vmem:[#allocation2 + $0x1f0] sm:$0xff] }
 0x427   :  { %1543 = vmatprep.subr.bf16.mxu0 %v1443_v11  ;;  %1625 = vmatprep.subr.bf16.mxu1 %v1445_v16  ;;  %v1287_v11 = vld [vmem:[#allocation2 + $0x228] sm:$0xff]  ;;  %v1289_v16 = vld [vmem:[#allocation2 + $0x238] sm:$0xff] }
 0x42a   :  { %1544 = vmatpush1.bf16.msra.mxu0 %v1442_v17  ;;  %1626 = vmatpush1.bf16.msra.mxu1 %v1444_v20  ;;  %v1286_v17 = vld [vmem:[#allocation2 + $0x220] sm:$0xff]  ;;  %v1288_v20 = vld [vmem:[#allocation2 + $0x230] sm:$0xff] }
 0x42b   :  { %1545 = vmatprep.subr.bf16.mxu0 %v1451_v22  ;;  %1627 = vmatprep.subr.bf16.mxu1 %v1453_v38  ;;  %v1295_v22 = vld [vmem:[#allocation2 + $0x268] sm:$0xff]  ;;  %v1297_v38 = vld [vmem:[#allocation2 + $0x278] sm:$0xff] }
 0x42e   :  { %1546 = vmatpush1.bf16.msra.mxu0 %v1450_v24  ;;  %1628 = vmatpush1.bf16.msra.mxu1 %v1452_v25  ;;  %v1294_v24 = vld [vmem:[#allocation2 + $0x260] sm:$0xff]  ;;  %v1296_v25 = vld [vmem:[#allocation2 + $0x270] sm:$0xff] }
 0x42f   :  { %1547 = vmatprep.subr.bf16.mxu0 %v1459_v26  ;;  %1629 = vmatprep.subr.bf16.mxu1 %v1461_v41  ;;  %v1303_v26 = vld [vmem:[#allocation2 + $0x2a8] sm:$0xff]  ;;  %v1305_v41 = vld [vmem:[#allocation2 + $0x2b8] sm:$0xff] }
 0x432   :  { %1548 = vmatpush1.bf16.msra.mxu0 %v1458_v27  ;;  %1630 = vmatpush1.bf16.msra.mxu1 %v1460_v28  ;;  %v1302_v27 = vld [vmem:[#allocation2 + $0x2a0] sm:$0xff]  ;;  %v1304_v28 = vld [vmem:[#allocation2 + $0x2b0] sm:$0xff] }
 0x433   :  { %1549 = vmatprep.subr.bf16.mxu0 %v1467_v29  ;;  %1631 = vmatprep.subr.bf16.mxu1 %v1469_v44  ;;  %v1311_v29 = vld [vmem:[#allocation2 + $0x2e8] sm:$0xff]  ;;  %v1313_v44 = vld [vmem:[#allocation2 + $0x2f8] sm:$0xff] }
 0x436   :  { %1550 = vmatpush1.bf16.msra.mxu0 %v1466_v46  ;;  %1632 = vmatpush1.bf16.msra.mxu1 %v1468_v30  ;;  %v1310_v46 = vld [vmem:[#allocation2 + $0x2e0] sm:$0xff]  ;;  %v1312_v30 = vld [vmem:[#allocation2 + $0x2f0] sm:$0xff] }
 0x437   :  { %1642 = vmatprep.subr.bf16.mxu0 %v1223_v15  ;;  %1724 = vmatprep.subr.bf16.mxu1 %v1225_v19  ;;  %v1319_v15 = vld [vmem:[#allocation2 + $0x328] sm:$0xff]  ;;  %v1321_v19 = vld [vmem:[#allocation2 + $0x338] sm:$0xff] }
 0x439   :  { %1552 = vmatmul.mubr.bf16.vlgmr.msra.gmra.mrb[4].mxu0 %v3720_v59  ;;  %1634 = vmatmul.mubr.bf16.vlgmr.msra.gmra.mrb[12].mxu1 %v3720_v59 }
 0x43a   :  { %1643 = vmatpush1.bf16.msra.mxu0 %v1222_v62  ;;  %1725 = vmatpush1.bf16.msra.mxu1 %v1224_v31  ;;  %v1318_v62 = vld [vmem:[#allocation2 + $0x320] sm:$0xff]  ;;  %v1320_v31 = vld [vmem:[#allocation2 + $0x330] sm:$0xff] }
 0x43b   :  { %1644 = vmatprep.subr.bf16.mxu0 %v1231_v32  ;;  %1726 = vmatprep.subr.bf16.mxu1 %v1233_v34  ;;  %v1327_v32 = vld [vmem:[#allocation2 + $0x368] sm:$0xff]  ;;  %v1329_v34 = vld [vmem:[#allocation2 + $0x378] sm:$0xff] }
 0x43c   :  { %1674 = vmatprep.mubr.bf16.mxu0 %v3702_v42  ;;  %1756 = vmatprep.mubr.bf16.mxu1 %v3702_v42  ;;  %v1254_v42 = vld [vmem:[#allocation2 + $0x120] sm:$0xff] }
 0x43e   :  { %1645 = vmatpush1.bf16.msra.mxu0 %v1230_v35  ;;  %1727 = vmatpush1.bf16.msra.mxu1 %v1232_v21  ;;  %v1326_v35 = vld [vmem:[#allocation2 + $0x360] sm:$0xff]  ;;  %v1328_v21 = vld [vmem:[#allocation2 + $0x370] sm:$0xff] }
 0x43f   :  { %1646 = vmatprep.subr.bf16.mxu0 %v1239_v40  ;;  %1728 = vmatprep.subr.bf16.mxu1 %v1241_v18  ;;  %v1335_v40 = vld [vmem:[#allocation2 + $0x3a8] sm:$0xff]  ;;  %v1337_v18 = vld [vmem:[#allocation2 + $0x3b8] sm:$0xff] }
 0x442   :  { %1647 = vmatpush1.bf16.msra.mxu0 %v1238_v36  ;;  %1729 = vmatpush1.bf16.msra.mxu1 %v1240_v37  ;;  %v1334_v36 = vld [vmem:[#allocation2 + $0x3a0] sm:$0xff]  ;;  %v1336_v37 = vld [vmem:[#allocation2 + $0x3b0] sm:$0xff] }
 0x443   :  { %1648 = vmatprep.subr.bf16.mxu0 %v1247_v39  ;;  %1730 = vmatprep.subr.bf16.mxu1 %v1249_v43  ;;  %v1343_v39 = vld [vmem:[#allocation2 + $0x3e8] sm:$0xff]  ;;  %v1345_v43 = vld [vmem:[#allocation2 + $0x3f8] sm:$0xff] }
 0x446   :  { %1649 = vmatpush1.bf16.msra.mxu0 %v1246_v45  ;;  %1731 = vmatpush1.bf16.msra.mxu1 %v1248_v47  ;;  %v1342_v45 = vld [vmem:[#allocation2 + $0x3e0] sm:$0xff]  ;;  %v1344_v47 = vld [vmem:[#allocation2 + $0x3f0] sm:$0xff] }
 0x447   :  { %1650 = vmatprep.subr.bf16.mxu0 %v1255_v48  ;;  %1732 = vmatprep.subr.bf16.mxu1 %v1257_v49  ;;  %v1351_v48 = vld [vmem:[#allocation2 + $0x428] sm:$0xff]  ;;  %v1353_v49 = vld [vmem:[#allocation2 + $0x438] sm:$0xff] }
 0x44a   :  { %1651 = vmatpush1.bf16.msra.mxu0 %v1254_v42  ;;  %1733 = vmatpush1.bf16.msra.mxu1 %v1256_v50  ;;  %v1350_v42 = vld [vmem:[#allocation2 + $0x420] sm:$0xff]  ;;  %v1352_v50 = vld [vmem:[#allocation2 + $0x430] sm:$0xff] }
 0x44b   :  { %1652 = vmatprep.subr.bf16.mxu0 %v1263_v51  ;;  %1734 = vmatprep.subr.bf16.mxu1 %v1265_v52  ;;  %v1359_v51 = vld [vmem:[#allocation2 + $0x468] sm:$0xff]  ;;  %v1361_v52 = vld [vmem:[#allocation2 + $0x478] sm:$0xff] }
 0x44e   :  { %1653 = vmatpush1.bf16.msra.mxu0 %v1262_v53  ;;  %1735 = vmatpush1.bf16.msra.mxu1 %v1264_v54  ;;  %v1358_v53 = vld [vmem:[#allocation2 + $0x460] sm:$0xff]  ;;  %v1360_v54 = vld [vmem:[#allocation2 + $0x470] sm:$0xff] }
 0x44f   :  { %1654 = vmatprep.subr.bf16.mxu0 %v1271_v55  ;;  %1736 = vmatprep.subr.bf16.mxu1 %v1273_v56  ;;  %v1367_v55 = vld [vmem:[#allocation2 + $0x4a8] sm:$0xff]  ;;  %v1369_v56 = vld [vmem:[#allocation2 + $0x4b8] sm:$0xff] }
 0x452   :  { %1655 = vmatpush1.bf16.msra.mxu0 %v1270_v57  ;;  %1737 = vmatpush1.bf16.msra.mxu1 %v1272_v0  ;;  %v1366_v57 = vld [vmem:[#allocation2 + $0x4a0] sm:$0xff]  ;;  %v1368_v0 = vld [vmem:[#allocation2 + $0x4b0] sm:$0xff] }
 0x453   :  { %1656 = vmatprep.subr.bf16.mxu0 %v1279_v8  ;;  %1738 = vmatprep.subr.bf16.mxu1 %v1281_v58  ;;  %v1375_v8 = vld [vmem:[#allocation2 + $0x4e8] sm:$0xff]  ;;  %v1374_v58 = vld [vmem:[#allocation2 + $0x4e0] sm:$0xff] }
 0x456   :  { %1657 = vmatpush1.bf16.msra.mxu0 %v1278_v9  ;;  %1739 = vmatpush1.bf16.msra.mxu1 %v1280_v10  ;;  %v1376_v9 = vld [vmem:[#allocation2 + $0x4f0] sm:$0xff]  ;;  %v1383_v10 = vld [vmem:[#allocation2 + $0x528] sm:$0xff] }
 0x457   :  { %1658 = vmatprep.subr.bf16.mxu0 %v1287_v11  ;;  %1740 = vmatprep.subr.bf16.mxu1 %v1289_v16  ;;  %v1385_v11 = vld [vmem:[#allocation2 + $0x538] sm:$0xff]  ;;  %v1384_v16 = vld [vmem:[#allocation2 + $0x530] sm:$0xff] }
 0x45a   :  { %1659 = vmatpush1.bf16.msra.mxu0 %v1286_v17  ;;  %1741 = vmatpush1.bf16.msra.mxu1 %v1288_v20  ;;  %v1391_v17 = vld [vmem:[#allocation2 + $0x568] sm:$0xff]  ;;  %v1393_v20 = vld [vmem:[#allocation2 + $0x578] sm:$0xff] }
 0x45b   :  { %1660 = vmatprep.subr.bf16.mxu0 %v1295_v22  ;;  %1742 = vmatprep.subr.bf16.mxu1 %v1297_v38  ;;  %v1390_v22 = vld [vmem:[#allocation2 + $0x560] sm:$0xff]  ;;  %v1392_v38 = vld [vmem:[#allocation2 + $0x570] sm:$0xff] }
 0x45e   :  { %1661 = vmatpush1.bf16.msra.mxu0 %v1294_v24  ;;  %1743 = vmatpush1.bf16.msra.mxu1 %v1296_v25  ;;  %v1399_v24 = vld [vmem:[#allocation2 + $0x5a8] sm:$0xff]  ;;  %v1401_v25 = vld [vmem:[#allocation2 + $0x5b8] sm:$0xff] }
 0x45f   :  { %1662 = vmatprep.subr.bf16.mxu0 %v1303_v26  ;;  %1744 = vmatprep.subr.bf16.mxu1 %v1305_v41  ;;  %v1398_v26 = vld [vmem:[#allocation2 + $0x5a0] sm:$0xff]  ;;  %v1400_v41 = vld [vmem:[#allocation2 + $0x5b0] sm:$0xff] }
 0x462   :  { %1663 = vmatpush1.bf16.msra.mxu0 %v1302_v27  ;;  %1745 = vmatpush1.bf16.msra.mxu1 %v1304_v28  ;;  %v1407_v27 = vld [vmem:[#allocation2 + $0x5e8] sm:$0xff]  ;;  %v1409_v28 = vld [vmem:[#allocation2 + $0x5f8] sm:$0xff] }
 0x463   :  { %1664 = vmatprep.subr.bf16.mxu0 %v1311_v29  ;;  %1746 = vmatprep.subr.bf16.mxu1 %v1313_v44  ;;  %v1406_v29 = vld [vmem:[#allocation2 + $0x5e0] sm:$0xff]  ;;  %v1408_v44 = vld [vmem:[#allocation2 + $0x5f0] sm:$0xff] }
 0x466   :  { %1665 = vmatpush1.bf16.msra.mxu0 %v1310_v46  ;;  %1747 = vmatpush1.bf16.msra.mxu1 %v1312_v30  ;;  %v1415_v46 = vld [vmem:[#allocation2 + $0x628] sm:$0xff]  ;;  %v1417_v30 = vld [vmem:[#allocation2 + $0x638] sm:$0xff] }
 0x467   :  { %1666 = vmatprep.subr.bf16.mxu0 %v1319_v15  ;;  %1748 = vmatprep.subr.bf16.mxu1 %v1321_v19  ;;  %v1414_v15 = vld [vmem:[#allocation2 + $0x620] sm:$0xff]  ;;  %v1416_v19 = vld [vmem:[#allocation2 + $0x630] sm:$0xff] }
 0x46a   :  { %1667 = vmatpush1.bf16.msra.mxu0 %v1318_v62  ;;  %1749 = vmatpush1.bf16.msra.mxu1 %v1320_v31  ;;  %v1423_v62 = vld [vmem:[#allocation2 + $0x668] sm:$0xff]  ;;  %v1425_v31 = vld [vmem:[#allocation2 + $0x678] sm:$0xff] }
 0x46b   :  { %1668 = vmatprep.subr.bf16.mxu0 %v1327_v32  ;;  %1750 = vmatprep.subr.bf16.mxu1 %v1329_v34  ;;  %v1422_v32 = vld [vmem:[#allocation2 + $0x660] sm:$0xff]  ;;  %v1424_v34 = vld [vmem:[#allocation2 + $0x670] sm:$0xff] }
 0x46e   :  { %1669 = vmatpush1.bf16.msra.mxu0 %v1326_v35  ;;  %1751 = vmatpush1.bf16.msra.mxu1 %v1328_v21  ;;  %v1431_v35 = vld [vmem:[#allocation2 + $0x6a8] sm:$0xff]  ;;  %v1433_v21 = vld [vmem:[#allocation2 + $0x6b8] sm:$0xff] }
 0x46f   :  { %1670 = vmatprep.subr.bf16.mxu0 %v1335_v40  ;;  %1752 = vmatprep.subr.bf16.mxu1 %v1337_v18  ;;  %v1430_v40 = vld [vmem:[#allocation2 + $0x6a0] sm:$0xff]  ;;  %v1432_v18 = vld [vmem:[#allocation2 + $0x6b0] sm:$0xff] }
 0x472   :  { %1671 = vmatpush1.bf16.msra.mxu0 %v1334_v36  ;;  %1753 = vmatpush1.bf16.msra.mxu1 %v1336_v37  ;;  %v1439_v36 = vld [vmem:[#allocation2 + $0x6e8] sm:$0xff]  ;;  %v1441_v37 = vld [vmem:[#allocation2 + $0x6f8] sm:$0xff] }
 0x473   :  { %1672 = vmatprep.subr.bf16.mxu0 %v1343_v39  ;;  %1754 = vmatprep.subr.bf16.mxu1 %v1345_v43  ;;  %v1438_v39 = vld [vmem:[#allocation2 + $0x6e0] sm:$0xff]  ;;  %v1440_v43 = vld [vmem:[#allocation2 + $0x6f0] sm:$0xff] }
 0x476   :  { %1673 = vmatpush1.bf16.msra.mxu0 %v1342_v45  ;;  %1755 = vmatpush1.bf16.msra.mxu1 %v1344_v47  ;;  %v1447_v45 = vld [vmem:[#allocation2 + $0x728] sm:$0xff]  ;;  %v1449_v47 = vld [vmem:[#allocation2 + $0x738] sm:$0xff] }
 0x477   :  { %1683 = vmatprep.subr.bf16.mxu0 %v1351_v48  ;;  %1765 = vmatprep.subr.bf16.mxu1 %v1353_v49  ;;  %v1446_v48 = vld [vmem:[#allocation2 + $0x720] sm:$0xff]  ;;  %v1448_v49 = vld [vmem:[#allocation2 + $0x730] sm:$0xff] }
 0x479   :  { %1675 = vmatmul.mubr.bf16.vlgmr.msra.gmra.mrb[8].mxu0 %v3708_v12  ;;  %1757 = vmatmul.mubr.bf16.vlgmr.msra.gmra.mrb[16].mxu1 %v3708_v12  ;;  %v1377_v12 = vld [vmem:[#allocation2 + $0x4f8] sm:$0xff] }
 0x47a   :  { %1684 = vmatpush1.bf16.msra.mxu0 %v1350_v42  ;;  %1766 = vmatpush1.bf16.msra.mxu1 %v1352_v50  ;;  %v1455_v42 = vld [vmem:[#allocation2 + $0x768] sm:$0xff]  ;;  %v1457_v50 = vld [vmem:[#allocation2 + $0x778] sm:$0xff] }
 0x47b   :  { %1685 = vmatprep.subr.bf16.mxu0 %v1359_v51  ;;  %1767 = vmatprep.subr.bf16.mxu1 %v1361_v52  ;;  %v1454_v51 = vld [vmem:[#allocation2 + $0x760] sm:$0xff]  ;;  %v1456_v52 = vld [vmem:[#allocation2 + $0x770] sm:$0xff] }
 0x47c   :  { %1715 = vmatprep.mubr.bf16.mxu0 %v3712_v23  ;;  %1797 = vmatprep.mubr.bf16.mxu1 %v3712_v23  ;;  %v1382_v23 = vld [vmem:[#allocation2 + $0x520] sm:$0xff] }
 0x47e   :  { %1686 = vmatpush1.bf16.msra.mxu0 %v1358_v53  ;;  %1768 = vmatpush1.bf16.msra.mxu1 %v1360_v54  ;;  %v1463_v53 = vld [vmem:[#allocation2 + $0x7a8] sm:$0xff]  ;;  %v1465_v54 = vld [vmem:[#allocation2 + $0x7b8] sm:$0xff] }
 0x47f   :  { %1687 = vmatprep.subr.bf16.mxu0 %v1367_v55  ;;  %1769 = vmatprep.subr.bf16.mxu1 %v1369_v56  ;;  %v1462_v55 = vld [vmem:[#allocation2 + $0x7a0] sm:$0xff]  ;;  %v1464_v56 = vld [vmem:[#allocation2 + $0x7b0] sm:$0xff] }
 0x482   :  { %1688 = vmatpush1.bf16.msra.mxu0 %v1366_v57  ;;  %1770 = vmatpush1.bf16.msra.mxu1 %v1368_v0  ;;  %v1471_v57 = vld [vmem:[#allocation2 + $0x7e8] sm:$0xff]  ;;  %v1473_v0 = vld [vmem:[#allocation2 + $0x7f8] sm:$0xff] }
 0x483   :  { %1689 = vmatprep.subr.bf16.mxu0 %v1375_v8  ;;  %1771 = vmatprep.subr.bf16.mxu1 %v1377_v12  ;;  %v1470_v8 = vld [vmem:[#allocation2 + $0x7e0] sm:$0xff]  ;;  %v1472_v12 = vld [vmem:[#allocation2 + $0x7f0] sm:$0xff] }
 0x486   :  { %1690 = vmatpush1.bf16.msra.mxu0 %v1374_v58  ;;  %1772 = vmatpush1.bf16.msra.mxu1 %v1376_v9 }
 0x487   :  { %1691 = vmatprep.subr.bf16.mxu0 %v1383_v10  ;;  %1773 = vmatprep.subr.bf16.mxu1 %v1385_v11 }
 0x48a   :  { %1692 = vmatpush1.bf16.msra.mxu0 %v1382_v23  ;;  %1774 = vmatpush1.bf16.msra.mxu1 %v1384_v16 }
 0x48b   :  { %1693 = vmatprep.subr.bf16.mxu0 %v1391_v17  ;;  %1775 = vmatprep.subr.bf16.mxu1 %v1393_v20 }
 0x48e   :  { %1694 = vmatpush1.bf16.msra.mxu0 %v1390_v22  ;;  %1776 = vmatpush1.bf16.msra.mxu1 %v1392_v38 }
 0x48f   :  { %1695 = vmatprep.subr.bf16.mxu0 %v1399_v24  ;;  %1777 = vmatprep.subr.bf16.mxu1 %v1401_v25 }
 0x492   :  { %1696 = vmatpush1.bf16.msra.mxu0 %v1398_v26  ;;  %1778 = vmatpush1.bf16.msra.mxu1 %v1400_v41 }
 0x493   :  { %1697 = vmatprep.subr.bf16.mxu0 %v1407_v27  ;;  %1779 = vmatprep.subr.bf16.mxu1 %v1409_v28 }
 0x496   :  { %1698 = vmatpush1.bf16.msra.mxu0 %v1406_v29  ;;  %1780 = vmatpush1.bf16.msra.mxu1 %v1408_v44 }
 0x497   :  { %1699 = vmatprep.subr.bf16.mxu0 %v1415_v46  ;;  %1781 = vmatprep.subr.bf16.mxu1 %v1417_v30 }
 0x49a   :  { %1700 = vmatpush1.bf16.msra.mxu0 %v1414_v15  ;;  %1782 = vmatpush1.bf16.msra.mxu1 %v1416_v19 }
 0x49b   :  { %1701 = vmatprep.subr.bf16.mxu0 %v1423_v62  ;;  %1783 = vmatprep.subr.bf16.mxu1 %v1425_v31 }
 0x49e   :  { %1702 = vmatpush1.bf16.msra.mxu0 %v1422_v32  ;;  %1784 = vmatpush1.bf16.msra.mxu1 %v1424_v34 }
 0x49f   :  { %1703 = vmatprep.subr.bf16.mxu0 %v1431_v35  ;;  %1785 = vmatprep.subr.bf16.mxu1 %v1433_v21 }
 0x4a2   :  { %1704 = vmatpush1.bf16.msra.mxu0 %v1430_v40  ;;  %1786 = vmatpush1.bf16.msra.mxu1 %v1432_v18 }
 0x4a3   :  { %1705 = vmatprep.subr.bf16.mxu0 %v1439_v36  ;;  %1787 = vmatprep.subr.bf16.mxu1 %v1441_v37 }
 0x4a6   :  { %1706 = vmatpush1.bf16.msra.mxu0 %v1438_v39  ;;  %1788 = vmatpush1.bf16.msra.mxu1 %v1440_v43 }
 0x4a7   :  { %1707 = vmatprep.subr.bf16.mxu0 %v1447_v45  ;;  %1789 = vmatprep.subr.bf16.mxu1 %v1449_v47 }
 0x4aa   :  { %1708 = vmatpush1.bf16.msra.mxu0 %v1446_v48  ;;  %1790 = vmatpush1.bf16.msra.mxu1 %v1448_v49 }
 0x4ab   :  { %1709 = vmatprep.subr.bf16.mxu0 %v1455_v42  ;;  %1791 = vmatprep.subr.bf16.mxu1 %v1457_v50 }
 0x4ae   :  { %1710 = vmatpush1.bf16.msra.mxu0 %v1454_v51  ;;  %1792 = vmatpush1.bf16.msra.mxu1 %v1456_v52 }
 0x4af   :  { %1711 = vmatprep.subr.bf16.mxu0 %v1463_v53  ;;  %1793 = vmatprep.subr.bf16.mxu1 %v1465_v54 }
 0x4b2   :  { %1712 = vmatpush1.bf16.msra.mxu0 %v1462_v55  ;;  %1794 = vmatpush1.bf16.msra.mxu1 %v1464_v56 }
 0x4b3   :  { %1713 = vmatprep.subr.bf16.mxu0 %v1471_v57  ;;  %1795 = vmatprep.subr.bf16.mxu1 %v1473_v0 }
 0x4b6   :  { %1714 = vmatpush1.bf16.msra.mxu0 %v1470_v8  ;;  %1796 = vmatpush1.bf16.msra.mxu1 %v1472_v12 }
 0x4b9   :  { %1716 = vmatmul.mubr.bf16.vlgmr.msra.gmra.mrb[8].mxu0 %v3720_v59  ;;  %1798 = vmatmul.mubr.bf16.vlgmr.msra.gmra.mrb[16].mxu1 %v3720_v59 }
 0x50c   :  { %v3732_v58 = vpop.f32.mrb[4].mxu0  ;;  %v3734_v9 = vpop.f32.mrb[12].mxu1 }
 0x50d   :  { %v1806_v10 = vrot.slane %v3732_v58, 4  ;;  %v1862_v11 = vmul.f32 %v3732_v58, %v3732_v58  ;;  %v1818_v23 = vrot.slane %v3734_v9, 4  ;;  %v1864_v16 = vmul.f32 %v3734_v9, %v3734_v9  ;;  %v3742_v17 = vpop.f32.mrb[5].mxu0  ;;  %v3744_v20 = vpop.f32.mrb[13].mxu1 }
 0x50e   :  { %v1812_v59 = vrot.slane %v3742_v17, 4  ;;  %v1863_v22 = vmul.f32 %v3742_v17, %v3742_v17  ;;  %v1824_v38 = vrot.slane %v3744_v20, 4  ;;  %v1865_v24 = vmul.f32 %v3744_v20, %v3744_v20  ;;  %v1557_v25 = vpop.f32.mrb[6].mxu0  ;;  %v1639_v26 = vpop.f32.mrb[14].mxu1 }
 0x50f   :  { %v1807_v41 = vadd.f32 %v1806_v10, %v3732_v58  ;;  %v1870_v27 = vrot.slane %v1862_v11, 4  ;;  %v1819_v28 = vadd.f32 %v1818_v23, %v3734_v9  ;;  %v1882_v29 = vrot.slane %v1864_v16, 4  ;;  %v1558_v44 = vpop.f32.mrb[7].mxu0  ;;  %v1640_v46 = vpop.f32.mrb[15].mxu1 }
 0x510   :  { %v1813_v30 = vadd.f32 %v1812_v59, %v3742_v17  ;;  %v1876_v15 = vrot.slane %v1863_v22, 4  ;;  %v1825_v19 = vadd.f32 %v1824_v38, %v3744_v20  ;;  %v1888_v62 = vrot.slane %v1865_v24, 4 }
 0x511   :  { %v1808_v31 = vrot.slane %v1807_v41, 2  ;;  %v1871_v32 = vadd.f32 %v1870_v27, %v1862_v11  ;;  %v1820_v34 = vrot.slane %v1819_v28, 2  ;;  %v1883_v35 = vadd.f32 %v1882_v29, %v1864_v16 }
 0x512   :  { %v1814_v21 = vrot.slane %v1813_v30, 2  ;;  %v1877_v40 = vadd.f32 %v1876_v15, %v1863_v22  ;;  %v1826_v18 = vrot.slane %v1825_v19, 2  ;;  %v1889_v36 = vadd.f32 %v1888_v62, %v1865_v24 }
 0x513   :  { %v1809_v37 = vadd.f32 %v1808_v31, %v1807_v41  ;;  %v1872_v39 = vrot.slane %v1871_v32, 2  ;;  %v1821_v43 = vadd.f32 %v1820_v34, %v1819_v28  ;;  %v1884_v45 = vrot.slane %v1883_v35, 2 }
 0x514   :  { %v1815_v47 = vadd.f32 %v1814_v21, %v1813_v30  ;;  %v1878_v48 = vrot.slane %v1877_v40, 2  ;;  %v1827_v49 = vadd.f32 %v1826_v18, %v1825_v19  ;;  %v1890_v42 = vrot.slane %v1889_v36, 2 }
 0x515   :  { %v1810_v50 = vrot.slane %v1809_v37, 1  ;;  %v1873_v51 = vadd.f32 %v1872_v39, %v1871_v32  ;;  %v1822_v52 = vrot.slane %v1821_v43, 1  ;;  %v1885_v53 = vadd.f32 %v1884_v45, %v1883_v35 }
 0x516   :  { %v1816_v54 = vrot.slane %v1815_v47, 1  ;;  %v1879_v55 = vadd.f32 %v1878_v48, %v1877_v40  ;;  %v1828_v56 = vrot.slane %v1827_v49, 1  ;;  %v1891_v57 = vadd.f32 %v1890_v42, %v1889_v36 }
 0x517   :  { %v1811_v0 = vadd.f32 %v1810_v50, %v1809_v37  ;;  %v1874_v8 = vrot.slane %v1873_v51, 1  ;;  %v1823_v12 = vadd.f32 %v1822_v52, %v1821_v43  ;;  %v1886_v10 = vrot.slane %v1885_v53, 1 }
 0x518   :  { %v1817_v11 = vadd.f32 %v1816_v54, %v1815_v47  ;;  %v1880_v23 = vrot.slane %v1879_v55, 1  ;;  %v1829_v16 = vadd.f32 %v1828_v56, %v1827_v49  ;;  %v1892_v59 = vrot.slane %v1891_v57, 1 }
 0x519   :  { %v3756_v22 = vmul.f32 0.125, %v1811_v0  ;;  %v1875_v38 = vadd.f32 %v1874_v8, %v1873_v51  ;;  %v3758_v24 = vmul.f32 0.125, %v1823_v12  ;;  %v1887_v25 = vadd.f32 %v1886_v10, %v1885_v53 }
 0x51a   :  { %v3760_v26 = vmul.f32 0.125, %v1817_v11  ;;  %v1881_v41 = vadd.f32 %v1880_v23, %v1879_v55  ;;  %v3762_v27 = vmul.f32 0.125, %v1829_v16  ;;  %v1893_v28 = vadd.f32 %v1892_v59, %v1891_v57 }
 0x51b   :  { %v1918_v29 = vmul.f32 0.125, %v1875_v38  ;;  %v1926_v44 = vmul.f32 %v3756_v22, %v3756_v22  ;;  %v1920_v46 = vmul.f32 0.125, %v1887_v25  ;;  %v1928_v30 = vmul.f32 %v3758_v24, %v3758_v24 }
 0x51c   :  { %v1919_v15 = vmul.f32 0.125, %v1881_v41  ;;  %v1927_v19 = vmul.f32 %v3760_v26, %v3760_v26  ;;  %v1921_v62 = vmul.f32 0.125, %v1893_v28  ;;  %v1929_v31 = vmul.f32 %v3762_v27, %v3762_v27 }
 0x51d   :  { %v1934_v32 = vsub.f32 %v1918_v29, %v1926_v44  ;;  %v1936_v34 = vsub.f32 %v1920_v46, %v1928_v30 }
 0x51e   :  { %v1935_v35 = vsub.f32 %v1919_v15, %v1927_v19  ;;  %v1937_v21 = vsub.f32 %v1921_v62, %v1929_v31 }
 0x51f   :  { %v1942_v40 = vadd.f32 0.8, %v1934_v32  ;;  %v1944_v18 = vadd.f32 0.8, %v1936_v34 }
 0x520   :  { %v1943_v36 = vadd.f32 0.8, %v1935_v35  ;;  %v1945_v37 = vadd.f32 0.8, %v1937_v21 }
 0x521   :  { %3274 = vrsqrt.f32 %v1942_v40 }
 0x522   :  { %3276 = vrsqrt.f32 %v1944_v18 }
 0x523   :  { %3278 = vrsqrt.f32 %v1943_v36 }
 0x524   :  { %3280 = vrsqrt.f32 %v1945_v37 }
 0x52b   :  { %v3275_v39 = vpop.eup %3274 }
 0x52c   :  { %v3277_v43 = vpop.eup %3276 }
 0x52d   :  { %v3279_v45 = vpop.eup %3278 }
 0x52e   :  { %v3281_v47 = vpop.eup %3280  ;;  %v1966_v48 = vcombine.low %v3275_v39, %v3279_v45 }
 0x52f   :  { %v1967_v49 = vcombine.low %v3277_v43, %v3281_v47 }
 0x530   :  { %v3773_v42 = vrot.slane %v1966_v48, %v3613_v7 }
 0x531   :  { %v3776_v50 = vrot.slane %v1967_v49, %v3613_v7 }
 0x533   :  { %v1998_v51 = vcombine.low %v3773_v42, %v3776_v50 }
 0x58c   :  { %v3780_v52 = vpop.f32.mrb[8].mxu0  ;;  %v3782_v53 = vpop.f32.mrb[16].mxu1 }
 0x58d   :  { %v1830_v54 = vrot.slane %v3780_v52, 4  ;;  %v1866_v55 = vmul.f32 %v3780_v52, %v3780_v52  ;;  %v1842_v56 = vrot.slane %v3782_v53, 4  ;;  %v1868_v57 = vmul.f32 %v3782_v53, %v3782_v53  ;;  %v3790_v0 = vpop.f32.mrb[9].mxu0  ;;  %v3792_v8 = vpop.f32.mrb[17].mxu1 }
 0x58e   :  { %v1836_v12 = vrot.slane %v3790_v0, 4  ;;  %v1867_v10 = vmul.f32 %v3790_v0, %v3790_v0  ;;  %v1848_v11 = vrot.slane %v3792_v8, 4  ;;  %v1869_v23 = vmul.f32 %v3792_v8, %v3792_v8  ;;  %v1721_v16 = vpop.f32.mrb[10].mxu0  ;;  %v1803_v59 = vpop.f32.mrb[18].mxu1 }
 0x58f   :  { %v1831_v38 = vadd.f32 %v1830_v54, %v3780_v52  ;;  %v1894_v25 = vrot.slane %v1866_v55, 4  ;;  %v1843_v41 = vadd.f32 %v1842_v56, %v3782_v53  ;;  %v1906_v28 = vrot.slane %v1868_v57, 4  ;;  %v1722_v29 = vpop.f32.mrb[11].mxu0  ;;  %v1804_v44 = vpop.f32.mrb[19].mxu1 }
 0x590   :  { %v1837_v46 = vadd.f32 %v1836_v12, %v3790_v0  ;;  %v1900_v30 = vrot.slane %v1867_v10, 4  ;;  %v1849_v15 = vadd.f32 %v1848_v11, %v3792_v8  ;;  %v1912_v19 = vrot.slane %v1869_v23, 4 }
 0x591   :  { %v1832_v62 = vrot.slane %v1831_v38, 2  ;;  %v1895_v31 = vadd.f32 %v1894_v25, %v1866_v55  ;;  %v1844_v32 = vrot.slane %v1843_v41, 2  ;;  %v1907_v34 = vadd.f32 %v1906_v28, %v1868_v57 }
 0x592   :  { %v1838_v35 = vrot.slane %v1837_v46, 2  ;;  %v1901_v21 = vadd.f32 %v1900_v30, %v1867_v10  ;;  %v1850_v40 = vrot.slane %v1849_v15, 2  ;;  %v1913_v18 = vadd.f32 %v1912_v19, %v1869_v23 }
 0x593   :  { %v1833_v36 = vadd.f32 %v1832_v62, %v1831_v38  ;;  %v1896_v37 = vrot.slane %v1895_v31, 2  ;;  %v1845_v39 = vadd.f32 %v1844_v32, %v1843_v41  ;;  %v1908_v43 = vrot.slane %v1907_v34, 2 }
 0x594   :  { %v1839_v45 = vadd.f32 %v1838_v35, %v1837_v46  ;;  %v1902_v47 = vrot.slane %v1901_v21, 2  ;;  %v1851_v48 = vadd.f32 %v1850_v40, %v1849_v15  ;;  %v1914_v49 = vrot.slane %v1913_v18, 2 }
 0x595   :  { %v1834_v54 = vrot.slane %v1833_v36, 1  ;;  %v1897_v56 = vadd.f32 %v1896_v37, %v1895_v31  ;;  %v1846_v12 = vrot.slane %v1845_v39, 1  ;;  %v1909_v11 = vadd.f32 %v1908_v43, %v1907_v34 }
 0x596   :  { %v1840_v16 = vrot.slane %v1839_v45, 1  ;;  %v1903_v55 = vadd.f32 %v1902_v47, %v1901_v21  ;;  %v1852_v59 = vrot.slane %v1851_v48, 1  ;;  %v1915_v57 = vadd.f32 %v1914_v49, %v1913_v18 }
 0x597   :  { %v1835_v25 = vadd.f32 %v1834_v54, %v1833_v36  ;;  %v1898_v10 = vrot.slane %v1897_v56, 1  ;;  %v1847_v28 = vadd.f32 %v1846_v12, %v1845_v39  ;;  %v1910_v23 = vrot.slane %v1909_v11, 1 }
 0x598   :  { %v1841_v38 = vadd.f32 %v1840_v16, %v1839_v45  ;;  %v1904_v29 = vrot.slane %v1903_v55, 1  ;;  %v1853_v41 = vadd.f32 %v1852_v59, %v1851_v48  ;;  %v1916_v44 = vrot.slane %v1915_v57, 1 }
 0x599   :  { %v1858_v46 = vmul.f32 0.125, %v1835_v25  ;;  %v1899_v30 = vadd.f32 %v1898_v10, %v1897_v56  ;;  %v1860_v15 = vmul.f32 0.125, %v1847_v28  ;;  %v1911_v19 = vadd.f32 %v1910_v23, %v1909_v11 }
 0x59a   :  { %v1859_v62 = vmul.f32 0.125, %v1841_v38  ;;  %v1905_v31 = vadd.f32 %v1904_v29, %v1903_v55  ;;  %v1861_v32 = vmul.f32 0.125, %v1853_v41  ;;  %v1917_v34 = vadd.f32 %v1916_v44, %v1915_v57 }
 0x59b   :  { %v1922_v35 = vmul.f32 0.125, %v1899_v30  ;;  %v1930_v21 = vmul.f32 %v1858_v46, %v1858_v46  ;;  %v1924_v40 = vmul.f32 0.125, %v1911_v19  ;;  %v1932_v18 = vmul.f32 %v1860_v15, %v1860_v15 }
 0x59c   :  { %v1923_v36 = vmul.f32 0.125, %v1905_v31  ;;  %v1931_v37 = vmul.f32 %v1859_v62, %v1859_v62  ;;  %v1925_v39 = vmul.f32 0.125, %v1917_v34  ;;  %v1933_v43 = vmul.f32 %v1861_v32, %v1861_v32 }
 0x59d   :  { %v1938_v45 = vsub.f32 %v1922_v35, %v1930_v21  ;;  %v1940_v47 = vsub.f32 %v1924_v40, %v1932_v18  ;;  %v2006_v29 = vrot.slane %v1998_v51, %v3613_v7  ;;  %v2036_v30 = vsub.s32 4, %v3610_v63 }
 0x59e   :  { %v1939_v48 = vsub.f32 %v1923_v36, %v1931_v37  ;;  %v1941_v49 = vsub.f32 %v1925_v39, %v1933_v43  ;;  %v2040_v19 = vsub.s32 5, %v3610_v63  ;;  %v2044_v31 = vsub.s32 6, %v3610_v63 }
 0x59f   :  { %v1946_v54 = vadd.f32 0.8, %v1938_v45  ;;  %v1948_v56 = vadd.f32 0.8, %v1940_v47  ;;  %v2048_v34 = vsub.s32 7, %v3610_v63 }
 0x5a0   :  { %v1947_v12 = vadd.f32 0.8, %v1939_v48  ;;  %v1949_v11 = vadd.f32 0.8, %v1941_v49 }
 0x5a1   :  { %3282 = vrsqrt.f32 %v1946_v54 }
 0x5a2   :  { %3284 = vrsqrt.f32 %v1948_v56 }
 0x5a3   :  { %3286 = vrsqrt.f32 %v1947_v12 }
 0x5a4   :  { %3288 = vrsqrt.f32 %v1949_v11 }
 0x5ab   :  { %v3283_v16 = vpop.eup %3282 }
 0x5ac   :  { %v3285_v55 = vpop.eup %3284 }
 0x5ad   :  { %v3287_v59 = vpop.eup %3286 }
 0x5ae   :  { %v3289_v57 = vpop.eup %3288  ;;  %v1968_v25 = vcombine.low %v3283_v16, %v3287_v59 }
 0x5af   :  { %v1969_v10 = vcombine.low %v3285_v55, %v3289_v57 }
 0x5b0   :  { %v1990_v28 = vrot.slane %v1968_v25, %v3613_v7 }
 0x5b1   :  { %v1997_v23 = vrot.slane %v1969_v10, %v3613_v7 }
 0x5b3   :  { %v1999_v38 = vcombine.low %v1990_v28, %v1997_v23 }
 0x5b5   :  { %v2013_v41 = vrot.slane %v1999_v38, %v3613_v7 }
 0x5b7   :  { %v2014_v44 = vcombine.low %v2006_v29, %v2013_v41 }
 0x5b9   :  { %v2016_v35 = vmul.f32 %v2014_v44, %v3550_v2 }
 0x5bb   :  { %v2021_v21 = vrot.slane %v2016_v35, %v3621_v13  ;;  %v2025_v40 = vrot.slane %v2016_v35, %v3624_v14  ;;  %v2029_v42 = vrot.slane %v2016_v35, %v3672_v60  ;;  %v2033_v50 = vrot.slane %v2016_v35, %v3675_v61 }
 0x5bc   :  { %v2037_v51 = vrot.slane %v2016_v35, %v2036_v30  ;;  %v2041_v18 = vrot.slane %v2016_v35, %v2040_v19  ;;  %v2045_v36 = vrot.slane %v2016_v35, %v2044_v31  ;;  %v2049_v37 = vrot.slane %v2016_v35, %v2048_v34 }
 0x5bd   :  { %v2058_v39 = vmul.f32 %v2021_v21, %v3756_v22  ;;  %v2059_v43 = vmul.f32 %v2025_v40, %v3760_v26  ;;  %v2060_v63 = vmul.f32 %v2029_v42, %v3758_v24  ;;  %v2061_v2 = vmul.f32 %v2033_v50, %v3762_v27 }
 0x5be   :  { %v2062_v45 = vmul.f32 %v2037_v51, %v1858_v46  ;;  %v2063_v47 = vmul.f32 %v2041_v18, %v1859_v62  ;;  %v2064_v48 = vmul.f32 %v2045_v36, %v1860_v15  ;;  %v2065_v49 = vmul.f32 %v2049_v37, %v1861_v32 }
 0x5bf   :  { %v2074_v54 = vcombine.low %v2058_v39, %v2059_v43  ;;  %v2075_v56 = vcombine.low %v2060_v63, %v2061_v2  ;;  %v2125_v12 = vmul.f32 %v2021_v21, %v3732_v58  ;;  %v2126_v11 = vmul.f32 %v2025_v40, %v3742_v17 }
 0x5c0   :  { %v2076_v16 = vcombine.low %v2062_v45, %v2063_v47  ;;  %v2077_v55 = vcombine.low %v2064_v48, %v2065_v49  ;;  %v2127_v22 = vmul.f32 %v2029_v42, %v3734_v9  ;;  %v2128_v26 = vmul.f32 %v2033_v50, %v3744_v20 }
 0x5c1   :  { %v2084_v24 = vrot.slane %v2074_v54, %v3613_v7  ;;  %v2091_v27 = vrot.slane %v2075_v56, %v3613_v7  ;;  %v2129_v46 = vmul.f32 %v2037_v51, %v3780_v52  ;;  %v2130_v15 = vmul.f32 %v2041_v18, %v3790_v0 }
 0x5c2   :  { %v2098_v62 = vrot.slane %v2076_v16, %v3613_v7  ;;  %v2105_v58 = vrot.slane %v2077_v55, %v3613_v7  ;;  %v2131_v17 = vmul.f32 %v2045_v36, %v3782_v53  ;;  %v2132_v32 = vmul.f32 %v2049_v37, %v3792_v8 }
 0x5c3   :  { %v2106_v59 = vcombine.low %v2084_v24, %v2091_v27 }
 0x5c4   :  { %v2107_v9 = vcombine.low %v2098_v62, %v2105_v58 }
 0x5c5   :  { %v2114_v20 = vrot.slane %v2106_v59, %v3613_v7 }
 0x5c6   :  { %v2121_v57 = vrot.slane %v2107_v9, %v3613_v7 }
 0x5c8   :  { %v2122_v25 = vcombine.low %v2114_v20, %v2121_v57 }
 0x5ca   :  { %v2124_v10 = vsub.f32 %v3555_v3, %v2122_v25 }
 0x5cc   :  { %v2137_v52 = vrot.slane %v2124_v10, %v3621_v13  ;;  %v2141_v0 = vrot.slane %v2124_v10, %v3624_v14  ;;  %v2145_v28 = vrot.slane %v2124_v10, %v3672_v60  ;;  %v2149_v23 = vrot.slane %v2124_v10, %v3675_v61 }
 0x5cd   :  { %v2153_v53 = vrot.slane %v2124_v10, %v2036_v30  ;;  %v2157_v38 = vrot.slane %v2124_v10, %v2040_v19  ;;  %v2161_v8 = vrot.slane %v2124_v10, %v2044_v31  ;;  %v2165_v29 = vrot.slane %v2124_v10, %v2048_v34 }
 0x5ce   :  { %v2174_v41 = vadd.f32 %v2137_v52, %v2125_v12  ;;  %v2175_v44 = vadd.f32 %v2141_v0, %v2126_v11  ;;  %v2176_v35 = vadd.f32 %v2145_v28, %v2127_v22  ;;  %v2177_v21 = vadd.f32 %v2149_v23, %v2128_v26 }
 0x5cf   :  { %v2178_v7 = vadd.f32 %v2153_v53, %v2129_v46  ;;  %v2179_v40 = vadd.f32 %v2157_v38, %v2130_v15  ;;  %v2180_v42 = vadd.f32 %v2161_v8, %v2131_v17  ;;  %v2181_v3 = vadd.f32 %v2165_v29, %v2132_v32 }
 0x5d0   :  { %v2182_v50 = vmul.f32 0.2, %v2174_v41  ;;  %v2183_v51 = vmul.f32 0.2, %v2175_v44  ;;  %v2184_v18 = vmul.f32 0.2, %v2176_v35 }
 0x5d1   :  { %v2185_v36 = vmul.f32 0.2, %v2177_v21  ;;  %v2186_v37 = vmul.f32 0.2, %v2178_v7  ;;  %v2187_v39 = vmul.f32 0.2, %v2179_v40 }
 0x5d2   :  { %v2188_v43 = vmul.f32 0.2, %v2180_v42  ;;  %v2189_v63 = vmul.f32 0.2, %v2181_v3  ;;  %v3843_v30 = vmax.f32 %v2174_v41, %v2182_v50  ;;  %v2191_v19 = vmax.f32 %v2175_v44, %v2183_v51 }
 0x5d3   :  { %v3845_v31 = vmax.f32 %v2176_v35, %v2184_v18  ;;  %v2193_v34 = vmax.f32 %v2177_v21, %v2185_v36  ;;  %v3847_v2 = vmax.f32 %v2178_v7, %v2186_v37  ;;  %v3849_v45 = vmax.f32 %v2179_v40, %v2187_v39 }
 0x5d4   :  { %v3851_v47 = vmax.f32 %v2180_v42, %v2188_v43  ;;  %v3853_v48 = vmax.f32 %v2181_v3, %v2189_v63 }
 0x5d5   :  { %3372 = dma.done.wait [#allocation6 + $0x1], 8192 }
 0x5d6   :  { %3373 = vsyncadd [#allocation6 + $0x1], 4294959104  ;;  %v2267_v49 = vpack.c.bf16 %v2191_v19, %v2191_v19  ;;  %v2269_v54 = vpack.c.bf16 %v2193_v34, %v2193_v34  ;;  %v3858_v56 = vld [vmem:[%s3971_s1] sm:$0xff]  ;;  %v2211_v22 = vld [vmem:[#allocation3 + $0x48] sm:$0xff]  ;;  %v2266_v42 = vpack.c.bf16 %v3843_v30, %v3843_v30  ;;  %v2268_v3 = vpack.c.bf16 %v3845_v31, %v3845_v31 }
 0x5d7   :  { %v2210_v12 = vld [vmem:[#allocation3 + $0x40] sm:$0xff]  ;;  %v2227_v26 = vld [vmem:[#allocation3 + $0xc8] sm:$0xff]  ;;  %v2212_v46 = vld [vmem:[#allocation3 + $0x50] sm:$0xff]  ;;  %v2271_v37 = vpack.c.bf16 %v3849_v45, %v3849_v45  ;;  %v2273_v39 = vpack.c.bf16 %v3853_v48, %v3853_v48 }
 0x5d8   :  { %2312 = vmatprep.mubr.bf16.mxu0 %v2267_v49  ;;  %2352 = vmatprep.mubr.bf16.mxu1 %v2269_v54  ;;  %v2226_v11 = vld [vmem:[#allocation3 + $0xc0] sm:$0xff]  ;;  %v2203_v24 = vld [vmem:[#allocation3 + $0x8] sm:$0xff]  ;;  %v2228_v15 = vld [vmem:[#allocation3 + $0xd0] sm:$0xff] }
 0x5d9   :  { %2977 = vmatprep.subr.bf16.mxu0 %v2210_v12  ;;  %2999 = vmatprep.subr.bf16.mxu1 %v2226_v11  ;;  %v2202_v16 = vld [vmem:[#allocation3] sm:$0xff]  ;;  %v2219_v27 = vld [vmem:[#allocation3 + $0x88] sm:$0xff]  ;;  %v2204_v62 = vld [vmem:[#allocation3 + $0x10] sm:$0xff] }
 0x5da   :  { %v2218_v55 = vld [vmem:[#allocation3 + $0x80] sm:$0xff]  ;;  %2978 = vmatpush3.bf16.msra.mxu0 %v2202_v16  ;;  %v2220_v58 = vld [vmem:[#allocation3 + $0x90] sm:$0xff]  ;;  %v2213_v17 = vld [vmem:[#allocation3 + $0x58] sm:$0xff] }
 0x5db   :  { %3000 = vmatpush3.bf16.msra.mxu1 %v2218_v55  ;;  %2979 = vmatprep.subr.bf16.mxu0 %v2211_v22  ;;  %v2229_v32 = vld [vmem:[#allocation3 + $0xd8] sm:$0xff]  ;;  %v2214_v20 = vld [vmem:[#allocation3 + $0x60] sm:$0xff]  ;;  %v2215_v52 = vld [vmem:[#allocation3 + $0x68] sm:$0xff] }
 0x5dc   :  { %3001 = vmatprep.subr.bf16.mxu1 %v2227_v26  ;;  %v2205_v59 = vld [vmem:[#allocation3 + $0x18] sm:$0xff]  ;;  %v2230_v57 = vld [vmem:[#allocation3 + $0xe0] sm:$0xff]  ;;  %v2231_v0 = vld [vmem:[#allocation3 + $0xe8] sm:$0xff] }
 0x5dd   :  { %v2221_v9 = vld [vmem:[#allocation3 + $0x98] sm:$0xff]  ;;  %v2206_v25 = vld [vmem:[#allocation3 + $0x20] sm:$0xff]  ;;  %v2207_v28 = vld [vmem:[#allocation3 + $0x28] sm:$0xff] }
 0x5de   :  { %2980 = vmatpush3.bf16.msra.mxu0 %v2203_v24  ;;  %v2222_v10 = vld [vmem:[#allocation3 + $0xa0] sm:$0xff]  ;;  %v2223_v23 = vld [vmem:[#allocation3 + $0xa8] sm:$0xff]  ;;  %v2216_v53 = vld [vmem:[#allocation3 + $0x70] sm:$0xff] }
 0x5df   :  { %3002 = vmatpush3.bf16.msra.mxu1 %v2219_v27  ;;  %2981 = vmatprep.subr.bf16.mxu0 %v2212_v46  ;;  %v2232_v38 = vld [vmem:[#allocation3 + $0xf0] sm:$0xff]  ;;  %v2217_v41 = vld [vmem:[#allocation3 + $0x78] sm:$0xff]  ;;  %v2242_v7 = vld [vmem:[#allocation3 + $0x140] sm:$0xff] }
 0x5e0   :  { %3003 = vmatprep.subr.bf16.mxu1 %v2228_v15  ;;  %v2208_v8 = vld [vmem:[#allocation3 + $0x30] sm:$0xff]  ;;  %v2233_v44 = vld [vmem:[#allocation3 + $0xf8] sm:$0xff]  ;;  %v2258_v40 = vld [vmem:[#allocation3 + $0x1c0] sm:$0xff] }
 0x5e1   :  { %v2224_v29 = vld [vmem:[#allocation3 + $0xb0] sm:$0xff]  ;;  %v2209_v35 = vld [vmem:[#allocation3 + $0x38] sm:$0xff]  ;;  %v2234_v50 = vld [vmem:[#allocation3 + $0x100] sm:$0xff] }
 0x5e2   :  { %2982 = vmatpush3.bf16.msra.mxu0 %v2204_v62  ;;  %v2225_v21 = vld [vmem:[#allocation3 + $0xb8] sm:$0xff]  ;;  %v2250_v51 = vld [vmem:[#allocation3 + $0x180] sm:$0xff]  ;;  %v2243_v18 = vld [vmem:[#allocation3 + $0x148] sm:$0xff] }
 0x5e3   :  { %3004 = vmatpush3.bf16.msra.mxu1 %v2220_v58  ;;  %2983 = vmatprep.subr.bf16.mxu0 %v2213_v17  ;;  %v2259_v36 = vld [vmem:[#allocation3 + $0x1c8] sm:$0xff]  ;;  %v2244_v30 = vld [vmem:[#allocation3 + $0x150] sm:$0xff]  ;;  %v2245_v45 = vld [vmem:[#allocation3 + $0x158] sm:$0xff] }
 0x5e4   :  { %3005 = vmatprep.subr.bf16.mxu1 %v2229_v32  ;;  %v2235_v43 = vld [vmem:[#allocation3 + $0x108] sm:$0xff]  ;;  %v2260_v19 = vld [vmem:[#allocation3 + $0x1d0] sm:$0xff]  ;;  %v2261_v48 = vld [vmem:[#allocation3 + $0x1d8] sm:$0xff] }
 0x5e5   :  { %v2251_v63 = vld [vmem:[#allocation3 + $0x188] sm:$0xff]  ;;  %v2236_v31 = vld [vmem:[#allocation3 + $0x110] sm:$0xff]  ;;  %v2237_v49 = vld [vmem:[#allocation3 + $0x118] sm:$0xff] }
 0x5e6   :  { %2984 = vmatpush3.bf16.msra.mxu0 %v2205_v59  ;;  %v2252_v34 = vld [vmem:[#allocation3 + $0x190] sm:$0xff]  ;;  %v2253_v54 = vld [vmem:[#allocation3 + $0x198] sm:$0xff]  ;;  %v2246_v12 = vld [vmem:[#allocation3 + $0x160] sm:$0xff] }
 0x5e7   :  { %3006 = vmatpush3.bf16.msra.mxu1 %v2221_v9  ;;  %2985 = vmatprep.subr.bf16.mxu0 %v2214_v20  ;;  %v2262_v11 = vld [vmem:[#allocation3 + $0x1e0] sm:$0xff]  ;;  %v2247_v22 = vld [vmem:[#allocation3 + $0x168] sm:$0xff]  ;;  %v2248_v46 = vld [vmem:[#allocation3 + $0x170] sm:$0xff]  ;;  %v2270_v20 = vpack.c.bf16 %v3847_v2, %v3847_v2 }
 0x5e8   :  { %3007 = vmatprep.subr.bf16.mxu1 %v2230_v57  ;;  %v2238_v16 = vld [vmem:[#allocation3 + $0x120] sm:$0xff]  ;;  %v2263_v26 = vld [vmem:[#allocation3 + $0x1e8] sm:$0xff]  ;;  %v2264_v15 = vld [vmem:[#allocation3 + $0x1f0] sm:$0xff]  ;;  %v2272_v57 = vpack.c.bf16 %v3851_v47, %v3851_v47 }
 0x5e9   :  { %v2254_v55 = vld [vmem:[#allocation3 + $0x1a0] sm:$0xff]  ;;  %v2239_v24 = vld [vmem:[#allocation3 + $0x128] sm:$0xff]  ;;  %v2240_v62 = vld [vmem:[#allocation3 + $0x130] sm:$0xff] }
 0x5ea   :  { %2986 = vmatpush3.bf16.msra.mxu0 %v2206_v25  ;;  %v2255_v27 = vld [vmem:[#allocation3 + $0x1a8] sm:$0xff]  ;;  %v2256_v58 = vld [vmem:[#allocation3 + $0x1b0] sm:$0xff]  ;;  %v2249_v17 = vld [vmem:[#allocation3 + $0x178] sm:$0xff] }
 0x5eb   :  { %3008 = vmatpush3.bf16.msra.mxu1 %v2222_v10  ;;  %2987 = vmatprep.subr.bf16.mxu0 %v2215_v52  ;;  %v2265_v32 = vld [vmem:[#allocation3 + $0x1f8] sm:$0xff] }
 0x5ec   :  { %3009 = vmatprep.subr.bf16.mxu1 %v2231_v0  ;;  %v2241_v59 = vld [vmem:[#allocation3 + $0x138] sm:$0xff] }
 0x5ed   :  { %v2257_v9 = vld [vmem:[#allocation3 + $0x1b8] sm:$0xff] }
 0x5ee   :  { %2988 = vmatpush3.bf16.msra.mxu0 %v2207_v28 }
 0x5ef   :  { %3010 = vmatpush3.bf16.msra.mxu1 %v2223_v23  ;;  %2989 = vmatprep.subr.bf16.mxu0 %v2216_v53 }
 0x5f0   :  { %3011 = vmatprep.subr.bf16.mxu1 %v2232_v38 }
 0x5f2   :  { %2990 = vmatpush3.bf16.msra.mxu0 %v2208_v8 }
 0x5f3   :  { %3012 = vmatpush3.bf16.msra.mxu1 %v2224_v29  ;;  %2991 = vmatprep.subr.bf16.mxu0 %v2217_v41 }
 0x5f4   :  { %3013 = vmatprep.subr.bf16.mxu1 %v2233_v44 }
 0x5f6   :  { %2992 = vmatpush3.bf16.msra.mxu0 %v2209_v35 }
 0x5f7   :  { %3014 = vmatpush3.bf16.msra.mxu1 %v2225_v21  ;;  %3021 = vmatprep.subr.bf16.mxu0 %v2242_v7 }
 0x5f8   :  { %3043 = vmatprep.subr.bf16.mxu1 %v2258_v40 }
 0x5f9   :  { %2313 = vmatmul.mubr.bf16.vlgmr.msra.gmra.mrb[12].mxu0 %v2266_v42 }
 0x5fa   :  { %2353 = vmatmul.mubr.bf16.vlgmr.msra.gmra.mrb[20].mxu1 %v2268_v3  ;;  %3022 = vmatpush3.bf16.msra.mxu0 %v2234_v50 }
 0x5fb   :  { %3044 = vmatpush3.bf16.msra.mxu1 %v2250_v51  ;;  %3023 = vmatprep.subr.bf16.mxu0 %v2243_v18 }
 0x5fc   :  { %3045 = vmatprep.subr.bf16.mxu1 %v2259_v36  ;;  %2392 = vmatprep.mubr.bf16.mxu0 %v2271_v37 }
 0x5fd   :  { %2432 = vmatprep.mubr.bf16.mxu1 %v2273_v39 }
 0x5fe   :  { %3024 = vmatpush3.bf16.msra.mxu0 %v2235_v43 }
 0x5ff   :  { %3046 = vmatpush3.bf16.msra.mxu1 %v2251_v63  ;;  %3025 = vmatprep.subr.bf16.mxu0 %v2244_v30 }
 0x600   :  { %3047 = vmatprep.subr.bf16.mxu1 %v2260_v19 }
 0x602   :  { %3026 = vmatpush3.bf16.msra.mxu0 %v2236_v31 }
 0x603   :  { %3048 = vmatpush3.bf16.msra.mxu1 %v2252_v34  ;;  %3027 = vmatprep.subr.bf16.mxu0 %v2245_v45 }
 0x604   :  { %3049 = vmatprep.subr.bf16.mxu1 %v2261_v48 }
 0x606   :  { %3028 = vmatpush3.bf16.msra.mxu0 %v2237_v49 }
 0x607   :  { %3050 = vmatpush3.bf16.msra.mxu1 %v2253_v54  ;;  %3029 = vmatprep.subr.bf16.mxu0 %v2246_v12 }
 0x608   :  { %3051 = vmatprep.subr.bf16.mxu1 %v2262_v11 }
 0x60a   :  { %3030 = vmatpush3.bf16.msra.mxu0 %v2238_v16 }
 0x60b   :  { %3052 = vmatpush3.bf16.msra.mxu1 %v2254_v55  ;;  %3031 = vmatprep.subr.bf16.mxu0 %v2247_v22 }
 0x60c   :  { %3053 = vmatprep.subr.bf16.mxu1 %v2263_v26 }
 0x60e   :  { %3032 = vmatpush3.bf16.msra.mxu0 %v2239_v24 }
 0x60f   :  { %3054 = vmatpush3.bf16.msra.mxu1 %v2255_v27  ;;  %3033 = vmatprep.subr.bf16.mxu0 %v2248_v46 }
 0x610   :  { %3055 = vmatprep.subr.bf16.mxu1 %v2264_v15 }
 0x612   :  { %3034 = vmatpush3.bf16.msra.mxu0 %v2240_v62 }
 0x613   :  { %3056 = vmatpush3.bf16.msra.mxu1 %v2256_v58  ;;  %3035 = vmatprep.subr.bf16.mxu0 %v2249_v17 }
 0x614   :  { %3057 = vmatprep.subr.bf16.mxu1 %v2265_v32 }
 0x616   :  { %3036 = vmatpush3.bf16.msra.mxu0 %v2241_v59 }
 0x617   :  { %3058 = vmatpush3.bf16.msra.mxu1 %v2257_v9 }
 0x619   :  { %2393 = vmatmul.mubr.bf16.vlgmr.msra.gmra.mrb[16].mxu0 %v2270_v20 }
 0x61a   :  { %2433 = vmatmul.mubr.bf16.vlgmr.msra.gmra.mrb[24].mxu1 %v2272_v57 }
 0x6cc   :  { %v2993_v25 = vpop.f32.mrb[12].mxu0 }
 0x6cd   :  { %v3015_v10 = vpop.f32.mrb[20].mxu1  ;;  %v2994_v52 = vpop.f32.mrb[13].mxu0 }
 0x6ce   :  { %v3016_v0 = vpop.f32.mrb[21].mxu1  ;;  %v2995_v28 = vadd.f32 %v2994_v52, %v2993_v25  ;;  %v2996_v53 = vpop.f32.mrb[14].mxu0 }
 0x6cf   :  { %v3017_v23 = vadd.f32 %v3016_v0, %v3015_v10  ;;  %v3018_v38 = vpop.f32.mrb[22].mxu1  ;;  %v2997_v8 = vpop.f32.mrb[15].mxu0 }
 0x6d0   :  { %v3019_v29 = vpop.f32.mrb[23].mxu1  ;;  %v2315_v41 = vadd.f32 %v2995_v28, %v3545_v1 }
 0x6d2   :  { %v2355_v2 = vadd.f32 %v3017_v23, %v2315_v41 }
 0x6ec   :  { %v3037_v44 = vpop.f32.mrb[16].mxu0 }
 0x6ed   :  { %v3059_v35 = vpop.f32.mrb[24].mxu1  ;;  %v3038_v47 = vpop.f32.mrb[17].mxu0 }
 0x6ee   :  { %v3060_v21 = vpop.f32.mrb[25].mxu1  ;;  %v3039_v7 = vadd.f32 %v3038_v47, %v3037_v44  ;;  %v3040_v42 = vpop.f32.mrb[18].mxu0 }
 0x6ef   :  { %v3061_v40 = vadd.f32 %v3060_v21, %v3059_v35  ;;  %v3062_v3 = vpop.f32.mrb[26].mxu1  ;;  %v3041_v50 = vpop.f32.mrb[19].mxu0 }
 0x6f0   :  { %v3063_v51 = vpop.f32.mrb[27].mxu1  ;;  %v2395_v18 = vadd.f32 %v3039_v7, %v2355_v2 }
 0x6f2   :  { %v2435_v36 = vadd.f32 %v3061_v40, %v2395_v18 }
 0x6f4   :  { %3290 = vtanh.f32 %v2435_v36 }
 0x6fe   :  { %v3873_v37 = vpop.eup %3290 }
 0x6ff   :  { %3374 = dma.done.wait [#allocation6 + $0x2], 4096 }
 0x700   :  { %3375 = vsyncadd [#allocation6 + $0x2], 4294963200  ;;  %2532 = vmatprep.mubr.bf16.mxu0 %v3401_v33  ;;  %2575 = vmatprep.mubr.bf16.mxu1 %v3401_v33  ;;  %v2447_v1 = vld [vmem:[#allocation4 + $0x8] sm:$0xff]  ;;  %v2449_v39 = vld [vmem:[#allocation4 + $0x18] sm:$0xff]  ;;  %v2478_v10 = vpack.c.bf16 %v3858_v56, %v3873_v37  ;;  %v2483_v52 = vrot.slane %v3560_v4, %v3621_v13  ;;  %v2491_v0 = vrot.slane %v3560_v4, %v3672_v60 }
 0x701   :  { %v2446_v43 = vld [vmem:[#allocation4] sm:$0xff]  ;;  %2500 = vmatprep.subr.bf16.mxu0 %v2447_v1  ;;  %2543 = vmatprep.subr.bf16.mxu1 %v2449_v39  ;;  %v2448_v63 = vld [vmem:[#allocation4 + $0x10] sm:$0xff]  ;;  %v2451_v30 = vld [vmem:[#allocation4 + $0x28] sm:$0xff]  ;;  %v2487_v28 = vrot.slane %v3560_v4, %v3624_v14  ;;  %v2495_v23 = vrot.slane %v3560_v4, %v3675_v61 }
 0x702   :  { %v2453_v19 = vld [vmem:[#allocation4 + $0x38] sm:$0xff]  ;;  %2501 = vmatpush1.bf16.msra.mxu0 %v2446_v43  ;;  %2544 = vmatpush1.bf16.msra.mxu1 %v2448_v63  ;;  %v2450_v31 = vld [vmem:[#allocation4 + $0x20] sm:$0xff]  ;;  %v2452_v34 = vld [vmem:[#allocation4 + $0x30] sm:$0xff] }
 0x703   :  { %2502 = vmatprep.subr.bf16.mxu0 %v2451_v30  ;;  %2545 = vmatprep.subr.bf16.mxu1 %v2453_v19  ;;  %v2455_v45 = vld [vmem:[#allocation4 + $0x48] sm:$0xff]  ;;  %v2457_v48 = vld [vmem:[#allocation4 + $0x58] sm:$0xff]  ;;  %v2454_v33 = vld [vmem:[#allocation4 + $0x40] sm:$0xff] }
 0x704   :  { %v2456_v49 = vld [vmem:[#allocation4 + $0x50] sm:$0xff]  ;;  %v2459_v54 = vld [vmem:[#allocation4 + $0x68] sm:$0xff]  ;;  %v2461_v12 = vld [vmem:[#allocation4 + $0x78] sm:$0xff] }
 0x705   :  { %v2458_v11 = vld [vmem:[#allocation4 + $0x60] sm:$0xff]  ;;  %v2460_v16 = vld [vmem:[#allocation4 + $0x70] sm:$0xff]  ;;  %v2463_v55 = vld [vmem:[#allocation4 + $0x88] sm:$0xff] }
 0x706   :  { %2503 = vmatpush1.bf16.msra.mxu0 %v2450_v31  ;;  %2546 = vmatpush1.bf16.msra.mxu1 %v2452_v34  ;;  %v2465_v22 = vld [vmem:[#allocation4 + $0x98] sm:$0xff]  ;;  %v2462_v26 = vld [vmem:[#allocation4 + $0x80] sm:$0xff]  ;;  %v2464_v24 = vld [vmem:[#allocation4 + $0x90] sm:$0xff] }
 0x707   :  { %2504 = vmatprep.subr.bf16.mxu0 %v2455_v45  ;;  %2547 = vmatprep.subr.bf16.mxu1 %v2457_v48  ;;  %v2467_v27 = vld [vmem:[#allocation4 + $0xa8] sm:$0xff]  ;;  %v2469_v46 = vld [vmem:[#allocation4 + $0xb8] sm:$0xff]  ;;  %v2466_v15 = vld [vmem:[#allocation4 + $0xa0] sm:$0xff] }
 0x708   :  { %v2468_v62 = vld [vmem:[#allocation4 + $0xb0] sm:$0xff]  ;;  %v2471_v58 = vld [vmem:[#allocation4 + $0xc8] sm:$0xff]  ;;  %v2473_v17 = vld [vmem:[#allocation4 + $0xd8] sm:$0xff] }
 0x709   :  { %v2470_v32 = vld [vmem:[#allocation4 + $0xc0] sm:$0xff]  ;;  %v2472_v59 = vld [vmem:[#allocation4 + $0xd0] sm:$0xff]  ;;  %v2475_v9 = vld [vmem:[#allocation4 + $0xe8] sm:$0xff] }
 0x70a   :  { %2505 = vmatpush1.bf16.msra.mxu0 %v2454_v33  ;;  %2548 = vmatpush1.bf16.msra.mxu1 %v2456_v49  ;;  %v2477_v20 = vld [vmem:[#allocation4 + $0xf8] sm:$0xff]  ;;  %v2474_v57 = vld [vmem:[#allocation4 + $0xe0] sm:$0xff]  ;;  %v2476_v25 = vld [vmem:[#allocation4 + $0xf0] sm:$0xff] }
 0x70b   :  { %2506 = vmatprep.subr.bf16.mxu0 %v2459_v54  ;;  %2549 = vmatprep.subr.bf16.mxu1 %v2461_v12 }
 0x70e   :  { %2507 = vmatpush1.bf16.msra.mxu0 %v2458_v11  ;;  %2550 = vmatpush1.bf16.msra.mxu1 %v2460_v16 }
 0x70f   :  { %2508 = vmatprep.subr.bf16.mxu0 %v2463_v55  ;;  %2551 = vmatprep.subr.bf16.mxu1 %v2465_v22 }
 0x712   :  { %2509 = vmatpush1.bf16.msra.mxu0 %v2462_v26  ;;  %2552 = vmatpush1.bf16.msra.mxu1 %v2464_v24 }
 0x713   :  { %2510 = vmatprep.subr.bf16.mxu0 %v2467_v27  ;;  %2553 = vmatprep.subr.bf16.mxu1 %v2469_v46 }
 0x716   :  { %2511 = vmatpush1.bf16.msra.mxu0 %v2466_v15  ;;  %2554 = vmatpush1.bf16.msra.mxu1 %v2468_v62 }
 0x717   :  { %2512 = vmatprep.subr.bf16.mxu0 %v2471_v58  ;;  %2555 = vmatprep.subr.bf16.mxu1 %v2473_v17 }
 0x71a   :  { %2513 = vmatpush1.bf16.msra.mxu0 %v2470_v32  ;;  %2556 = vmatpush1.bf16.msra.mxu1 %v2472_v59 }
 0x71b   :  { %2514 = vmatprep.subr.bf16.mxu0 %v2475_v9  ;;  %2557 = vmatprep.subr.bf16.mxu1 %v2477_v20 }
 0x71e   :  { %2515 = vmatpush1.bf16.msra.mxu0 %v2474_v57  ;;  %2558 = vmatpush1.bf16.msra.mxu1 %v2476_v25 }
 0x721   :  { %2533 = vmatmul.mubr.bf16.vlgmr.msra.gmra.mrb[20].mxu0 %v2478_v10  ;;  %2576 = vmatmul.mubr.bf16.vlgmr.msra.gmra.mrb[28].mxu1 %v2478_v10 }
 0x7f4   :  { %v2534_v53 = vpop.f32.mrb[20].mxu0  ;;  %v2577_v38 = vpop.f32.mrb[28].mxu1 }
 0x7f5   :  { %v3887_v8 = vadd.f32 %v2534_v53, %v2483_v52  ;;  %v3889_v56 = vadd.f32 %v2577_v38, %v2491_v0  ;;  %v2536_v29 = vpop.f32.mrb[21].mxu0  ;;  %v2579_v41 = vpop.f32.mrb[29].mxu1 }
 0x7f6   :  { %v2537_v2 = vadd.f32 %v2536_v29, %v2487_v28  ;;  %v3891_v44 = vadd.f32 %v2579_v41, %v2495_v23  ;;  %v2538_v35 = vpop.f32.mrb[22].mxu0  ;;  %v2581_v47 = vpop.f32.mrb[30].mxu1 }
 0x7f7   :  { %v3894_v21 = vmul.f32 0.2, %v3887_v8  ;;  %v3897_v7 = vmul.f32 0.2, %v3889_v56  ;;  %v3899_v4 = vadd.f32 %v2538_v35, %v2483_v52  ;;  %v3901_v61 = vadd.f32 %v2581_v47, %v2491_v0  ;;  %v2540_v40 = vpop.f32.mrb[23].mxu0  ;;  %v2583_v42 = vpop.f32.mrb[31].mxu1 }
 0x7f8   :  { %v2587_v3 = vmul.f32 0.2, %v2537_v2  ;;  %v3904_v50 = vmul.f32 0.2, %v3891_v44  ;;  %v2541_v51 = vadd.f32 %v2540_v40, %v2487_v28  ;;  %v3906_v18 = vadd.f32 %v2583_v42, %v2495_v23 }
 0x7f9   :  { %v2594_v36 = vmax.f32 %v3887_v8, %v3894_v21  ;;  %v2596_v1 = vmax.f32 %v3889_v56, %v3897_v7  ;;  %v3913_v39 = vmul.f32 0.2, %v3899_v4  ;;  %v3916_v43 = vmul.f32 0.2, %v3901_v61 }
 0x7fa   :  { %v2595_v63 = vmax.f32 %v2537_v2, %v2587_v3  ;;  %v2597_v30 = vmax.f32 %v3891_v44, %v3904_v50  ;;  %v2591_v19 = vmul.f32 0.2, %v2541_v51  ;;  %v3921_v31 = vmul.f32 0.2, %v3906_v18 }
 0x7fb   :  { %v2598_v34 = vmax.f32 %v3899_v4, %v3913_v39  ;;  %v2600_v45 = vmax.f32 %v3901_v61, %v3916_v43 }
 0x7fc   :  { %v2599_v48 = vmax.f32 %v2541_v51, %v2591_v19  ;;  %v2601_v33 = vmax.f32 %v3906_v18, %v3921_v31 }
 0x7fd   :  { %3376 = dma.done.wait [#allocation6 + $0x3], 8192 }
 0x7fe   :  { %3377 = vsyncadd [#allocation6 + $0x3], 4294959104  ;;  %v2670_v49 = vpack.c.bf16 %v2599_v48, %v2595_v63  ;;  %2829 = vst [vmem:[%s3981_s11] sm:$0xff] %v3873_v37  ;;  %v2606_v54 = vld [vmem:[#allocation5 + $0x8] sm:$0xff]  ;;  %v2605_v12 = vld [vmem:[#allocation5] sm:$0xff]  ;;  %v2669_v40 = vpack.c.bf16 %v2598_v34, %v2594_v36  ;;  %v2672_v42 = vpack.c.bf16 %v2601_v33, %v2597_v30 }
 0x7ff   :  { %v2608_v11 = vld [vmem:[#allocation5 + $0x18] sm:$0xff]  ;;  %2684 = vmatprep.subr.bf16.mxu0 %v2606_v54  ;;  %v2607_v16 = vld [vmem:[#allocation5 + $0x10] sm:$0xff]  ;;  %v2610_v55 = vld [vmem:[#allocation5 + $0x28] sm:$0xff] }
 0x800   :  { %2716 = vmatprep.mubr.bf16.mxu0 %v2670_v49  ;;  %2685 = vmatpush1.bf16.msra.mxu0 %v2605_v12  ;;  %v2609_v22 = vld [vmem:[#allocation5 + $0x20] sm:$0xff]  ;;  %v2612_v26 = vld [vmem:[#allocation5 + $0x38] sm:$0xff]  ;;  %v2611_v24 = vld [vmem:[#allocation5 + $0x30] sm:$0xff] }
 0x801   :  { %2686 = vmatprep.subr.bf16.mxu0 %v2608_v11  ;;  %v2614_v27 = vld [vmem:[#allocation5 + $0x48] sm:$0xff]  ;;  %v2613_v37 = vld [vmem:[#allocation5 + $0x40] sm:$0xff]  ;;  %v2616_v46 = vld [vmem:[#allocation5 + $0x58] sm:$0xff] }
 0x802   :  { %v2615_v15 = vld [vmem:[#allocation5 + $0x50] sm:$0xff]  ;;  %v2618_v62 = vld [vmem:[#allocation5 + $0x68] sm:$0xff]  ;;  %v2617_v58 = vld [vmem:[#allocation5 + $0x60] sm:$0xff] }
 0x803   :  { %v2620_v17 = vld [vmem:[#allocation5 + $0x78] sm:$0xff]  ;;  %v2619_v32 = vld [vmem:[#allocation5 + $0x70] sm:$0xff]  ;;  %v2622_v59 = vld [vmem:[#allocation5 + $0x88] sm:$0xff] }
 0x804   :  { %2687 = vmatpush1.bf16.msra.mxu0 %v2607_v16  ;;  %v2621_v9 = vld [vmem:[#allocation5 + $0x80] sm:$0xff]  ;;  %v2624_v20 = vld [vmem:[#allocation5 + $0x98] sm:$0xff]  ;;  %v2623_v57 = vld [vmem:[#allocation5 + $0x90] sm:$0xff] }
 0x805   :  { %2688 = vmatprep.subr.bf16.mxu0 %v2610_v55  ;;  %v2626_v25 = vld [vmem:[#allocation5 + $0xa8] sm:$0xff]  ;;  %v2625_v10 = vld [vmem:[#allocation5 + $0xa0] sm:$0xff]  ;;  %v2628_v52 = vld [vmem:[#allocation5 + $0xb8] sm:$0xff] }
 0x806   :  { %v2627_v0 = vld [vmem:[#allocation5 + $0xb0] sm:$0xff]  ;;  %v2630_v28 = vld [vmem:[#allocation5 + $0xc8] sm:$0xff]  ;;  %v2629_v23 = vld [vmem:[#allocation5 + $0xc0] sm:$0xff] }
 0x807   :  { %v2632_v53 = vld [vmem:[#allocation5 + $0xd8] sm:$0xff]  ;;  %v2631_v38 = vld [vmem:[#allocation5 + $0xd0] sm:$0xff]  ;;  %v2634_v29 = vld [vmem:[#allocation5 + $0xe8] sm:$0xff] }
 0x808   :  { %2689 = vmatpush1.bf16.msra.mxu0 %v2609_v22  ;;  %v2633_v41 = vld [vmem:[#allocation5 + $0xe0] sm:$0xff]  ;;  %v2636_v2 = vld [vmem:[#allocation5 + $0xf8] sm:$0xff]  ;;  %v2635_v35 = vld [vmem:[#allocation5 + $0xf0] sm:$0xff] }
 0x809   :  { %2690 = vmatprep.subr.bf16.mxu0 %v2612_v26  ;;  %v2638_v47 = vld [vmem:[#allocation5 + $0x108] sm:$0xff]  ;;  %v2637_v3 = vld [vmem:[#allocation5 + $0x100] sm:$0xff]  ;;  %v2640_v51 = vld [vmem:[#allocation5 + $0x118] sm:$0xff] }
 0x80a   :  { %v2639_v8 = vld [vmem:[#allocation5 + $0x110] sm:$0xff]  ;;  %v2642_v21 = vld [vmem:[#allocation5 + $0x128] sm:$0xff]  ;;  %v2641_v4 = vld [vmem:[#allocation5 + $0x120] sm:$0xff] }
 0x80b   :  { %v2644_v36 = vld [vmem:[#allocation5 + $0x138] sm:$0xff]  ;;  %v2643_v44 = vld [vmem:[#allocation5 + $0x130] sm:$0xff]  ;;  %v2646_v50 = vld [vmem:[#allocation5 + $0x148] sm:$0xff] }
 0x80c   :  { %2691 = vmatpush1.bf16.msra.mxu0 %v2611_v24  ;;  %v2645_v18 = vld [vmem:[#allocation5 + $0x140] sm:$0xff]  ;;  %v2648_v39 = vld [vmem:[#allocation5 + $0x158] sm:$0xff]  ;;  %v2647_v63 = vld [vmem:[#allocation5 + $0x150] sm:$0xff] }
 0x80d   :  { %2692 = vmatprep.subr.bf16.mxu0 %v2614_v27  ;;  %v2650_v30 = vld [vmem:[#allocation5 + $0x168] sm:$0xff]  ;;  %v2649_v19 = vld [vmem:[#allocation5 + $0x160] sm:$0xff]  ;;  %v2652_v31 = vld [vmem:[#allocation5 + $0x178] sm:$0xff] }
 0x80e   :  { %v2651_v34 = vld [vmem:[#allocation5 + $0x170] sm:$0xff]  ;;  %v2654_v48 = vld [vmem:[#allocation5 + $0x188] sm:$0xff]  ;;  %v2653_v33 = vld [vmem:[#allocation5 + $0x180] sm:$0xff] }
 0x80f   :  { %v2656_v49 = vld [vmem:[#allocation5 + $0x198] sm:$0xff]  ;;  %v2655_v54 = vld [vmem:[#allocation5 + $0x190] sm:$0xff]  ;;  %v2658_v12 = vld [vmem:[#allocation5 + $0x1a8] sm:$0xff] }
 0x810   :  { %2693 = vmatpush1.bf16.msra.mxu0 %v2613_v37  ;;  %v2657_v11 = vld [vmem:[#allocation5 + $0x1a0] sm:$0xff]  ;;  %v2660_v16 = vld [vmem:[#allocation5 + $0x1b8] sm:$0xff]  ;;  %v2659_v55 = vld [vmem:[#allocation5 + $0x1b0] sm:$0xff] }
 0x811   :  { %2694 = vmatprep.subr.bf16.mxu0 %v2616_v46  ;;  %v2662_v22 = vld [vmem:[#allocation5 + $0x1c8] sm:$0xff]  ;;  %v2661_v26 = vld [vmem:[#allocation5 + $0x1c0] sm:$0xff]  ;;  %v2664_v24 = vld [vmem:[#allocation5 + $0x1d8] sm:$0xff] }
 0x812   :  { %v2663_v27 = vld [vmem:[#allocation5 + $0x1d0] sm:$0xff]  ;;  %v2666_v37 = vld [vmem:[#allocation5 + $0x1e8] sm:$0xff]  ;;  %v2665_v46 = vld [vmem:[#allocation5 + $0x1e0] sm:$0xff] }
 0x814   :  { %2695 = vmatpush1.bf16.msra.mxu0 %v2615_v15  ;;  %v2668_v15 = vld [vmem:[#allocation5 + $0x1f8] sm:$0xff] }
 0x815   :  { %2696 = vmatprep.subr.bf16.mxu0 %v2618_v62  ;;  %v2667_v62 = vld [vmem:[#allocation5 + $0x1f0] sm:$0xff] }
 0x818   :  { %2697 = vmatpush1.bf16.msra.mxu0 %v2617_v58  ;;  %v2671_v58 = vpack.c.bf16 %v2600_v45, %v2596_v1 }
 0x819   :  { %2698 = vmatprep.subr.bf16.mxu0 %v2620_v17  ;;  %v2778_v17 = vld [vmem:[%s3979_s9] sm:$0x3] }
 0x81c   :  { %2699 = vmatpush1.bf16.msra.mxu0 %v2619_v32  ;;  %v2779_v32 = vunpack.c.l.bf16 %v2778_v17 }
 0x81d   :  { %2700 = vmatprep.subr.bf16.mxu0 %v2622_v59  ;;  %v2677_v59 = vrot.slane %v3565_v5, %v3621_v13 }
 0x81e   :  { %v2788_v7 = vrot.slane %v2779_v32, %v3672_v60 }
 0x820   :  { %2701 = vmatpush1.bf16.msra.mxu0 %v2621_v9  ;;  %v2681_v9 = vrot.slane %v3565_v5, %v3624_v14 }
 0x821   :  { %2702 = vmatprep.subr.bf16.mxu0 %v2624_v20  ;;  %v2784_v20 = vrot.slane %v2779_v32, %v3621_v13 }
 0x824   :  { %2703 = vmatpush1.bf16.msra.mxu0 %v2623_v57 }
 0x825   :  { %2704 = vmatprep.subr.bf16.mxu0 %v2626_v25 }
 0x828   :  { %2705 = vmatpush1.bf16.msra.mxu0 %v2625_v10 }
 0x829   :  { %2706 = vmatprep.subr.bf16.mxu0 %v2628_v52  ;;  %v2794_v52 = vrot.slane %v2784_v20, %v3621_v13 }
 0x82c   :  { %2707 = vmatpush1.bf16.msra.mxu0 %v2627_v0 }
 0x82d   :  { %2708 = vmatprep.subr.bf16.mxu0 %v2630_v28 }
 0x830   :  { %2709 = vmatpush1.bf16.msra.mxu0 %v2629_v23  ;;  %v2798_v23 = vrot.slane %v2788_v7, %v3621_v13 }
 0x831   :  { %2710 = vmatprep.subr.bf16.mxu0 %v2632_v53 }
 0x834   :  { %2711 = vmatpush1.bf16.msra.mxu0 %v2631_v38 }
 0x835   :  { %2712 = vmatprep.subr.bf16.mxu0 %v2634_v29 }
 0x838   :  { %2713 = vmatpush1.bf16.msra.mxu0 %v2633_v41 }
 0x839   :  { %2714 = vmatprep.subr.bf16.mxu0 %v2636_v2 }
 0x83c   :  { %2715 = vmatpush1.bf16.msra.mxu0 %v2635_v35 }
 0x83d   :  { %2727 = vmatprep.subr.bf16.mxu0 %v2638_v47 }
 0x83f   :  { %2717 = vmatmul.mubr.bf16.vlgmr.msra.gmra.mrb[24].mxu0 %v2669_v40 }
 0x840   :  { %2728 = vmatpush1.bf16.msra.mxu0 %v2637_v3  ;;  %2759 = vmatprep.mubr.bf16.mxu0 %v2672_v42 }
 0x841   :  { %2729 = vmatprep.subr.bf16.mxu0 %v2640_v51 }
 0x844   :  { %2730 = vmatpush1.bf16.msra.mxu0 %v2639_v8 }
 0x845   :  { %2731 = vmatprep.subr.bf16.mxu0 %v2642_v21 }
 0x848   :  { %2732 = vmatpush1.bf16.msra.mxu0 %v2641_v4 }
 0x849   :  { %2733 = vmatprep.subr.bf16.mxu0 %v2644_v36 }
 0x84c   :  { %2734 = vmatpush1.bf16.msra.mxu0 %v2643_v44 }
 0x84d   :  { %2735 = vmatprep.subr.bf16.mxu0 %v2646_v50 }
 0x850   :  { %2736 = vmatpush1.bf16.msra.mxu0 %v2645_v18 }
 0x851   :  { %2737 = vmatprep.subr.bf16.mxu0 %v2648_v39 }
 0x854   :  { %2738 = vmatpush1.bf16.msra.mxu0 %v2647_v63 }
 0x855   :  { %2739 = vmatprep.subr.bf16.mxu0 %v2650_v30 }
 0x858   :  { %2740 = vmatpush1.bf16.msra.mxu0 %v2649_v19 }
 0x859   :  { %2741 = vmatprep.subr.bf16.mxu0 %v2652_v31 }
 0x85c   :  { %2742 = vmatpush1.bf16.msra.mxu0 %v2651_v34 }
 0x85d   :  { %2743 = vmatprep.subr.bf16.mxu0 %v2654_v48 }
 0x860   :  { %2744 = vmatpush1.bf16.msra.mxu0 %v2653_v33 }
 0x861   :  { %2745 = vmatprep.subr.bf16.mxu0 %v2656_v49 }
 0x864   :  { %2746 = vmatpush1.bf16.msra.mxu0 %v2655_v54 }
 0x865   :  { %2747 = vmatprep.subr.bf16.mxu0 %v2658_v12 }
 0x868   :  { %2748 = vmatpush1.bf16.msra.mxu0 %v2657_v11 }
 0x869   :  { %2749 = vmatprep.subr.bf16.mxu0 %v2660_v16 }
 0x86c   :  { %2750 = vmatpush1.bf16.msra.mxu0 %v2659_v55 }
 0x86d   :  { %2751 = vmatprep.subr.bf16.mxu0 %v2662_v22 }
 0x870   :  { %2752 = vmatpush1.bf16.msra.mxu0 %v2661_v26 }
 0x871   :  { %2753 = vmatprep.subr.bf16.mxu0 %v2664_v24 }
 0x874   :  { %2754 = vmatpush1.bf16.msra.mxu0 %v2663_v27 }
 0x875   :  { %2755 = vmatprep.subr.bf16.mxu0 %v2666_v37 }
 0x878   :  { %2756 = vmatpush1.bf16.msra.mxu0 %v2665_v46 }
 0x879   :  { %2757 = vmatprep.subr.bf16.mxu0 %v2668_v15 }
 0x87c   :  { %2758 = vmatpush1.bf16.msra.mxu0 %v2667_v62 }
 0x87f   :  { %2760 = vmatmul.mubr.bf16.vlgmr.msra.gmra.mrb[24].mxu0 %v2671_v58 }
 0x952   :  { %v2761_v56 = vpop.f32.mrb[24].mxu0 }
 0x953   :  { %v3085_v61 = vadd.f32 %v2761_v56, %v2677_v59  ;;  %v2763_v1 = vpop.f32.mrb[25].mxu0 }
 0x954   :  { %v3086_v43 = vadd.f32 %v2763_v1, %v2681_v9  ;;  %v2765_v45 = vpop.f32.mrb[26].mxu0 }
 0x955   :  { %v2770_v57 = vmul.f32 0.2, %v3085_v61  ;;  %v3087_v25 = vadd.f32 %v2765_v45, %v2677_v59  ;;  %v2767_v10 = vpop.f32.mrb[27].mxu0 }
 0x956   :  { %v2771_v0 = vmul.f32 0.2, %v3086_v43  ;;  %v3088_v28 = vadd.f32 %v2767_v10, %v2681_v9 }
 0x957   :  { %v2774_v53 = vmax.f32 %v3085_v61, %v2770_v57  ;;  %v2772_v5 = vmul.f32 0.2, %v3087_v25 }
 0x958   :  { %v2775_v14 = vmax.f32 %v3086_v43, %v2771_v0  ;;  %v2773_v38 = vmul.f32 0.2, %v3088_v28 }
 0x959   :  { %v2776_v29 = vmax.f32 %v3087_v25, %v2772_v5  ;;  %v2799_v41 = vmul.f32 %v2794_v52, %v2774_v53 }
 0x95a   :  { %v2777_v60 = vmax.f32 %v3088_v28, %v2773_v38  ;;  %v2800_v2 = vmul.f32 %v2798_v23, %v2775_v14 }
 0x95b   :  { %v2801_v35 = vmul.f32 %v2794_v52, %v2776_v29 }
 0x95c   :  { %v2803_v47 = vadd.f32 %v2800_v2, %v2799_v41  ;;  %v2802_v40 = vmul.f32 %v2798_v23, %v2777_v60 }
 0x95e   :  { %2804 = vadd.xlane.f32.xlu0 %v2803_v47  ;;  %v2806_v42 = vadd.f32 %v2802_v40, %v2801_v35 }
 0x962   :  { %2807 = vadd.xlane.f32.xlu0 %v2806_v42 }
 0x9eb   :  { %v2805_v3 = vpop.xlane.xlu0 %2804 }
 0x9ec   :  { %v2815_v51 = vadd.f32 %v3570_v6, %v2805_v3 }
 0x9ee   :  { %v2962_v8 = vmul.f32 -1.442695, %v2815_v51 }
 0x9ef   :  { %v2808_v21 = vpop.xlane.xlu0 %2807 }
 0x9f0   :  { %3292 = vpow2.f32 %v2962_v8  ;;  %v2816_v13 = vadd.f32 %v3570_v6, %v2808_v21 }
 0x9f2   :  { %v2963_v4 = vmul.f32 -1.442695, %v2816_v13 }
 0x9f4   :  { %3294 = vpow2.f32 %v2963_v4 }
 0x9fa   :  { %v3293_v36 = vpop.eup %3292 }
 0x9fb   :  { %v2823_v44 = vadd.f32 1.0, %v3293_v36 }
 0x9fd   :  { %3296 = vrcp.f32 %v2823_v44 }
 0x9fe   :  { %v3295_v50 = vpop.eup %3294 }
 0x9ff   :  { %v2824_v18 = vadd.f32 1.0, %v3295_v50 }
 0xa01   :  { %3298 = vrcp.f32 %v2824_v18 }
 0xa07   :  { %v3297_v39 = vpop.eup %3296 }
 0xa08   :  { %2830 = vst [vmem:[%s3981_s11 + $0x8] sm:$0xff] %v3297_v39 }
 0xa0b   :  { %v3299_v63 = vpop.eup %3298 }
 0xa0c   :  { %2831 = vst [vmem:[%s3981_s11 + $0x10] sm:$0xff] %v3299_v63 }
 0xa0d   :  { %2836 = vsyncpa [#allocation8], 1 }
 0xa0e   :  { %2837 = vsyncpa [#allocation10], 1 }
 0xa0f   :  { %2838 = vsyncmov [#allocation6] }
 0xa12   :  { %s2839_s24 = vpop.sfrf %2838 }
 0xa13   :  { %p2964_p10 = scmp.ne.s32.totalorder %s2839_s24, 0 }
 0xa15   :  { %2843 = shalt.err (%p2964_p10)  }
 0xa16   :  { %2845 = vsyncmov [#allocation6 + $0x1] }
 0xa19   :  { %s2846_s6 = vpop.sfrf %2845 }
 0xa1a   :  { %p2965_p11 = scmp.ne.s32.totalorder %s2846_s6, 0 }
 0xa1c   :  { %2850 = shalt.err (%p2965_p11)  }
 0xa1d   :  { %2852 = vsyncmov [#allocation6 + $0x2] }
 0xa20   :  { %s2853_s7 = vpop.sfrf %2852 }
 0xa21   :  { %p2966_p12 = scmp.ne.s32.totalorder %s2853_s7, 0 }
 0xa23   :  { %2857 = shalt.err (%p2966_p12)  }
 0xa24   :  { %2859 = vsyncmov [#allocation6 + $0x3] }
 0xa27   :  { %s2860_s3 = vpop.sfrf %2859 }
 0xa28   :  { %p2967_p13 = scmp.ne.s32.totalorder %s2860_s3, 0 }
 0xa2a   :  { %2864 = shalt.err (%p2967_p13)  }

</bundles_post_ra>
